<compile_context>
chip_gen: v7x
topology: tpu7x:2x2x1
jax: 0.10.0
libtpu: 0.0.40
codegen_flags: <defaults>
</compile_context>

<pallas_src>
import functools

import jax
import jax.numpy as jnp
from jax.experimental import pallas as pl
from jax.experimental.pallas import tpu as pltpu


# ----------------------------------------------------------------------------
# Fused Pallas kernel: patch-embed linear + all EncResBlocks per row-tile
# ----------------------------------------------------------------------------
def _make_fused_kernel(block_has_skip, compute_dtype):
    """block_has_skip: tuple[bool] -- True if the block has a Linear skip (ws, bs)."""
    n_in = 3 + sum(6 if s else 4 for s in block_has_skip)

    def kernel(*refs):
        # inputs
        x_ref, pw_ref, pb_ref = refs[0], refs[1], refs[2]
        idx = 3
        block_refs = []
        for has_skip in block_has_skip:
            n = 6 if has_skip else 4
            block_refs.append(refs[idx:idx + n])
            idx += n
        assert idx == n_in
        # outputs
        dino_ref, sem_ref = refs[n_in], refs[n_in + 1]

        cdt = compute_dtype
        # patch embed (extractor stand-in):  (tile_n, Kp) @ (Kp, F) + b
        x = x_ref[...].astype(cdt)
        feat = jnp.dot(x, pw_ref[...].astype(cdt),
                       preferred_element_type=jnp.float32) + pb_ref[...]
        dino_ref[...] = feat.astype(dino_ref.dtype)

        # semantic_enc_proj: chain of EncResBlocks, activation stays on-chip
        act = feat
        for has_skip, brefs in zip(block_has_skip, block_refs):
            if has_skip:
                w1, b1, w2, b2, ws, bs = brefs
            else:
                w1, b1, w2, b2 = brefs
            a_c = act.astype(cdt)
            h = jnp.dot(a_c, w1[...].astype(cdt),
                        preferred_element_type=jnp.float32) + b1[...]
            h = jnp.maximum(h, 0.0)
            y = jnp.dot(h.astype(cdt), w2[...].astype(cdt),
                        preferred_element_type=jnp.float32) + b2[...]
            if has_skip:
                s = jnp.dot(a_c, ws[...].astype(cdt),
                            preferred_element_type=jnp.float32) + bs[...]
            else:
                s = act  # identity skip: no eye() matmul
            act = jnp.maximum(y + s, 0.0)
        sem_ref[...] = act.astype(sem_ref.dtype)

    return kernel


def fused_dino_semantic(patches, params, *, tile_n, compute_dtype=jnp.bfloat16,
                        out_dtype=jnp.float32):
    """patches: (N, C*p*p). Returns (dino_feat (N,F), semantic_flat (N,S))."""
    N, Kp = patches.shape
    F = params["patch_w"].shape[1]
    assert tile_n % 8 == 0

    # pad N up to a multiple of tile_n (zeros), slice back afterwards
    n_tiles = pl.cdiv(N, tile_n)
    N_pad = n_tiles * tile_n
    if N_pad != N:
        patches = jnp.pad(patches, ((0, N_pad - N), (0, 0)))

    cdt = compute_dtype
    patches_c = patches.astype(cdt)

    # flat operand list + BlockSpecs (weights are grid-invariant)
    flat_inputs = [patches_c,
                   params["patch_w"].astype(cdt),
                   params["patch_b"].reshape(1, F).astype(jnp.float32)]
    in_specs = [
        pl.BlockSpec((tile_n, Kp), lambda i: (i, 0)),
        pl.BlockSpec((Kp, F), lambda i: (0, 0)),
        pl.BlockSpec((1, F), lambda i: (0, 0)),
    ]
    block_has_skip = []
    flops_per_row = 2 * Kp * F
    for blk in params["enc_blocks"]:
        has_skip = "ws" in blk
        block_has_skip.append(has_skip)
        din, dh = blk["w1"].shape
        dout = blk["w2"].shape[1]
        flops_per_row += 2 * (din * dh + dh * dout + (din * dout if has_skip else 0))
        flat_inputs += [blk["w1"].astype(cdt),
                        blk["b1"].reshape(1, dh).astype(jnp.float32),
                        blk["w2"].astype(cdt),
                        blk["b2"].reshape(1, dout).astype(jnp.float32)]
        in_specs += [pl.BlockSpec((din, dh), lambda i: (0, 0)),
                     pl.BlockSpec((1, dh), lambda i: (0, 0)),
                     pl.BlockSpec((dh, dout), lambda i: (0, 0)),
                     pl.BlockSpec((1, dout), lambda i: (0, 0))]
        if has_skip:
            flat_inputs += [blk["ws"].astype(cdt),
                            blk["bs"].reshape(1, dout).astype(jnp.float32)]
            in_specs += [pl.BlockSpec((din, dout), lambda i: (0, 0)),
                         pl.BlockSpec((1, dout), lambda i: (0, 0))]

    S = params["enc_blocks"][-1]["w2"].shape[1] if params["enc_blocks"] else F

    bytes_in = sum(int(a.size) * a.dtype.itemsize for a in flat_inputs)
    bytes_out = N_pad * (F + S) * jnp.dtype(out_dtype).itemsize
    cost = pl.CostEstimate(flops=int(flops_per_row) * int(N_pad),
                           transcendentals=0,
                           bytes_accessed=int(bytes_in + bytes_out))

    kernel = _make_fused_kernel(tuple(block_has_skip), compute_dtype)

    dino_pad, sem_pad = pl.pallas_call(
        kernel,
        out_shape=(jax.ShapeDtypeStruct((N_pad, F), out_dtype),
                   jax.ShapeDtypeStruct((N_pad, S), out_dtype)),
        grid=(n_tiles,),
        in_specs=in_specs,
        out_specs=(pl.BlockSpec((tile_n, F), lambda i: (i, 0)),
                   pl.BlockSpec((tile_n, S), lambda i: (i, 0))),
        compiler_params=pltpu.CompilerParams(
            dimension_semantics=("parallel",)),  # shards row-tiles across TCs on v7x
        cost_estimate=cost,
    )(*flat_inputs)

    if N_pad != N:
        dino_pad = dino_pad[:N]
        sem_pad = sem_pad[:N]
    return dino_pad, sem_pad


# ----------------------------------------------------------------------------
# Forward pass (stage = 0 branch of DINOCluster.forward)
# ----------------------------------------------------------------------------
def dino_cluster_forward(img, params, *, patch, tile_n, compute_dtype=jnp.bfloat16):
    """img: NCHW float32 (B, 3, H, W). Returns (dino_feat (N,D), semantic (B,S,h,w), {})."""
    B, C, H, W = img.shape
    h, w = H // patch, W // patch
    N = B * h * w

    # --- extractor (patch-embed stand-in for DinoFeaturizer); unfold is glue ---
    # (B, C, h, p, w, p) -> (B, h, w, C, p, p) -> (N, C*p*p)
    patches = img.reshape(B, C, h, patch, w, patch)
    patches = jnp.transpose(patches, (0, 2, 4, 1, 3, 5)).reshape(N, C * patch * patch)

    dino_feat, semantic_flat = fused_dino_semantic(
        patches, params, tile_n=tile_n, compute_dtype=compute_dtype,
        out_dtype=img.dtype)

    # (N, S) -> (B, h, w, S) -> (B, S, h, w)
    S = semantic_flat.shape[-1]
    semantic_feat = jnp.transpose(semantic_flat.reshape(B, h, w, S), (0, 3, 1, 2))
    return dino_feat, semantic_feat, {}


# ----------------------------------------------------------------------------
# Deterministic parameter init (shapes implied by the module's __init__)
# ----------------------------------------------------------------------------
def init_params(key, *, patch, in_ch, feat_dim, semantic_dim, hidden_dim, num_enc_blocks):
    keys = jax.random.split(key, 2 + 3 * num_enc_blocks)
    patch_in = in_ch * patch * patch

    def lin(k, din, dout):
        return (jax.random.normal(k, (din, dout), jnp.float32) / jnp.sqrt(din)).astype(jnp.float32)

    params = {
        "patch_w": lin(keys[0], patch_in, feat_dim),
        "patch_b": jax.random.normal(keys[1], (feat_dim,), jnp.float32) * 0.01,
        "enc_blocks": [],
    }
    for i in range(num_enc_blocks):
        din = feat_dim if i == 0 else semantic_dim
        dout = semantic_dim
        k1, k2, k3 = keys[2 + 3 * i: 5 + 3 * i]
        blk = {
            "w1": lin(k1, din, hidden_dim),
            "b1": jnp.zeros((hidden_dim,), jnp.float32),
            "w2": lin(k2, hidden_dim, dout),
            "b2": jnp.zeros((dout,), jnp.float32),
        }
        if din != dout:
            blk["ws"] = lin(k3, din, dout)          # downsample skip Linear
            blk["bs"] = jnp.zeros((dout,), jnp.float32)
        # identity skip when din == dout: no parameters, skip is `+ x`
        params["enc_blocks"].append(blk)
    return params


# ----------------------------------------------------------------------------
# Pure-JAX reference (same bf16-operand / f32-accumulate numerics)
# ----------------------------------------------------------------------------
def reference_forward(img, params, *, patch, compute_dtype=jnp.bfloat16):
    B, C, H, W = img.shape
    h, w = H // patch, W // patch
    patches = img.reshape(B, C, h, patch, w, patch)
    patches = jnp.transpose(patches, (0, 2, 4, 1, 3, 5)).reshape(B * h * w, -1)
    cdt = compute_dtype
    feat = jnp.dot(patches.astype(cdt), params["patch_w"].astype(cdt),
                   preferred_element_type=jnp.float32) + params["patch_b"]
    x = feat
    for blk in params["enc_blocks"]:
        hdn = jnp.maximum(jnp.dot(x.astype(cdt), blk["w1"].astype(cdt),
                                  preferred_element_type=jnp.float32) + blk["b1"], 0.0)
        y = jnp.dot(hdn.astype(cdt), blk["w2"].astype(cdt),
                    preferred_element_type=jnp.float32) + blk["b2"]
        if "ws" in blk:
            s = jnp.dot(x.astype(cdt), blk["ws"].astype(cdt),
                        preferred_element_type=jnp.float32) + blk["bs"]
        else:
            s = x
        x = jnp.maximum(y + s, 0.0)
    S = x.shape[-1]
    sem = jnp.transpose(x.reshape(B, h, w, S), (0, 3, 1, 2))
    return feat, sem


if __name__ == "__main__":
    # Module-consistent shapes (DINO ViT-S/8-ish), kept small but MXU/lane friendly.
    B, C, H, W = 4, 3, 128, 128
    PATCH = 8                       # ViT-S/8 stride -> h = w = 16
    FEAT_DIM = 384                  # ViT-S n_feats (multiple of 128 -> lane dense)
    SEMANTIC_DIM = 128              # cfg['semantic_dim']  (multiple of 128)
    HIDDEN_DIM = 128                # cfg['hidden_dim']    (multiple of 128)
    NUM_ENC_BLOCKS = 2              # cfg['enc_num_blocks']
    TILE_N = 512                    # N = B*h*w = 1024 -> grid of 2 row-tiles

    key = jax.random.PRNGKey(0)
    k_img, k_par = jax.random.split(key)
    img = jax.random.normal(k_img, (B, C, H, W), jnp.float32)
    params = init_params(k_par, patch=PATCH, in_ch=C, feat_dim=FEAT_DIM,
                         semantic_dim=SEMANTIC_DIM, hidden_dim=HIDDEN_DIM,
                         num_enc_blocks=NUM_ENC_BLOCKS)

    fwd = jax.jit(functools.partial(dino_cluster_forward, patch=PATCH, tile_n=TILE_N))
    dino_feat, semantic_feat, output = fwd(img, params)
    jax.block_until_ready((dino_feat, semantic_feat))

    assert dino_feat.shape == (B * (H // PATCH) * (W // PATCH), FEAT_DIM)
    assert semantic_feat.shape == (B, SEMANTIC_DIM, H // PATCH, W // PATCH)

    ref_feat, ref_sem = reference_forward(img, params, patch=PATCH)
    assert jnp.allclose(dino_feat, ref_feat, atol=1e-2, rtol=1e-2)
    assert jnp.allclose(semantic_feat, ref_sem, atol=1e-2, rtol=1e-2)

    print("KERNEL_OK")
</pallas_src>

<mosaic_0001>
module attributes {stable_mosaic.version = 11 : i64} {
  func.func @kernel(%arg0: i32, %arg1: memref<512x192xbf16, #tpu.memory_space<vmem>>, %arg2: memref<192x384xbf16, #tpu.memory_space<vmem>>, %arg3: memref<1x384xf32, #tpu.memory_space<vmem>>, %arg4: memref<384x128xbf16, #tpu.memory_space<vmem>>, %arg5: memref<1x128xf32, #tpu.memory_space<vmem>>, %arg6: memref<128x128xbf16, #tpu.memory_space<vmem>>, %arg7: memref<1x128xf32, #tpu.memory_space<vmem>>, %arg8: memref<384x128xbf16, #tpu.memory_space<vmem>>, %arg9: memref<1x128xf32, #tpu.memory_space<vmem>>, %arg10: memref<128x128xbf16, #tpu.memory_space<vmem>>, %arg11: memref<1x128xf32, #tpu.memory_space<vmem>>, %arg12: memref<128x128xbf16, #tpu.memory_space<vmem>>, %arg13: memref<1x128xf32, #tpu.memory_space<vmem>>, %arg14: memref<512x384xf32, #tpu.memory_space<vmem>>, %arg15: memref<512x128xf32, #tpu.memory_space<vmem>>) attributes {dimension_semantics = [#tpu.dimension_semantics<parallel>], iteration_bounds = array<i64: 2>, scalar_prefetch = 0 : i64, scratch_operands = 0 : i64, tpu.core_type = #tpu.core_type<tc>, window_params = [{transform_indices = @transform_0, window_bounds = array<i64: 512, 192>}, {pipeline_mode = #tpu.pipeline_mode<synchronous>, transform_indices = @transform_1, window_bounds = array<i64: 192, 384>}, {pipeline_mode = #tpu.pipeline_mode<synchronous>, transform_indices = @transform_2, window_bounds = array<i64: 1, 384>}, {pipeline_mode = #tpu.pipeline_mode<synchronous>, transform_indices = @transform_3, window_bounds = array<i64: 384, 128>}, {pipeline_mode = #tpu.pipeline_mode<synchronous>, transform_indices = @transform_4, window_bounds = array<i64: 1, 128>}, {pipeline_mode = #tpu.pipeline_mode<synchronous>, transform_indices = @transform_5, window_bounds = array<i64: 128, 128>}, {pipeline_mode = #tpu.pipeline_mode<synchronous>, transform_indices = @transform_6, window_bounds = array<i64: 1, 128>}, {pipeline_mode = #tpu.pipeline_mode<synchronous>, transform_indices = @transform_7, window_bounds = array<i64: 384, 128>}, {pipeline_mode = #tpu.pipeline_mode<synchronous>, transform_indices = @transform_8, window_bounds = array<i64: 1, 128>}, {pipeline_mode = #tpu.pipeline_mode<synchronous>, transform_indices = @transform_9, window_bounds = array<i64: 128, 128>}, {pipeline_mode = #tpu.pipeline_mode<synchronous>, transform_indices = @transform_10, window_bounds = array<i64: 1, 128>}, {pipeline_mode = #tpu.pipeline_mode<synchronous>, transform_indices = @transform_11, window_bounds = array<i64: 128, 128>}, {pipeline_mode = #tpu.pipeline_mode<synchronous>, transform_indices = @transform_12, window_bounds = array<i64: 1, 128>}, {transform_indices = @transform_13, window_bounds = array<i64: 512, 384>}, {transform_indices = @transform_14, window_bounds = array<i64: 512, 128>}]} {
    %c0 = arith.constant 0 : index
    %c0_0 = arith.constant 0 : index
    %0 = vector.load %arg1[%c0, %c0_0] : memref<512x192xbf16, #tpu.memory_space<vmem>>, vector<512x192xbf16>
    %c0_1 = arith.constant 0 : index
    %c0_2 = arith.constant 0 : index
    %1 = vector.load %arg2[%c0_1, %c0_2] : memref<192x384xbf16, #tpu.memory_space<vmem>>, vector<192x384xbf16>
    %cst = arith.constant dense<0.000000e+00> : vector<512x384xf32>
    %2 = tpu.matmul %0, %1, %cst {dimension_numbers = #tpu.dot_dimension_numbers<[1], [0], [0], [1], [0, 0, 1, 1], [], []>} : vector<512x192xbf16>, vector<192x384xbf16>, vector<512x384xf32> -> vector<512x384xf32>
    %c0_3 = arith.constant 0 : index
    %c0_4 = arith.constant 0 : index
    %3 = vector.load %arg3[%c0_3, %c0_4] : memref<1x384xf32, #tpu.memory_space<vmem>>, vector<1x384xf32>
    %4 = vector.broadcast %3 : vector<1x384xf32> to vector<512x384xf32>
    %5 = arith.addf %2, %4 : vector<512x384xf32>
    %c0_5 = arith.constant 0 : index
    %c0_6 = arith.constant 0 : index
    %6 = vector.load %arg14[%c0_5, %c0_6] : memref<512x384xf32, #tpu.memory_space<vmem>>, vector<512x384xf32>
    tpu.vector_store %arg14[%c0_5, %c0_6], %5 {strides = array<i32>} : memref<512x384xf32, #tpu.memory_space<vmem>>, vector<512x384xf32>,
    %7 = arith.truncf %5 : vector<512x384xf32> to vector<512x384xbf16>
    %c0_7 = arith.constant 0 : index
    %c0_8 = arith.constant 0 : index
    %8 = vector.load %arg4[%c0_7, %c0_8] : memref<384x128xbf16, #tpu.memory_space<vmem>>, vector<384x128xbf16>
    %cst_9 = arith.constant dense<0.000000e+00> : vector<512x128xf32>
    %9 = tpu.matmul %7, %8, %cst_9 {dimension_numbers = #tpu.dot_dimension_numbers<[1], [0], [0], [1], [0, 0, 1, 1], [], []>} : vector<512x384xbf16>, vector<384x128xbf16>, vector<512x128xf32> -> vector<512x128xf32>
    %c0_10 = arith.constant 0 : index
    %c0_11 = arith.constant 0 : index
    %10 = vector.load %arg5[%c0_10, %c0_11] : memref<1x128xf32, #tpu.memory_space<vmem>>, vector<1x128xf32>
    %11 = vector.broadcast %10 : vector<1x128xf32> to vector<512x128xf32>
    %12 = arith.addf %9, %11 : vector<512x128xf32>
    %cst_12 = arith.constant 0.000000e+00 : f32
    %13 = vector.broadcast %cst_12 : f32 to vector<512x128xf32>
    %14 = arith.maximumf %12, %13 : vector<512x128xf32>
    %15 = arith.truncf %14 : vector<512x128xf32> to vector<512x128xbf16>
    %c0_13 = arith.constant 0 : index
    %c0_14 = arith.constant 0 : index
    %16 = vector.load %arg6[%c0_13, %c0_14] : memref<128x128xbf16, #tpu.memory_space<vmem>>, vector<128x128xbf16>
    %cst_15 = arith.constant dense<0.000000e+00> : vector<512x128xf32>
    %17 = tpu.matmul %15, %16, %cst_15 {dimension_numbers = #tpu.dot_dimension_numbers<[1], [0], [0], [1], [0, 0, 1, 1], [], []>} : vector<512x128xbf16>, vector<128x128xbf16>, vector<512x128xf32> -> vector<512x128xf32>
    %c0_16 = arith.constant 0 : index
    %c0_17 = arith.constant 0 : index
    %18 = vector.load %arg7[%c0_16, %c0_17] : memref<1x128xf32, #tpu.memory_space<vmem>>, vector<1x128xf32>
    %19 = vector.broadcast %18 : vector<1x128xf32> to vector<512x128xf32>
    %20 = arith.addf %17, %19 : vector<512x128xf32>
    %c0_18 = arith.constant 0 : index
    %c0_19 = arith.constant 0 : index
    %21 = vector.load %arg8[%c0_18, %c0_19] : memref<384x128xbf16, #tpu.memory_space<vmem>>, vector<384x128xbf16>
    %cst_20 = arith.constant dense<0.000000e+00> : vector<512x128xf32>
    %22 = tpu.matmul %7, %21, %cst_20 {dimension_numbers = #tpu.dot_dimension_numbers<[1], [0], [0], [1], [0, 0, 1, 1], [], []>} : vector<512x384xbf16>, vector<384x128xbf16>, vector<512x128xf32> -> vector<512x128xf32>
    %c0_21 = arith.constant 0 : index
    %c0_22 = arith.constant 0 : index
    %23 = vector.load %arg9[%c0_21, %c0_22] : memref<1x128xf32, #tpu.memory_space<vmem>>, vector<1x128xf32>
    %24 = vector.broadcast %23 : vector<1x128xf32> to vector<512x128xf32>
    %25 = arith.addf %22, %24 : vector<512x128xf32>
    %26 = arith.addf %20, %25 : vector<512x128xf32>
    %cst_23 = arith.constant 0.000000e+00 : f32
    %27 = vector.broadcast %cst_23 : f32 to vector<512x128xf32>
    %28 = arith.maximumf %26, %27 : vector<512x128xf32>
    %29 = arith.truncf %28 : vector<512x128xf32> to vector<512x128xbf16>
    %c0_24 = arith.constant 0 : index
    %c0_25 = arith.constant 0 : index
    %30 = vector.load %arg10[%c0_24, %c0_25] : memref<128x128xbf16, #tpu.memory_space<vmem>>, vector<128x128xbf16>
    %cst_26 = arith.constant dense<0.000000e+00> : vector<512x128xf32>
    %31 = tpu.matmul %29, %30, %cst_26 {dimension_numbers = #tpu.dot_dimension_numbers<[1], [0], [0], [1], [0, 0, 1, 1], [], []>} : vector<512x128xbf16>, vector<128x128xbf16>, vector<512x128xf32> -> vector<512x128xf32>
    %c0_27 = arith.constant 0 : index
    %c0_28 = arith.constant 0 : index
    %32 = vector.load %arg11[%c0_27, %c0_28] : memref<1x128xf32, #tpu.memory_space<vmem>>, vector<1x128xf32>
    %33 = vector.broadcast %32 : vector<1x128xf32> to vector<512x128xf32>
    %34 = arith.addf %31, %33 : vector<512x128xf32>
    %cst_29 = arith.constant 0.000000e+00 : f32
    %35 = vector.broadcast %cst_29 : f32 to vector<512x128xf32>
    %36 = arith.maximumf %34, %35 : vector<512x128xf32>
    %37 = arith.truncf %36 : vector<512x128xf32> to vector<512x128xbf16>
    %c0_30 = arith.constant 0 : index
    %c0_31 = arith.constant 0 : index
    %38 = vector.load %arg12[%c0_30, %c0_31] : memref<128x128xbf16, #tpu.memory_space<vmem>>, vector<128x128xbf16>
    %cst_32 = arith.constant dense<0.000000e+00> : vector<512x128xf32>
    %39 = tpu.matmul %37, %38, %cst_32 {dimension_numbers = #tpu.dot_dimension_numbers<[1], [0], [0], [1], [0, 0, 1, 1], [], []>} : vector<512x128xbf16>, vector<128x128xbf16>, vector<512x128xf32> -> vector<512x128xf32>
    %c0_33 = arith.constant 0 : index
    %c0_34 = arith.constant 0 : index
    %40 = vector.load %arg13[%c0_33, %c0_34] : memref<1x128xf32, #tpu.memory_space<vmem>>, vector<1x128xf32>
    %41 = vector.broadcast %40 : vector<1x128xf32> to vector<512x128xf32>
    %42 = arith.addf %39, %41 : vector<512x128xf32>
    %43 = arith.addf %42, %28 : vector<512x128xf32>
    %cst_35 = arith.constant 0.000000e+00 : f32
    %44 = vector.broadcast %cst_35 : f32 to vector<512x128xf32>
    %45 = arith.maximumf %43, %44 : vector<512x128xf32>
    %c0_36 = arith.constant 0 : index
    %c0_37 = arith.constant 0 : index
    %46 = vector.load %arg15[%c0_36, %c0_37] : memref<512x128xf32, #tpu.memory_space<vmem>>, vector<512x128xf32>
    tpu.vector_store %arg15[%c0_36, %c0_37], %45 {strides = array<i32>} : memref<512x128xf32, #tpu.memory_space<vmem>>, vector<512x128xf32>,
    return
  }
  func.func @transform_0(%arg0: i32) -> (i32, i32) {
    %c0_i32 = arith.constant 0 : i32
    %c0_i32_0 = arith.constant 0 : i32
    return %arg0, %c0_i32 : i32, i32
  }
  func.func @transform_1(%arg0: i32) -> (i32, i32) {
    %c0_i32 = arith.constant 0 : i32
    %c0_i32_0 = arith.constant 0 : i32
    %c0_i32_1 = arith.constant 0 : i32
    return %c0_i32, %c0_i32_0 : i32, i32
  }
  func.func @transform_2(%arg0: i32) -> (i32, i32) {
    %c0_i32 = arith.constant 0 : i32
    %c0_i32_0 = arith.constant 0 : i32
    %c0_i32_1 = arith.constant 0 : i32
    return %c0_i32, %c0_i32_0 : i32, i32
  }
  func.func @transform_3(%arg0: i32) -> (i32, i32) {
    %c0_i32 = arith.constant 0 : i32
    %c0_i32_0 = arith.constant 0 : i32
    %c0_i32_1 = arith.constant 0 : i32
    return %c0_i32, %c0_i32_0 : i32, i32
  }
  func.func @transform_4(%arg0: i32) -> (i32, i32) {
    %c0_i32 = arith.constant 0 : i32
    %c0_i32_0 = arith.constant 0 : i32
    %c0_i32_1 = arith.constant 0 : i32
    return %c0_i32, %c0_i32_0 : i32, i32
  }
  func.func @transform_5(%arg0: i32) -> (i32, i32) {
    %c0_i32 = arith.constant 0 : i32
    %c0_i32_0 = arith.constant 0 : i32
    %c0_i32_1 = arith.constant 0 : i32
    return %c0_i32, %c0_i32_0 : i32, i32
  }
  func.func @transform_6(%arg0: i32) -> (i32, i32) {
    %c0_i32 = arith.constant 0 : i32
    %c0_i32_0 = arith.constant 0 : i32
    %c0_i32_1 = arith.constant 0 : i32
    return %c0_i32, %c0_i32_0 : i32, i32
  }
  func.func @transform_7(%arg0: i32) -> (i32, i32) {
    %c0_i32 = arith.constant 0 : i32
    %c0_i32_0 = arith.constant 0 : i32
    %c0_i32_1 = arith.constant 0 : i32
    return %c0_i32, %c0_i32_0 : i32, i32
  }
  func.func @transform_8(%arg0: i32) -> (i32, i32) {
    %c0_i32 = arith.constant 0 : i32
    %c0_i32_0 = arith.constant 0 : i32
    %c0_i32_1 = arith.constant 0 : i32
    return %c0_i32, %c0_i32_0 : i32, i32
  }
  func.func @transform_9(%arg0: i32) -> (i32, i32) {
    %c0_i32 = arith.constant 0 : i32
    %c0_i32_0 = arith.constant 0 : i32
    %c0_i32_1 = arith.constant 0 : i32
    return %c0_i32, %c0_i32_0 : i32, i32
  }
  func.func @transform_10(%arg0: i32) -> (i32, i32) {
    %c0_i32 = arith.constant 0 : i32
    %c0_i32_0 = arith.constant 0 : i32
    %c0_i32_1 = arith.constant 0 : i32
    return %c0_i32, %c0_i32_0 : i32, i32
  }
  func.func @transform_11(%arg0: i32) -> (i32, i32) {
    %c0_i32 = arith.constant 0 : i32
    %c0_i32_0 = arith.constant 0 : i32
    %c0_i32_1 = arith.constant 0 : i32
    return %c0_i32, %c0_i32_0 : i32, i32
  }
  func.func @transform_12(%arg0: i32) -> (i32, i32) {
    %c0_i32 = arith.constant 0 : i32
    %c0_i32_0 = arith.constant 0 : i32
    %c0_i32_1 = arith.constant 0 : i32
    return %c0_i32, %c0_i32_0 : i32, i32
  }
  func.func @transform_13(%arg0: i32) -> (i32, i32) {
    %c0_i32 = arith.constant 0 : i32
    %c0_i32_0 = arith.constant 0 : i32
    return %arg0, %c0_i32 : i32, i32
  }
  func.func @transform_14(%arg0: i32) -> (i32, i32) {
    %c0_i32 = arith.constant 0 : i32
    %c0_i32_0 = arith.constant 0 : i32
    return %arg0, %c0_i32 : i32, i32
  }
}

</mosaic_0001>

<bundles_post_ra>
// kernel: dino_cluster_forward.1
= control target key start
LH: loop header
LB: loop body
LE: loop exit
PB: predicated region body
PF: predicated region fallthrough
CT: control target
= control target key end

     0   :  { %20 = vsyncpa [#allocation3], 0  ;;  %s9811_s0 = inlined_call_operand.vmem [shape: bf16[1024,192], index: 0, kind: input, shape index: {}]   ;;  %s9812_s1 = inlined_call_operand.vmem [shape: bf16[192,384], index: 1, kind: input, shape index: {}]   ;;  %s9813_s2 = inlined_call_operand.vmem [shape: f32[1,384], index: 2, kind: input, shape index: {}]   ;;  %s9814_s3 = inlined_call_operand.vmem [shape: bf16[384,128], index: 3, kind: input, shape index: {}]   ;;  %s9815_s4 = inlined_call_operand.vmem [shape: f32[1,128], index: 4, kind: input, shape index: {}]   ;;  %s9816_s5 = inlined_call_operand.vmem [shape: bf16[128,128], index: 5, kind: input, shape index: {}]   ;;  %s9817_s6 = inlined_call_operand.vmem [shape: f32[1,128], index: 6, kind: input, shape index: {}]   ;;  %s9818_s7 = inlined_call_operand.vmem [shape: bf16[384,128], index: 7, kind: input, shape index: {}]   ;;  %s9819_s8 = inlined_call_operand.vmem [shape: f32[1,128], index: 8, kind: input, shape index: {}]   ;;  %s9820_s9 = inlined_call_operand.vmem [shape: bf16[128,128], index: 9, kind: input, shape index: {}]   ;;  %s9821_s10 = inlined_call_operand.vmem [shape: f32[1,128], index: 10, kind: input, shape index: {}]   ;;  %s9822_s11 = inlined_call_operand.vmem [shape: bf16[128,128], index: 11, kind: input, shape index: {}]   ;;  %s9823_s12 = inlined_call_operand.vmem [shape: f32[1,128], index: 12, kind: input, shape index: {}]   ;;  %s9824_s13 = inlined_call_operand.hbm [shape: f32[1024,384], index: 13, kind: output, shape index: {0}]   ;;  %s9825_s14 = inlined_call_operand.hbm [shape: f32[1024,128], index: 14, kind: output, shape index: {1}]  }
   0x1   :  { %22 = vsyncpa [#allocation3 + $0x1], 0 }
   0x2   :  { %23 = vsyncpa [#allocation5], 0 }
   0x3   :  { %25 = vsyncpa [#allocation5 + $0x1], 0  ;;  %s6773_s29 = smov 0   ;;  %s6775_s30 = smov 0  }
   0x4   :  { %s6777_s15 = smov 0   ;;  %s6779_s16 = smov 0  }
   0x5 LB: > { %9971 = sst [smem:[#allocation8_spill]] %s6685_s15  ;;  %s6794_s17 = sadd.s32 4294967295, %s6689_s16   ;;  %s6689_s16 = sphi %s6779_s16, %s10368_s16   ;;  %s6685_s15 = sphi %s6777_s15, %s10370_s15   ;;  %s6681_s30 = sphi %s6775_s30, %s10372_s30   ;;  %s6677_s29 = sphi %s6773_s29, %s10371_s29  }
   0x6   : > { %s5429_s18 = sadd.s32 4294967294, %s6689_s16   ;;  %s6798_s19 = sadd.s32 1, %s6689_s16  }
   0x7   : > { %9972 = sst [smem:[#allocation9_spill]] %s6798_s19  ;;  %s316_s20 = sadd.s32 1, %s6685_s15 }
   0x8   : > { %s313_s21 = ssub.s32 %s6689_s16, %s6798_s19  ;;  %p326_p0 = scmp.ne.s32.totalorder %s6685_s15, %s6681_s30 }
   0x9   : > { %p314_p1 = scmp.eq.s32.totalorder %s313_s21, 0  ;;  %p327_p2 = scmp.eq.s32.totalorder %s6794_s17, 1 }
   0xa   : > { %p332_p3 = scmp.ne.s32.totalorder %s6681_s30, %s6677_s29  ;;  %p333_p4 = scmp.eq.s32.totalorder %s5429_s18, 1 }
   0xb   : > { %s6809_s22 = scalar_select %p314_p1, %s6685_s15, %s316_s20  }
   0xc   : > { %p6811_p5 = por %p327_p2, %p326_p0  ;;  %p6815_p6 = por %p333_p4, %p332_p3 }
   0xd   : > { %9973 = sst [smem:[#allocation10_spill]] %s6809_s22  ;;  %p5432_p7 = scmp.ge.s32.totalorder %s6689_s16, 1 }
   0xe   : > { %s9975_s24 = scalar_select %p6815_p6, 1, 0 }
   0xf   : > { %p423_p8 = scmp.lt.s32.totalorder %s6689_s16, 3 }
  0x10   : > { %9976 = sst [smem:[#allocation11_spill]] %s9975_s24 }
  0x11   : > { %p424_p9 = pnand %p5432_p7, %p423_p8 }
  0x13   : > { %427 = sbr.rel (%p424_p9) target bundleno = 1637 (0x665), region = 72 }
  0x1a   : > { %v6363_v0 = vld [vmem:[%s9812_s1 + $0x4] ss:$12 sps:$4 sm:$0xff]   ;;  %s5434_s27 = sshll.u32 %s6794_s17, 6  ;;  %v6365_v1 = vld [vmem:[%s9812_s1] ss:$12 sps:$4 sm:$0xff]   ;;  %vm1094_vm0 = vcmask 523264  }
  0x1b   : > { %1191 = vmatprep.subr.bf16.mxu0 %v6363_v0  ;;  %6288 = vmatprep.subr.bf16.mxu1 %v6363_v0  ;;  %v6366_v2 = vld [vmem:[%s9812_s1 + $0x1c] ss:$12 sps:$4 sm:$0xff]   ;;  %v6368_v3 = vld [vmem:[%s9812_s1 + $0x18] ss:$12 sps:$4 sm:$0xff]   ;;  %p476_p10 = scmp.lt.s32.totalorder %s5434_s27, 127  ;;  %v9830_v30 = vmov 0  }
  0x1c   : > { %1192 = vmatpush1.bf16.msra.mxu0 %v6365_v1  ;;  %6300 = vmatpush1.bf16.msra.mxu1 %v6365_v1  ;;  %v6369_v4 = vld [vmem:[%s9812_s1 + $0x34] ss:$12 sps:$4 sm:$0xff]   ;;  %v6371_v5 = vld [vmem:[%s9812_s1 + $0x30] ss:$12 sps:$4 sm:$0xff]   ;;  %v6372_v6 = vld [vmem:[%s9812_s1 + $0x4c] ss:$12 sps:$4 sm:$0xff]  }
  0x1d   : > { %1193 = vmatprep.subr.bf16.mxu0 %v6366_v2  ;;  %6289 = vmatprep.subr.bf16.mxu1 %v6366_v2  ;;  %s10374_s27 = smov (!%p476_p10, %s5434_s27), 127  ;;  %v6374_v7 = vld [vmem:[%s9812_s1 + $0x48] ss:$12 sps:$4 sm:$0xff]   ;;  %v6375_v8 = vld [vmem:[%s9812_s1 + $0x64] ss:$12 sps:$4 sm:$0xff]   ;;  %v6488_v50 = vld [vmem:[%s9814_s3 + $0x18] sm:$0xff]  }
  0x1e   : > { %s5686_s25 = sshll.u32 %s10374_s27, 3  ;;  %v6377_v9 = vld [vmem:[%s9812_s1 + $0x60] ss:$12 sps:$4 sm:$0xff]   ;;  %v6378_v10 = vld [vmem:[%s9812_s1 + $0x7c] ss:$12 sps:$4 sm:$0xff]   ;;  %v6482_v46 = vld [vmem:[%s9814_s3 + $0x10] sm:$0xff]  }
  0x1f   : > { %s6852_s24 = scalar_lea.vmem %s9811_s0, %s5686_s25  ;;  %v6380_v13 = vld [vmem:[%s9812_s1 + $0x78] ss:$12 sps:$4 sm:$0xff]   ;;  %v6381_v14 = vld [vmem:[%s9812_s1 + $0x94] ss:$12 sps:$4 sm:$0xff]   ;;  %v6383_v15 = vld [vmem:[%s9812_s1 + $0x90] ss:$12 sps:$4 sm:$0xff]  }
  0x20   : > { %1194 = vmatpush1.bf16.msra.mxu0 %v6368_v3  ;;  %6301 = vmatpush1.bf16.msra.mxu1 %v6368_v3  ;;  %v6861_v11 = vld [vmem:[%s6852_s24 + $0x4] ss:$8 sps:$4 sm:$0xff]   ;;  %v6386_v17 = vld [vmem:[%s9812_s1 + $0xa8] ss:$12 sps:$4 sm:$0xff]   ;;  %v6395_v23 = vld [vmem:[%s9812_s1 + $0xf0] ss:$12 sps:$4 sm:$0xff]  }
  0x21   : > { %1195 = vmatprep.subr.bf16.mxu0 %v6369_v4  ;;  %6290 = vmatprep.subr.bf16.mxu1 %v6369_v4  ;;  %v6404_v12 = vld [vmem:[%s6852_s24 + $0x184] ss:$8 sps:$4 sm:$0xff]   ;;  %v6390_v20 = vld [vmem:[%s9812_s1 + $0xdc] ss:$12 sps:$4 sm:$0xff]   ;;  %v6393_v22 = vld [vmem:[%s9812_s1 + $0xf4] ss:$12 sps:$4 sm:$0xff]  }
  0x22   : > { %5537 = vmatprep.mubr.msk.bf16.mxu0 %vm1094_vm0, %v6861_v11  ;;  %5561 = vmatprep.mubr.msk.bf16.mxu1 %vm1094_vm0, %v6404_v12  ;;  %v6384_v16 = vld [vmem:[%s9812_s1 + $0xac] ss:$12 sps:$4 sm:$0xff]   ;;  %v6387_v18 = vld [vmem:[%s9812_s1 + $0xc4] ss:$12 sps:$4 sm:$0xff]   ;;  %v6398_v25 = vld [vmem:[%s9812_s1 + $0x108] ss:$12 sps:$4 sm:$0xff]  }
  0x23   : > { %v6389_v19 = vld [vmem:[%s9812_s1 + $0xc0] ss:$12 sps:$4 sm:$0xff]   ;;  %v6392_v21 = vld [vmem:[%s9812_s1 + $0xd8] ss:$12 sps:$4 sm:$0xff]   ;;  %v6405_v28 = vld [vmem:[%s9812_s1 + $0x8] ss:$12 sps:$4 sm:$0xff]  }
  0x24   : > { %1196 = vmatpush1.bf16.msra.mxu0 %v6371_v5  ;;  %6302 = vmatpush1.bf16.msra.mxu1 %v6371_v5  ;;  %v6396_v24 = vld [vmem:[%s9812_s1 + $0x10c] ss:$12 sps:$4 sm:$0xff]   ;;  %v6907_v26 = vld [vmem:[%s6852_s24] ss:$8 sps:$4 sm:$0xff]   ;;  %v6914_v29 = vld [vmem:[%s6852_s24 + $0x14] ss:$8 sps:$4 sm:$0xff]  }
  0x25   : > { %1197 = vmatprep.subr.bf16.mxu0 %v6372_v6  ;;  %6291 = vmatprep.subr.bf16.mxu1 %v6372_v6  ;;  %v6402_v27 = vld [vmem:[%s6852_s24 + $0x180] ss:$8 sps:$4 sm:$0xff]   ;;  %v6408_v31 = vld [vmem:[%s6852_s24 + $0x194] ss:$8 sps:$4 sm:$0xff]   ;;  %v6928_v33 = vld [vmem:[%s6852_s24 + $0x10] ss:$8 sps:$4 sm:$0xff]  }
  0x26   : > { %v6410_v32 = vld [vmem:[%s9812_s1 + $0x20] ss:$12 sps:$4 sm:$0xff]   ;;  %v6412_v34 = vld [vmem:[%s6852_s24 + $0x190] ss:$8 sps:$4 sm:$0xff]   ;;  %v6959_v43 = vld [vmem:[%s6852_s24 + $0x34] ss:$8 sps:$4 sm:$0xff]  }
  0x27   : > { %v6413_v35 = vld [vmem:[%s9812_s1 + $0x38] ss:$12 sps:$4 sm:$0xff]   ;;  %v6477_v39 = vld [vmem:[%s9814_s3 + $0x8] sm:$0xff]   ;;  %v6420_v40 = vld [vmem:[%s9812_s1 + $0x50] ss:$12 sps:$4 sm:$0xff]   ;;  %s7312_s19 = sand.u32 1, %s6681_s30  }
  0x28   : > { %1198 = vmatpush1.bf16.msra.mxu0 %v6374_v7  ;;  %6303 = vmatpush1.bf16.msra.mxu1 %v6374_v7  ;;  %v6935_v36 = vld [vmem:[%s6852_s24 + $0x24] ss:$8 sps:$4 sm:$0xff]   ;;  %v6953_v41 = vld [vmem:[%s6852_s24 + $0x20] ss:$8 sps:$4 sm:$0xff]   ;;  %v6423_v44 = vld [vmem:[%s6852_s24 + $0x1b4] ss:$8 sps:$4 sm:$0xff]  }
  0x29   : > { %1199 = vmatprep.subr.bf16.mxu0 %v6375_v8  ;;  %6292 = vmatprep.subr.bf16.mxu1 %v6375_v8  ;;  %v6471_v37 = vld [vmem:[%s9814_s3] sm:$0xff]   ;;  %v6425_v45 = vld [vmem:[%s9812_s1 + $0x68] ss:$12 sps:$4 sm:$0xff]   ;;  %v6975_v47 = vld [vmem:[%s6852_s24 + $0x30] ss:$8 sps:$4 sm:$0xff]   ;;  %s6312_s22 = smul.u32 1536, %s7312_s19 }
  0x2a   : > { %v6416_v38 = vld [vmem:[%s6852_s24 + $0x1a4] ss:$8 sps:$4 sm:$0xff]   ;;  %v6419_v42 = vld [vmem:[%s6852_s24 + $0x1a0] ss:$8 sps:$4 sm:$0xff]   ;;  %v6427_v48 = vld [vmem:[%s6852_s24 + $0x1b0] ss:$8 sps:$4 sm:$0xff]  }
  0x2b   : > { %v6428_v49 = vld [vmem:[%s9812_s1 + $0x80] ss:$12 sps:$4 sm:$0xff]   ;;  %v6435_v53 = vld [vmem:[%s9812_s1 + $0x98] ss:$12 sps:$4 sm:$0xff]   ;;  %v6440_v55 = vld [vmem:[%s9812_s1 + $0xb0] ss:$12 sps:$4 sm:$0xff]  }
  0x2c   : > { %1200 = vmatpush1.bf16.msra.mxu0 %v6377_v9  ;;  %6304 = vmatpush1.bf16.msra.mxu1 %v6377_v9  ;;  %v6986_v51 = vld [vmem:[%s6852_s24 + $0x44] ss:$8 sps:$4 sm:$0xff]   ;;  %v7009_v57 = vld [vmem:[%s6852_s24 + $0x40] ss:$8 sps:$4 sm:$0xff]   ;;  %v7014_v59 = vld [vmem:[%s6852_s24 + $0x54] ss:$8 sps:$4 sm:$0xff]  }
  0x2d   : > { %1201 = vmatprep.subr.bf16.mxu0 %v6378_v10  ;;  %6293 = vmatprep.subr.bf16.mxu1 %v6378_v10  ;;  %v6431_v52 = vld [vmem:[%s6852_s24 + $0x1c4] ss:$8 sps:$4 sm:$0xff]   ;;  %v6434_v58 = vld [vmem:[%s6852_s24 + $0x1c0] ss:$8 sps:$4 sm:$0xff]   ;;  %v6438_v60 = vld [vmem:[%s6852_s24 + $0x1d4] ss:$8 sps:$4 sm:$0xff]  }
  0x2e   : > { %v6493_v54 = vld [vmem:[%s9814_s3 + $0x20] sm:$0xff]   ;;  %v6499_v56 = vld [vmem:[%s9814_s3 + $0x28] sm:$0xff]   ;;  %v6505_v62 = vld [vmem:[%s9814_s3 + $0x30] sm:$0xff]   ;;  %s7324_s25 = scalar_lea.vmem [#allocation2], %s6312_s22  ;;  %s6692_s15 = smov [#allocation2]  }
  0x2f   : > { %v6443_v61 = vld [vmem:[%s9812_s1 + $0xc8] ss:$12 sps:$4 sm:$0xff]   ;;  %v6450_v63 = vld [vmem:[%s9812_s1 + $0xe0] ss:$12 sps:$4 sm:$0xff]   ;;  %v7034_v0 = vld [vmem:[%s6852_s24 + $0x50] ss:$8 sps:$4 sm:$0xff]  }
  0x30   : > { %1202 = vmatpush1.bf16.msra.mxu0 %v6380_v13  ;;  %6305 = vmatpush1.bf16.msra.mxu1 %v6380_v13  ;;  %v6442_v1 = vld [vmem:[%s6852_s24 + $0x1d0] ss:$8 sps:$4 sm:$0xff]   ;;  %v7038_v2 = vld [vmem:[%s6852_s24 + $0x64] ss:$8 sps:$4 sm:$0xff]   ;;  %v7061_v8 = vld [vmem:[%s6852_s24 + $0x60] ss:$8 sps:$4 sm:$0xff]  }
  0x31   : > { %1203 = vmatprep.subr.bf16.mxu0 %v6381_v14  ;;  %6294 = vmatprep.subr.bf16.mxu1 %v6381_v14  ;;  %v6446_v3 = vld [vmem:[%s6852_s24 + $0x1e4] ss:$8 sps:$4 sm:$0xff]   ;;  %v6458_v5 = vld [vmem:[%s9812_s1 + $0x110] ss:$12 sps:$4 sm:$0xff]   ;;  %v6449_v9 = vld [vmem:[%s6852_s24 + $0x1e0] ss:$8 sps:$4 sm:$0xff]  }
  0x32   : > { %v6455_v4 = vld [vmem:[%s9812_s1 + $0xf8] ss:$12 sps:$4 sm:$0xff]   ;;  %v7065_v10 = vld [vmem:[%s6852_s24 + $0x74] ss:$8 sps:$4 sm:$0xff]   ;;  %s5319_s28 = sshll.u32 %s7324_s25, 4  ;;  %s6599_s22 = sshll.u32 %s6692_s15, 4  ;;  %s9480_s28 = int_to_ptr.vmem [resolvable:$true] %s5319_s28  ;;  %s6600_s22 = int_to_ptr.vmem [resolvable:$false] %s6599_s22 }
  0x33   : > { %v6501_v6 = vld [vmem:[%s9814_s3 + $0x80] sm:$0xff]   ;;  %v6511_v7 = vld [vmem:[%s9814_s3 + $0x38] sm:$0xff]   ;;  %s6595_s27 = scalar_lea.vmem %s9480_s28, 24576  ;;  %p6602_p0 = scmp.lt.s32.totalorder %s9480_s28, %s6600_s22 }
  0x34   : > { %1204 = vmatpush1.bf16.msra.mxu0 %v6383_v15  ;;  %6306 = vmatpush1.bf16.msra.mxu1 %v6383_v15  ;;  %v6453_v12 = vld [vmem:[%s6852_s24 + $0x1f4] ss:$8 sps:$4 sm:$0xff]   ;;  %v7075_v13 = vld [vmem:[%s6852_s24 + $0x70] ss:$8 sps:$4 sm:$0xff]   ;;  %v7079_v15 = vld [vmem:[%s6852_s24 + $0x84] ss:$8 sps:$4 sm:$0xff]   ;;  %p6596_p11 = scmp.ne.s32.totalorder %s9480_s28, %s6595_s27 }
  0x35   : > { %1205 = vmatprep.subr.bf16.mxu0 %v6384_v16  ;;  %6295 = vmatprep.subr.bf16.mxu1 %v6384_v16  ;;  %v6457_v14 = vld [vmem:[%s6852_s24 + $0x1f0] ss:$8 sps:$4 sm:$0xff]   ;;  %v6517_v16 = vld [vmem:[%s9814_s3 + $0x40] sm:$0xff]  }
  0x36   : > { %p6597_p12 = pnand %p6596_p11, %p6811_p5 }
  0x38   : > { %1206 = vmatpush1.bf16.msra.mxu0 %v6386_v17  ;;  %6307 = vmatpush1.bf16.msra.mxu1 %v6386_v17  ;;  %v7090_v17 = vld [vmem:[%s6852_s24 + $0x80] ss:$8 sps:$4 sm:$0xff]   ;;  %p6598_p13 = pneg %p6597_p12 }
  0x39   : > { %1207 = vmatprep.subr.bf16.mxu0 %v6387_v18  ;;  %6296 = vmatprep.subr.bf16.mxu1 %v6387_v18  ;;  %v7093_v18 = vld [vmem:[%s6852_s24 + $0x94] ss:$8 sps:$4 sm:$0xff]  }
  0x3c   : > { %1208 = vmatpush1.bf16.msra.mxu0 %v6389_v19  ;;  %6308 = vmatpush1.bf16.msra.mxu1 %v6389_v19  ;;  %v6516_v19 = vld [vmem:[%s9814_s3 + $0x88] sm:$0xff]  }
  0x3d   : > { %1209 = vmatprep.subr.bf16.mxu0 %v6390_v20  ;;  %6297 = vmatprep.subr.bf16.mxu1 %v6390_v20  ;;  %v6518_v20 = vld [vmem:[%s9814_s3 + $0x48] sm:$0xff]  }
  0x40   : > { %1210 = vmatpush1.bf16.msra.mxu0 %v6392_v21  ;;  %6309 = vmatpush1.bf16.msra.mxu1 %v6392_v21  ;;  %v7112_v21 = vld [vmem:[%s6852_s24 + $0x90] ss:$8 sps:$4 sm:$0xff]  }
  0x41   : > { %1211 = vmatprep.subr.bf16.mxu0 %v6393_v22  ;;  %6298 = vmatprep.subr.bf16.mxu1 %v6393_v22  ;;  %v7115_v22 = vld [vmem:[%s6852_s24 + $0xa4] ss:$8 sps:$4 sm:$0xff]  }
  0x44   : > { %1212 = vmatpush1.bf16.msra.mxu0 %v6395_v23  ;;  %6310 = vmatpush1.bf16.msra.mxu1 %v6395_v23  ;;  %v6520_v23 = vld [vmem:[%s9814_s3 + $0x58] sm:$0xff]  }
  0x45   : > { %1213 = vmatprep.subr.bf16.mxu0 %v6396_v24  ;;  %6299 = vmatprep.subr.bf16.mxu1 %v6396_v24  ;;  %v6521_v24 = vld [vmem:[%s9814_s3 + $0x60] sm:$0xff]  }
  0x48   : > { %1214 = vmatpush1.bf16.msra.mxu0 %v6398_v25  ;;  %6311 = vmatpush1.bf16.msra.mxu1 %v6398_v25  ;;  %v7133_v25 = vld [vmem:[%s6852_s24 + $0xa0] ss:$8 sps:$4 sm:$0xff]  }
  0x49   : > { %1544 = vmatprep.subr.bf16.mxu1 %v9830_v30  ;;  %2320 = vmatprep.subr.bf16.mxu0 %v9830_v30 }
  0x4b   : > { %1224 = vmatmul.mubr.bf16.vlgmr.msra.gmra.mrb[0].mxu0 %v6907_v26  ;;  %1464 = vmatmul.mubr.bf16.vlgmr.msra.gmra.mrb[0].mxu1 %v6402_v27  ;;  %v6522_v27 = vld [vmem:[%s9814_s3 + $0x68] sm:$0xff]  }
  0x4c   : > { %1545 = vmatpush1.bf16.msra.mxu1 %v6405_v28  ;;  %5538 = vmatprep.mubr.msk.bf16.mxu0 %vm1094_vm0, %v6914_v29  ;;  %v6523_v28 = vld [vmem:[%s9814_s3 + $0x70] sm:$0xff]  }
  0x4d   : > { %1546 = vmatprep.subr.bf16.mxu1 %v9830_v30  ;;  %5562 = vmatprep.mubr.msk.bf16.mxu1 %vm1094_vm0, %v6408_v31  ;;  %v7156_v31 = vld [vmem:[%s6852_s24 + $0xc4] ss:$8 sps:$4 sm:$0xff]  }
  0x4e   : > { %2321 = vmatpush1.bf16.msra.mxu0 %v6471_v37  ;;  %v7183_v37 = vld [vmem:[%s6852_s24 + $0xe4] ss:$8 sps:$4 sm:$0xff]  }
  0x4f   : > { %2322 = vmatprep.subr.bf16.mxu0 %v9830_v30 }
  0x50   : > { %1547 = vmatpush1.bf16.msra.mxu1 %v6410_v32  ;;  %v6524_v32 = vld [vmem:[%s9814_s3 + $0x78] sm:$0xff]  }
  0x51   : > { %1548 = vmatprep.subr.bf16.mxu1 %v9830_v30 }
  0x52   : > { %2323 = vmatpush1.bf16.msra.mxu0 %v6477_v39  ;;  %v7192_v39 = vld [vmem:[%s6852_s24 + $0xf4] ss:$8 sps:$4 sm:$0xff]  }
  0x53   : > { %1234 = vmatmul.mubr.bf16.gmra.mrb[4].mxu0 %v6928_v33  ;;  %1474 = vmatmul.mubr.bf16.gmra.mrb[4].mxu1 %v6412_v34  ;;  %v6474_v34 = vld [vmem:[%s6852_s24 + $0xc0] ss:$8 sps:$4 sm:$0xff]  }
  0x54   : > { %1549 = vmatpush1.bf16.msra.mxu1 %v6413_v35  ;;  %5539 = vmatprep.mubr.msk.bf16.mxu0 %vm1094_vm0, %v6935_v36  ;;  %v7174_v35 = vld [vmem:[%s6852_s24 + $0xd4] ss:$8 sps:$4 sm:$0xff]  }
  0x55   : > { %5563 = vmatprep.mubr.msk.bf16.mxu1 %vm1094_vm0, %v6416_v38  ;;  %1550 = vmatprep.subr.bf16.mxu1 %v9830_v30  ;;  %v6481_v38 = vld [vmem:[%s6852_s24 + $0xe0] ss:$8 sps:$4 sm:$0xff]  }
  0x56   : > { %2324 = vmatprep.subr.bf16.mxu0 %v9830_v30 }
  0x57   : > { %2325 = vmatpush1.bf16.msra.mxu0 %v6482_v46  ;;  %v6494_v46 = vld [vmem:[%s6852_s24 + $0x124] ss:$8 sps:$4 sm:$0xff]  }
  0x58   : > { %1551 = vmatpush1.bf16.msra.mxu1 %v6420_v40  ;;  %2326 = vmatprep.subr.bf16.mxu0 %v9830_v30  ;;  %v7200_v40 = vld [vmem:[%s6852_s24 + $0xf0] ss:$8 sps:$4 sm:$0xff]  }
  0x59   : > { %1552 = vmatprep.subr.bf16.mxu1 %v9830_v30 }
  0x5b   : > { %1244 = vmatmul.mubr.bf16.gmra.mrb[8].mxu0 %v6953_v41  ;;  %1484 = vmatmul.mubr.bf16.gmra.mrb[8].mxu1 %v6419_v42  ;;  %v6526_v42 = vld [vmem:[%s9814_s3 + $0x98] sm:$0xff]  }
  0x5c   : > { %5540 = vmatprep.mubr.msk.bf16.mxu0 %vm1094_vm0, %v6959_v43  ;;  %5564 = vmatprep.mubr.msk.bf16.mxu1 %vm1094_vm0, %v6423_v44  ;;  %v7218_v44 = vld [vmem:[%s6852_s24 + $0x114] ss:$8 sps:$4 sm:$0xff]  }
  0x5d   : > { %1553 = vmatpush1.bf16.msra.mxu1 %v6425_v45  ;;  %2327 = vmatpush1.bf16.msra.mxu0 %v6488_v50  ;;  %v6492_v45 = vld [vmem:[%s6852_s24 + $0x110] ss:$8 sps:$4 sm:$0xff]  }
  0x5e   : > { %1554 = vmatprep.subr.bf16.mxu1 %v9830_v30  ;;  %2328 = vmatprep.subr.bf16.mxu0 %v9830_v30 }
  0x61   : > { %1555 = vmatpush1.bf16.msra.mxu1 %v6428_v49  ;;  %2329 = vmatpush1.bf16.msra.mxu0 %v6493_v54  ;;  %v6497_v49 = vld [vmem:[%s6852_s24 + $0x134] ss:$8 sps:$4 sm:$0xff]   ;;  %v7244_v54 = vld [vmem:[%s6852_s24 + $0x130] ss:$8 sps:$4 sm:$0xff]  }
  0x62   : > { %1556 = vmatprep.subr.bf16.mxu1 %v9830_v30  ;;  %2330 = vmatprep.subr.bf16.mxu0 %v9830_v30 }
  0x63   : > { %1254 = vmatmul.mubr.bf16.gmra.mrb[12].mxu0 %v6975_v47  ;;  %1494 = vmatmul.mubr.bf16.gmra.mrb[12].mxu1 %v6427_v48  ;;  %v6496_v48 = vld [vmem:[%s6852_s24 + $0x120] ss:$8 sps:$4 sm:$0xff]  }
  0x64   : > { %5541 = vmatprep.mubr.msk.bf16.mxu0 %vm1094_vm0, %v6986_v51  ;;  %5565 = vmatprep.mubr.msk.bf16.mxu1 %vm1094_vm0, %v6431_v52  ;;  %v597_v52 = vld [vmem:[%s9813_s2] sm:$0x7] }
  0x65   : > { %1557 = vmatpush1.bf16.msra.mxu1 %v6435_v53  ;;  %2331 = vmatpush1.bf16.msra.mxu0 %v6499_v56  ;;  %v6527_v56 = vld [vmem:[%s9814_s3 + $0xa0] sm:$0xff]  }
  0x66   : > { %1558 = vmatprep.subr.bf16.mxu1 %v9830_v30  ;;  %2332 = vmatprep.subr.bf16.mxu0 %v9830_v30 }
  0x69   : > { %1559 = vmatpush1.bf16.msra.mxu1 %v6440_v55  ;;  %2333 = vmatpush1.bf16.msra.mxu0 %v6505_v62  ;;  %v7247_v55 = vld [vmem:[%s6852_s24 + $0x144] ss:$8 sps:$4 sm:$0xff]   ;;  %v7284_v62 = vld [vmem:[%s6852_s24 + $0x174] ss:$8 sps:$4 sm:$0xff]  }
  0x6a   : > { %1560 = vmatprep.subr.bf16.mxu1 %v9830_v30  ;;  %2334 = vmatprep.subr.bf16.mxu0 %v9830_v30 }
  0x6b   : > { %1264 = vmatmul.mubr.bf16.gmra.mrb[16].mxu0 %v7009_v57  ;;  %1504 = vmatmul.mubr.bf16.gmra.mrb[16].mxu1 %v6434_v58  ;;  %v7262_v58 = vld [vmem:[%s6852_s24 + $0x154] ss:$8 sps:$4 sm:$0xff]  }
  0x6c   : > { %5542 = vmatprep.mubr.msk.bf16.mxu0 %vm1094_vm0, %v7014_v59  ;;  %5566 = vmatprep.mubr.msk.bf16.mxu1 %vm1094_vm0, %v6438_v60  ;;  %v7273_v60 = vld [vmem:[%s6852_s24 + $0x164] ss:$8 sps:$4 sm:$0xff]  }
  0x6d   : > { %1561 = vmatpush1.bf16.msra.mxu1 %v6443_v61  ;;  %2335 = vmatpush1.bf16.msra.mxu0 %v6511_v7  ;;  %v7281_v61 = vld [vmem:[%s6852_s24 + $0x160] ss:$8 sps:$4 sm:$0xff]  }
  0x6e   : > { %1562 = vmatprep.subr.bf16.mxu1 %v9830_v30  ;;  %2336 = vmatprep.subr.bf16.mxu0 %v9830_v30 }
  0x71   : > { %1563 = vmatpush1.bf16.msra.mxu1 %v6450_v63  ;;  %2337 = vmatpush1.bf16.msra.mxu0 %v6517_v16  ;;  %v6528_v63 = vld [vmem:[%s9814_s3 + $0xa8] sm:$0xff]  }
  0x72   : > { %1564 = vmatprep.subr.bf16.mxu1 %v9830_v30  ;;  %2338 = vmatprep.subr.bf16.mxu0 %v9830_v30 }
  0x73   : > { %1274 = vmatmul.mubr.bf16.gmra.mrb[20].mxu0 %v7034_v0  ;;  %1514 = vmatmul.mubr.bf16.gmra.mrb[20].mxu1 %v6442_v1  ;;  %v6529_v1 = vld [vmem:[%s9814_s3 + $0xb0] sm:$0xff]  }
  0x74   : > { %5543 = vmatprep.mubr.msk.bf16.mxu0 %vm1094_vm0, %v7038_v2  ;;  %5567 = vmatprep.mubr.msk.bf16.mxu1 %vm1094_vm0, %v6446_v3 }
  0x75   : > { %1565 = vmatpush1.bf16.msra.mxu1 %v6455_v4  ;;  %2339 = vmatpush1.bf16.msra.mxu0 %v6518_v20 }
  0x76   : > { %1566 = vmatprep.subr.bf16.mxu1 %v9830_v30  ;;  %2340 = vmatprep.subr.bf16.mxu0 %v9830_v30 }
  0x79   : > { %1567 = vmatpush1.bf16.msra.mxu1 %v6458_v5 }
  0x7a   : > { %5888 = vmatprep.subr.bf16.mxu1 %v6501_v6 }
  0x7b   : > { %1284 = vmatmul.mubr.bf16.gmra.mrb[24].mxu0 %v7061_v8  ;;  %1524 = vmatmul.mubr.bf16.gmra.mrb[24].mxu1 %v6449_v9 }
  0x7c   : > { %5544 = vmatprep.mubr.msk.bf16.mxu0 %vm1094_vm0, %v7065_v10  ;;  %5568 = vmatprep.mubr.msk.bf16.mxu1 %vm1094_vm0, %v6453_v12 }
  0x83   : > { %1294 = vmatmul.mubr.bf16.gmra.mrb[28].mxu0 %v7075_v13  ;;  %1534 = vmatmul.mubr.bf16.gmra.mrb[28].mxu1 %v6457_v14 }
  0x84   : > { %5545 = vmatprep.mubr.msk.bf16.mxu0 %vm1094_vm0, %v7079_v15  ;;  %5569 = vmatprep.mubr.msk.bf16.mxu1 %vm1094_vm0, %v6861_v11  ;;  %v6519_v11 = vld [vmem:[%s9814_s3 + $0x50] sm:$0xff]  }
  0x85   : > { %2341 = vmatpush1.bf16.msra.mxu0 %v6519_v11 }
  0x86   : > { %2342 = vmatprep.subr.bf16.mxu0 %v9830_v30 }
  0x89   : > { %2343 = vmatpush1.bf16.msra.mxu0 %v6520_v23 }
  0x8a   : > { %2344 = vmatprep.subr.bf16.mxu0 %v9830_v30 }
  0x8b   : > { %1304 = vmatmul.mubr.bf16.gmra.mrb[32].mxu0 %v7090_v17  ;;  %1577 = vmatmul.mubr.bf16.vlgmr.msra.gmra.mrb[32].mxu1 %v6907_v26  ;;  %v7136_v26 = vld [vmem:[%s6852_s24 + $0xb4] ss:$8 sps:$4 sm:$0xff]  }
  0x8c   : > { %5546 = vmatprep.mubr.msk.bf16.mxu0 %vm1094_vm0, %v7093_v18  ;;  %5570 = vmatprep.mubr.msk.bf16.mxu1 %vm1094_vm0, %v6914_v29  ;;  %v7153_v29 = vld [vmem:[%s6852_s24 + $0xb0] ss:$8 sps:$4 sm:$0xff]  }
  0x8d   : > { %5889 = vmatpush3.bf16.msra.mxu1 %v6501_v6  ;;  %2345 = vmatpush1.bf16.msra.mxu0 %v6521_v24 }
  0x8e   : > { %5890 = vmatprep.subr.bf16.mxu1 %v6516_v19  ;;  %2346 = vmatprep.subr.bf16.mxu0 %v9830_v30 }
  0x91   : > { %5891 = vmatpush3.bf16.msra.mxu1 %v6516_v19  ;;  %2347 = vmatpush1.bf16.msra.mxu0 %v6522_v27 }
  0x92   : > { %2348 = vmatprep.subr.bf16.mxu0 %v9830_v30 }
  0x93   : > { %1314 = vmatmul.mubr.bf16.gmra.mrb[36].mxu0 %v7112_v21  ;;  %1585 = vmatmul.mubr.bf16.gmra.mrb[36].mxu1 %v6928_v33  ;;  %v6525_v33 = vld [vmem:[%s9814_s3 + $0x90] sm:$0xff]  }
  0x94   : > { %5547 = vmatprep.mubr.msk.bf16.mxu0 %vm1094_vm0, %v7115_v22  ;;  %5571 = vmatprep.mubr.msk.bf16.mxu1 %vm1094_vm0, %v6935_v36  ;;  %v6478_v36 = vld [vmem:[%s6852_s24 + $0xd0] ss:$8 sps:$4 sm:$0xff]  }
  0x95   : > { %2349 = vmatpush1.bf16.msra.mxu0 %v6523_v28  ;;  %5892 = vmatprep.subr.bf16.mxu1 %v6525_v33 }
  0x96   : > { %2350 = vmatprep.subr.bf16.mxu0 %v9830_v30  ;;  %5893 = vmatpush3.bf16.msra.mxu1 %v6525_v33 }
  0x97   : > { %5894 = vmatprep.subr.bf16.mxu1 %v6526_v42 }
  0x99   : > { %2351 = vmatpush1.bf16.msra.mxu0 %v6524_v32 }
  0x9a   : > { %3553 = vmatprep.subr.bf16.mxu0 %v9830_v30  ;;  %5895 = vmatpush3.bf16.msra.mxu1 %v6526_v42 }
  0x9b   : > { %1324 = vmatmul.mubr.bf16.gmra.mrb[40].mxu0 %v7133_v25  ;;  %1593 = vmatmul.mubr.bf16.gmra.mrb[40].mxu1 %v6953_v41  ;;  %v7203_v41 = vld [vmem:[%s6852_s24 + $0x104] ss:$8 sps:$4 sm:$0xff]  }
  0x9c   : > { %5548 = vmatprep.mubr.msk.bf16.mxu0 %vm1094_vm0, %v7136_v26  ;;  %5572 = vmatprep.mubr.msk.bf16.mxu1 %vm1094_vm0, %v6959_v43  ;;  %v7215_v43 = vld [vmem:[%s6852_s24 + $0x100] ss:$8 sps:$4 sm:$0xff]  }
  0x9d   : > { %5896 = vmatprep.subr.bf16.mxu1 %v6527_v56 }
  0x9e   : > { %5897 = vmatpush3.bf16.msra.mxu1 %v6527_v56 }
  0x9f   : > { %5898 = vmatprep.subr.bf16.mxu1 %v6528_v63 }
  0xa2   : > { %5899 = vmatpush3.bf16.msra.mxu1 %v6528_v63 }
  0xa3   : > { %1334 = vmatmul.mubr.bf16.gmra.mrb[44].mxu0 %v7153_v29  ;;  %1601 = vmatmul.mubr.bf16.gmra.mrb[44].mxu1 %v6975_v47  ;;  %v599_v47 = vlaneseq }
  0xa4   : > { %5549 = vmatprep.mubr.msk.bf16.mxu0 %vm1094_vm0, %v7156_v31  ;;  %5573 = vmatprep.mubr.msk.bf16.mxu1 %vm1094_vm0, %v6986_v51 }
  0xa5   : > { %v600_v50 = vshrl.u32 %v599_v47, 7  ;;  %5900 = vmatprep.subr.bf16.mxu1 %v6529_v1 }
  0xa6   : > { %5901 = vmatpush3.bf16.msra.mxu1 %v6529_v1 }
  0xa7   : > { %v609_v51 = vsub.s32 2, %v600_v50  ;;  %v601_v3 = vsub.s32 0, %v600_v50  ;;  %v605_v4 = vsub.s32 1, %v600_v50 }
  0xa9   : > { %v7241_v53 = vrot.slane %v597_v52, %v609_v51  ;;  %v7315_v5 = vrot.slane %v597_v52, %v601_v3  ;;  %v7317_v6 = vrot.slane %v597_v52, %v605_v4 }
  0xab   : > { %1344 = vmatmul.mubr.bf16.gmra.mrb[48].mxu0 %v6474_v34  ;;  %1609 = vmatmul.mubr.bf16.gmra.mrb[48].mxu1 %v7009_v57  ;;  %v7259_v57 = vld [vmem:[%s6852_s24 + $0x140] ss:$8 sps:$4 sm:$0xff]  }
  0xac   : > { %5550 = vmatprep.mubr.msk.bf16.mxu0 %vm1094_vm0, %v7174_v35  ;;  %5574 = vmatprep.mubr.msk.bf16.mxu1 %vm1094_vm0, %v7014_v59  ;;  %v7270_v59 = vld [vmem:[%s6852_s24 + $0x150] ss:$8 sps:$4 sm:$0xff]  }
  0xb3   : > { %1354 = vmatmul.mubr.bf16.gmra.mrb[52].mxu0 %v6478_v36  ;;  %1617 = vmatmul.mubr.bf16.gmra.mrb[52].mxu1 %v7034_v0  ;;  %v7295_v0 = vld [vmem:[%s6852_s24 + $0x170] ss:$8 sps:$4 sm:$0xff]  }
  0xb4   : > { %5551 = vmatprep.mubr.msk.bf16.mxu0 %vm1094_vm0, %v7183_v37  ;;  %5575 = vmatprep.mubr.msk.bf16.mxu1 %vm1094_vm0, %v7038_v2  ;;  %v6530_v2 = vld [vmem:[%s9814_s3 + $0xb8] sm:$0xff]  }
  0xb5   : > { %5902 = vmatprep.subr.bf16.mxu1 %v6530_v2 }
  0xb6   : > { %5903 = vmatpush3.bf16.msra.mxu1 %v6530_v2 }
  0xbb   : > { %1364 = vmatmul.mubr.bf16.gmra.mrb[56].mxu0 %v6481_v38  ;;  %1625 = vmatmul.mubr.bf16.gmra.mrb[56].mxu1 %v7061_v8 }
  0xbc   : > { %5552 = vmatprep.mubr.msk.bf16.mxu0 %vm1094_vm0, %v7192_v39  ;;  %5576 = vmatprep.mubr.msk.bf16.mxu1 %vm1094_vm0, %v7065_v10 }
  0xc3   : > { %1374 = vmatmul.mubr.bf16.gmra.mrb[60].mxu0 %v7200_v40  ;;  %1633 = vmatmul.mubr.bf16.gmra.mrb[60].mxu1 %v7075_v13 }
  0xc4   : > { %5553 = vmatprep.mubr.msk.bf16.mxu0 %vm1094_vm0, %v7203_v41  ;;  %5577 = vmatprep.mubr.msk.bf16.mxu1 %vm1094_vm0, %v7079_v15 }
  0xcb   : > { %1384 = vmatmul.mubr.bf16.gmra.mrb[64].mxu0 %v7215_v43  ;;  %1641 = vmatmul.mubr.bf16.gmra.mrb[64].mxu1 %v7090_v17 }
  0xcc   : > { %5554 = vmatprep.mubr.msk.bf16.mxu0 %vm1094_vm0, %v7218_v44  ;;  %5578 = vmatprep.mubr.msk.bf16.mxu1 %vm1094_vm0, %v7093_v18 }
  0xd3   : > { %1394 = vmatmul.mubr.bf16.gmra.mrb[68].mxu0 %v6492_v45  ;;  %1649 = vmatmul.mubr.bf16.gmra.mrb[68].mxu1 %v7112_v21 }
  0xd4   : > { %5555 = vmatprep.mubr.msk.bf16.mxu0 %vm1094_vm0, %v6494_v46  ;;  %5579 = vmatprep.mubr.msk.bf16.mxu1 %vm1094_vm0, %v7115_v22 }
  0xdb   : > { %1404 = vmatmul.mubr.bf16.gmra.mrb[72].mxu0 %v6496_v48  ;;  %1657 = vmatmul.mubr.bf16.gmra.mrb[72].mxu1 %v7133_v25 }
  0xdc   : > { %5556 = vmatprep.mubr.msk.bf16.mxu0 %vm1094_vm0, %v6497_v49  ;;  %5580 = vmatprep.mubr.msk.bf16.mxu1 %vm1094_vm0, %v7136_v26 }
  0xe3   : > { %1414 = vmatmul.mubr.bf16.gmra.mrb[76].mxu0 %v7244_v54  ;;  %1665 = vmatmul.mubr.bf16.gmra.mrb[76].mxu1 %v7153_v29 }
  0xe4   : > { %5557 = vmatprep.mubr.msk.bf16.mxu0 %vm1094_vm0, %v7247_v55  ;;  %5581 = vmatprep.mubr.msk.bf16.mxu1 %vm1094_vm0, %v7156_v31 }
  0xeb   : > { %1424 = vmatmul.mubr.bf16.gmra.mrb[80].mxu0 %v7259_v57  ;;  %1673 = vmatmul.mubr.bf16.gmra.mrb[80].mxu1 %v6474_v34 }
  0xec   : > { %5558 = vmatprep.mubr.msk.bf16.mxu0 %vm1094_vm0, %v7262_v58  ;;  %5582 = vmatprep.mubr.msk.bf16.mxu1 %vm1094_vm0, %v7174_v35 }
  0xf3   : > { %1434 = vmatmul.mubr.bf16.gmra.mrb[84].mxu0 %v7270_v59  ;;  %1681 = vmatmul.mubr.bf16.gmra.mrb[84].mxu1 %v6478_v36 }
  0xf4   : > { %5559 = vmatprep.mubr.msk.bf16.mxu0 %vm1094_vm0, %v7273_v60  ;;  %5583 = vmatprep.mubr.msk.bf16.mxu1 %vm1094_vm0, %v7183_v37 }
  0xfb   : > { %1444 = vmatmul.mubr.bf16.gmra.mrb[88].mxu0 %v7281_v61  ;;  %1689 = vmatmul.mubr.bf16.gmra.mrb[88].mxu1 %v6481_v38 }
  0xfc   : > { %5560 = vmatprep.mubr.msk.bf16.mxu0 %vm1094_vm0, %v7284_v62  ;;  %5584 = vmatprep.mubr.msk.bf16.mxu1 %vm1094_vm0, %v7192_v39 }
 0x103   : > { %1454 = vmatmul.mubr.bf16.gmra.mrb[92].mxu0 %v7295_v0  ;;  %1697 = vmatmul.mubr.bf16.gmra.mrb[92].mxu1 %v7200_v40 }
 0x104   : > { %5585 = vmatprep.mubr.msk.bf16.mxu1 %vm1094_vm0, %v7203_v41 }
 0x10b   : > { %1705 = vmatmul.mubr.bf16.gmra.mrb[96].mxu1 %v7215_v43 }
 0x10c   : > { %5586 = vmatprep.mubr.msk.bf16.mxu1 %vm1094_vm0, %v7218_v44 }
 0x113   : > { %1713 = vmatmul.mubr.bf16.gmra.mrb[100].mxu1 %v6492_v45 }
 0x114   : > { %5587 = vmatprep.mubr.msk.bf16.mxu1 %vm1094_vm0, %v6494_v46 }
 0x11b   : > { %1721 = vmatmul.mubr.bf16.gmra.mrb[104].mxu1 %v6496_v48 }
 0x11c   : > { %5588 = vmatprep.mubr.msk.bf16.mxu1 %vm1094_vm0, %v6497_v49 }
 0x11e   : > { %v1225_v7 = vpop.f32.mrb[0].mxu0  ;;  %v1465_v8 = vpop.f32.mrb[0].mxu1 }
 0x11f   : > { %v1226_v9 = vadd.f32 %v1225_v7, %v7315_v5  ;;  %v1466_v10 = vadd.f32 %v1465_v8, %v7315_v5  ;;  %v1227_v12 = vpop.f32.mrb[1].mxu0  ;;  %v1467_v13 = vpop.f32.mrb[1].mxu1 }
 0x120   : > { %v1228_v14 = vadd.f32 %v1227_v12, %v7317_v6  ;;  %v1468_v15 = vadd.f32 %v1467_v13, %v7317_v6  ;;  %v1229_v16 = vpop.f32.mrb[2].mxu0  ;;  %v1469_v17 = vpop.f32.mrb[2].mxu1 }
 0x121   : > { %1833 = vst [vmem:[%s7324_s25] sm:$0xff] %v1226_v9  ;;  %1977 = vst [vmem:[%s7324_s25 + $0x480] sm:$0xff] %v1466_v10  ;;  %v1230_v18 = vadd.f32 %v1229_v16, %v7315_v5  ;;  %v1470_v19 = vadd.f32 %v1469_v17, %v7315_v5  ;;  %v1231_v20 = vpop.f32.mrb[3].mxu0  ;;  %v1471_v11 = vpop.f32.mrb[3].mxu1 }
 0x122   : > { %1834 = vst [vmem:[%s7324_s25 + $0x8] sm:$0xff] %v1228_v14  ;;  %1978 = vst [vmem:[%s7324_s25 + $0x488] sm:$0xff] %v1468_v15  ;;  %v1232_v21 = vadd.f32 %v1231_v20, %v7317_v6  ;;  %v1472_v22 = vadd.f32 %v1471_v11, %v7317_v6 }
 0x123   : > { %1836 = vst [vmem:[%s7324_s25 + $0x18] sm:$0xff] %v1230_v18  ;;  %v7335_v23 = vpack.c.bf16 %v1230_v18, %v1226_v9  ;;  %1980 = vst [vmem:[%s7324_s25 + $0x498] sm:$0xff] %v1470_v19  ;;  %1729 = vmatmul.mubr.bf16.gmra.mrb[108].mxu1 %v7244_v54  ;;  %v7339_v24 = vpack.c.bf16 %v1470_v19, %v1466_v10 }
 0x124   : > { %1837 = vst [vmem:[%s7324_s25 + $0x20] sm:$0xff] %v1232_v21  ;;  %1981 = vst [vmem:[%s7324_s25 + $0x4a0] sm:$0xff] %v1472_v22  ;;  %v7343_v25 = vpack.c.bf16 %v1232_v21, %v1228_v14  ;;  %5589 = vmatprep.mubr.msk.bf16.mxu1 %vm1094_vm0, %v7247_v55  ;;  %v7347_v26 = vpack.c.bf16 %v1472_v22, %v1468_v15 }
 0x126   : > { %v1235_v27 = vpop.f32.mrb[4].mxu0  ;;  %v1475_v28 = vpop.f32.mrb[4].mxu1  ;;  %2352 = vmatprep.mubr.bf16.mxu0 %v7343_v25 }
 0x127   : > { %v1236_v29 = vadd.f32 %v1235_v27, %v7315_v5  ;;  %v1476_v31 = vadd.f32 %v1475_v28, %v7315_v5  ;;  %v1237_v32 = vpop.f32.mrb[5].mxu0  ;;  %v1477_v33 = vpop.f32.mrb[5].mxu1  ;;  %2353 = vmatmul.mubr.bf16.vlgmr.msra.gmra.mrb[96].mxu0 %v7335_v23 }
 0x128   : > { %v1238_v34 = vadd.f32 %v1237_v32, %v7317_v6  ;;  %v1478_v35 = vadd.f32 %v1477_v33, %v7317_v6  ;;  %v1239_v36 = vpop.f32.mrb[6].mxu0  ;;  %v1479_v37 = vpop.f32.mrb[6].mxu1 }
 0x129   : > { %1839 = vst [vmem:[%s7324_s25 + $0x30] sm:$0xff] %v1236_v29  ;;  %1983 = vst [vmem:[%s7324_s25 + $0x4b0] sm:$0xff] %v1476_v31  ;;  %v1240_v38 = vadd.f32 %v1239_v36, %v7315_v5  ;;  %v1480_v39 = vadd.f32 %v1479_v37, %v7315_v5  ;;  %v1241_v40 = vpop.f32.mrb[7].mxu0  ;;  %v1481_v41 = vpop.f32.mrb[7].mxu1 }
 0x12a   : > { %1840 = vst [vmem:[%s7324_s25 + $0x38] sm:$0xff] %v1238_v34  ;;  %1984 = vst [vmem:[%s7324_s25 + $0x4b8] sm:$0xff] %v1478_v35  ;;  %v1242_v42 = vadd.f32 %v1241_v40, %v7317_v6  ;;  %v1482_v43 = vadd.f32 %v1481_v41, %v7317_v6 }
 0x12b   : > { %1842 = vst [vmem:[%s7324_s25 + $0x48] sm:$0xff] %v1240_v38  ;;  %1986 = vst [vmem:[%s7324_s25 + $0x4c8] sm:$0xff] %v1480_v39  ;;  %1737 = vmatmul.mubr.bf16.gmra.mrb[112].mxu1 %v7259_v57  ;;  %v7366_v44 = vpack.c.bf16 %v1240_v38, %v1236_v29  ;;  %v7368_v45 = vpack.c.bf16 %v1480_v39, %v1476_v31 }
 0x12c   : > { %1843 = vst [vmem:[%s7324_s25 + $0x50] sm:$0xff] %v1242_v42  ;;  %1987 = vst [vmem:[%s7324_s25 + $0x4d0] sm:$0xff] %v1482_v43  ;;  %v7372_v46 = vpack.c.bf16 %v1242_v42, %v1238_v34  ;;  %5590 = vmatprep.mubr.msk.bf16.mxu1 %vm1094_vm0, %v7262_v58  ;;  %v7376_v47 = vpack.c.bf16 %v1482_v43, %v1478_v35 }
 0x12d   : > { %9977 = vst [vmem:[#allocation12_spill] sm:$0xff] %v7368_v45 }
 0x12e   : > { %9978 = vst [vmem:[#allocation13_spill] sm:$0xff] %v7376_v47  ;;  %v1245_v48 = vpop.f32.mrb[8].mxu0  ;;  %v1485_v49 = vpop.f32.mrb[8].mxu1  ;;  %2360 = vmatprep.mubr.bf16.mxu0 %v7372_v46 }
 0x12f   : > { %v1246_v50 = vadd.f32 %v1245_v48, %v7315_v5  ;;  %v1486_v51 = vadd.f32 %v1485_v49, %v7315_v5  ;;  %v1247_v52 = vpop.f32.mrb[9].mxu0  ;;  %v1487_v54 = vpop.f32.mrb[9].mxu1  ;;  %2361 = vmatmul.mubr.bf16.gmra.mrb[100].mxu0 %v7366_v44 }
 0x130   : > { %v1248_v55 = vadd.f32 %v1247_v52, %v7317_v6  ;;  %v1488_v56 = vadd.f32 %v1487_v54, %v7317_v6  ;;  %v1249_v57 = vpop.f32.mrb[10].mxu0  ;;  %v1489_v58 = vpop.f32.mrb[10].mxu1 }
 0x131   : > { %1845 = vst [vmem:[%s7324_s25 + $0x60] sm:$0xff] %v1246_v50  ;;  %1989 = vst [vmem:[%s7324_s25 + $0x4e0] sm:$0xff] %v1486_v51  ;;  %v1250_v63 = vadd.f32 %v1249_v57, %v7315_v5  ;;  %v1490_v1 = vadd.f32 %v1489_v58, %v7315_v5  ;;  %v1251_v2 = vpop.f32.mrb[11].mxu0  ;;  %v1491_v3 = vpop.f32.mrb[11].mxu1  ;;  %v6579_v57 = vld [vmem:[%s6852_s24 + $0x184] ss:$8 sps:$4 sm:$0xff]  }
 0x132   : > { %1846 = vst [vmem:[%s7324_s25 + $0x68] sm:$0xff] %v1248_v55  ;;  %1990 = vst [vmem:[%s7324_s25 + $0x4e8] sm:$0xff] %v1488_v56  ;;  %v1252_v4 = vadd.f32 %v1251_v2, %v7317_v6  ;;  %v1492_v7 = vadd.f32 %v1491_v3, %v7317_v6  ;;  %v6531_v58 = vld [vmem:[%s9818_s7] sm:$0xff]  }
 0x133   : > { %1848 = vst [vmem:[%s7324_s25 + $0x78] sm:$0xff] %v1250_v63  ;;  %1992 = vst [vmem:[%s7324_s25 + $0x4f8] sm:$0xff] %v1490_v1  ;;  %1745 = vmatmul.mubr.bf16.gmra.mrb[116].mxu1 %v7270_v59  ;;  %v7395_v8 = vpack.c.bf16 %v1250_v63, %v1246_v50  ;;  %v7397_v9 = vpack.c.bf16 %v1490_v1, %v1486_v51  ;;  %3554 = vmatpush1.bf16.msra.mxu0 %v6531_v58 }
 0x134   : > { %1849 = vst [vmem:[%s7324_s25 + $0x80] sm:$0xff] %v1252_v4  ;;  %1993 = vst [vmem:[%s7324_s25 + $0x500] sm:$0xff] %v1492_v7  ;;  %v7401_v10 = vpack.c.bf16 %v1252_v4, %v1248_v55  ;;  %5591 = vmatprep.mubr.msk.bf16.mxu1 %vm1094_vm0, %v7273_v60  ;;  %v7405_v12 = vpack.c.bf16 %v1492_v7, %v1488_v56  ;;  %3555 = vmatprep.subr.bf16.mxu0 %v9830_v30 }
 0x135   : > { %9979 = vst [vmem:[#allocation14_spill] sm:$0xff] %v7397_v9 }
 0x136   : > { %9980 = vst [vmem:[#allocation15_spill] sm:$0xff] %v7405_v12  ;;  %v1255_v13 = vpop.f32.mrb[12].mxu0  ;;  %v1495_v14 = vpop.f32.mrb[12].mxu1  ;;  %2368 = vmatprep.mubr.bf16.mxu0 %v7401_v10 }
 0x137   : > { %v1256_v59 = vadd.f32 %v1255_v13, %v7315_v5  ;;  %v1496_v15 = vadd.f32 %v1495_v14, %v7315_v5  ;;  %v1257_v16 = vpop.f32.mrb[13].mxu0  ;;  %v1497_v17 = vpop.f32.mrb[13].mxu1  ;;  %2369 = vmatmul.mubr.bf16.gmra.mrb[104].mxu0 %v7395_v8 }
 0x138   : > { %v1258_v60 = vadd.f32 %v1257_v16, %v7317_v6  ;;  %v1498_v18 = vadd.f32 %v1497_v17, %v7317_v6  ;;  %v1259_v19 = vpop.f32.mrb[14].mxu0  ;;  %v1499_v20 = vpop.f32.mrb[14].mxu1 }
 0x139   : > { %1851 = vst [vmem:[%s7324_s25 + $0x90] sm:$0xff] %v1256_v59  ;;  %1995 = vst [vmem:[%s7324_s25 + $0x510] sm:$0xff] %v1496_v15  ;;  %v1260_v11 = vadd.f32 %v1259_v19, %v7315_v5  ;;  %v1500_v21 = vadd.f32 %v1499_v20, %v7315_v5  ;;  %v1261_v22 = vpop.f32.mrb[15].mxu0  ;;  %v1501_v27 = vpop.f32.mrb[15].mxu1 }
 0x13a   : > { %1852 = vst [vmem:[%s7324_s25 + $0x98] sm:$0xff] %v1258_v60  ;;  %1996 = vst [vmem:[%s7324_s25 + $0x518] sm:$0xff] %v1498_v18  ;;  %v1262_v28 = vadd.f32 %v1261_v22, %v7317_v6  ;;  %v1502_v29 = vadd.f32 %v1501_v27, %v7317_v6 }
 0x13b   : > { %1854 = vst [vmem:[%s7324_s25 + $0xa8] sm:$0xff] %v1260_v11  ;;  %1998 = vst [vmem:[%s7324_s25 + $0x528] sm:$0xff] %v1500_v21  ;;  %1753 = vmatmul.mubr.bf16.gmra.mrb[120].mxu1 %v7281_v61  ;;  %v7424_v31 = vpack.c.bf16 %v1260_v11, %v1256_v59  ;;  %v7426_v32 = vpack.c.bf16 %v1500_v21, %v1496_v15  ;;  %v6580_v11 = vld [vmem:[%s6852_s24 + $0x180] ss:$8 sps:$4 sm:$0xff]  }
 0x13c   : > { %1855 = vst [vmem:[%s7324_s25 + $0xb0] sm:$0xff] %v1262_v28  ;;  %1999 = vst [vmem:[%s7324_s25 + $0x530] sm:$0xff] %v1502_v29  ;;  %v7430_v33 = vpack.c.bf16 %v1262_v28, %v1258_v60  ;;  %5592 = vmatprep.mubr.msk.bf16.mxu1 %vm1094_vm0, %v7284_v62  ;;  %v7434_v34 = vpack.c.bf16 %v1502_v29, %v1498_v18  ;;  %v6581_v28 = vld [vmem:[%s6852_s24 + $0x194] ss:$8 sps:$4 sm:$0xff]  }
 0x13d   : > { %9981 = vst [vmem:[#allocation16_spill] sm:$0xff] %v7426_v32 }
 0x13e   : > { %9982 = vst [vmem:[#allocation17_spill] sm:$0xff] %v7434_v34  ;;  %v1265_v35 = vpop.f32.mrb[16].mxu0  ;;  %v1505_v36 = vpop.f32.mrb[16].mxu1  ;;  %2376 = vmatprep.mubr.bf16.mxu0 %v7430_v33 }
 0x13f   : > { %v1266_v61 = vadd.f32 %v1265_v35, %v7315_v5  ;;  %v1506_v37 = vadd.f32 %v1505_v36, %v7315_v5  ;;  %v1267_v38 = vpop.f32.mrb[17].mxu0  ;;  %v1507_v39 = vpop.f32.mrb[17].mxu1  ;;  %2377 = vmatmul.mubr.bf16.gmra.mrb[108].mxu0 %v7424_v31 }
 0x140   : > { %v1268_v62 = vadd.f32 %v1267_v38, %v7317_v6  ;;  %v1508_v40 = vadd.f32 %v1507_v39, %v7317_v6  ;;  %v1269_v41 = vpop.f32.mrb[18].mxu0  ;;  %v1509_v42 = vpop.f32.mrb[18].mxu1 }
 0x141   : > { %1857 = vst [vmem:[%s7324_s25 + $0xc0] sm:$0xff] %v1266_v61  ;;  %2001 = vst [vmem:[%s7324_s25 + $0x540] sm:$0xff] %v1506_v37  ;;  %v1270_v43 = vadd.f32 %v1269_v41, %v7315_v5  ;;  %v1510_v48 = vadd.f32 %v1509_v42, %v7315_v5  ;;  %v1271_v49 = vpop.f32.mrb[19].mxu0  ;;  %v1511_v50 = vpop.f32.mrb[19].mxu1 }
 0x142   : > { %1858 = vst [vmem:[%s7324_s25 + $0xc8] sm:$0xff] %v1268_v62  ;;  %2002 = vst [vmem:[%s7324_s25 + $0x548] sm:$0xff] %v1508_v40  ;;  %v1272_v51 = vadd.f32 %v1271_v49, %v7317_v6  ;;  %v1512_v52 = vadd.f32 %v1511_v50, %v7317_v6 }
 0x143   : > { %1860 = vst [vmem:[%s7324_s25 + $0xd8] sm:$0xff] %v1270_v43  ;;  %2004 = vst [vmem:[%s7324_s25 + $0x558] sm:$0xff] %v1510_v48  ;;  %1761 = vmatmul.mubr.bf16.gmra.mrb[124].mxu1 %v7295_v0  ;;  %v7453_v54 = vpack.c.bf16 %v1270_v43, %v1266_v61  ;;  %v7455_v55 = vpack.c.bf16 %v1510_v48, %v1506_v37 }
 0x144   : > { %1861 = vst [vmem:[%s7324_s25 + $0xe0] sm:$0xff] %v1272_v51  ;;  %2005 = vst [vmem:[%s7324_s25 + $0x560] sm:$0xff] %v1512_v52  ;;  %v7459_v56 = vpack.c.bf16 %v1272_v51, %v1268_v62  ;;  %5593 = vmatprep.mubr.msk.bf16.mxu1 %vm1094_vm0, %v6579_v57  ;;  %v7466_v63 = vpack.c.bf16 %v1512_v52, %v1508_v40  ;;  %v6582_v57 = vld [vmem:[%s6852_s24 + $0x190] ss:$8 sps:$4 sm:$0xff]  }
 0x145   : > { %9983 = vst [vmem:[#allocation18_spill] sm:$0xff] %v7455_v55 }
 0x146   : > { %9984 = vst [vmem:[#allocation19_spill] sm:$0xff] %v7466_v63  ;;  %v1275_v0 = vpop.f32.mrb[20].mxu0  ;;  %v1515_v1 = vpop.f32.mrb[20].mxu1  ;;  %2384 = vmatprep.mubr.bf16.mxu0 %v7459_v56 }
 0x147   : > { %v1276_v2 = vadd.f32 %v1275_v0, %v7315_v5  ;;  %v1516_v3 = vadd.f32 %v1515_v1, %v7315_v5  ;;  %v1277_v4 = vpop.f32.mrb[21].mxu0  ;;  %v1517_v7 = vpop.f32.mrb[21].mxu1  ;;  %2385 = vmatmul.mubr.bf16.gmra.mrb[112].mxu0 %v7453_v54 }
 0x148   : > { %v1278_v13 = vadd.f32 %v1277_v4, %v7317_v6  ;;  %v1518_v14 = vadd.f32 %v1517_v7, %v7317_v6  ;;  %v1279_v59 = vpop.f32.mrb[22].mxu0  ;;  %v1519_v15 = vpop.f32.mrb[22].mxu1 }
 0x149   : > { %1863 = vst [vmem:[%s7324_s25 + $0xf0] sm:$0xff] %v1276_v2  ;;  %2007 = vst [vmem:[%s7324_s25 + $0x570] sm:$0xff] %v1516_v3  ;;  %v1280_v16 = vadd.f32 %v1279_v59, %v7315_v5  ;;  %v1520_v17 = vadd.f32 %v1519_v15, %v7315_v5  ;;  %v1281_v60 = vpop.f32.mrb[23].mxu0  ;;  %v1521_v18 = vpop.f32.mrb[23].mxu1 }
 0x14a   : > { %1864 = vst [vmem:[%s7324_s25 + $0xf8] sm:$0xff] %v1278_v13  ;;  %2008 = vst [vmem:[%s7324_s25 + $0x578] sm:$0xff] %v1518_v14  ;;  %v1282_v19 = vadd.f32 %v1281_v60, %v7317_v6  ;;  %v1522_v20 = vadd.f32 %v1521_v18, %v7317_v6 }
 0x14b   : > { %1866 = vst [vmem:[%s7324_s25 + $0x108] sm:$0xff] %v1280_v16  ;;  %2010 = vst [vmem:[%s7324_s25 + $0x588] sm:$0xff] %v1520_v17  ;;  %1769 = vmatmul.mubr.bf16.gmra.mrb[128].mxu1 %v6580_v11  ;;  %v7486_v21 = vpack.c.bf16 %v1280_v16, %v1276_v2  ;;  %v7488_v22 = vpack.c.bf16 %v1520_v17, %v1516_v3  ;;  %v6583_v2 = vld [vmem:[%s6852_s24 + $0x1a4] ss:$8 sps:$4 sm:$0xff]  }
 0x14c   : > { %1867 = vst [vmem:[%s7324_s25 + $0x110] sm:$0xff] %v1282_v19  ;;  %2011 = vst [vmem:[%s7324_s25 + $0x590] sm:$0xff] %v1522_v20  ;;  %v7492_v27 = vpack.c.bf16 %v1282_v19, %v1278_v13  ;;  %5594 = vmatprep.mubr.msk.bf16.mxu1 %vm1094_vm0, %v6581_v28  ;;  %v7496_v29 = vpack.c.bf16 %v1522_v20, %v1518_v14  ;;  %v6532_v3 = vld [vmem:[%s9818_s7 + $0x8] sm:$0xff]  }
 0x14d   : > { %9985 = vst [vmem:[#allocation20_spill] sm:$0xff] %v7488_v22  ;;  %3556 = vmatpush1.bf16.msra.mxu0 %v6532_v3 }
 0x14e   : > { %9986 = vst [vmem:[#allocation21_spill] sm:$0xff] %v7496_v29  ;;  %v1285_v35 = vpop.f32.mrb[24].mxu0  ;;  %v1525_v36 = vpop.f32.mrb[24].mxu1  ;;  %2392 = vmatprep.mubr.bf16.mxu0 %v7492_v27  ;;  %3557 = vmatprep.subr.bf16.mxu0 %v9830_v30 }
 0x14f   : > { %v1286_v61 = vadd.f32 %v1285_v35, %v7315_v5  ;;  %v1526_v37 = vadd.f32 %v1525_v36, %v7315_v5  ;;  %v1287_v38 = vpop.f32.mrb[25].mxu0  ;;  %v1527_v39 = vpop.f32.mrb[25].mxu1  ;;  %2393 = vmatmul.mubr.bf16.gmra.mrb[116].mxu0 %v7486_v21 }
 0x150   : > { %v1288_v62 = vadd.f32 %v1287_v38, %v7317_v6  ;;  %v1528_v40 = vadd.f32 %v1527_v39, %v7317_v6  ;;  %v1289_v41 = vpop.f32.mrb[26].mxu0  ;;  %v1529_v42 = vpop.f32.mrb[26].mxu1 }
 0x151   : > { %1869 = vst [vmem:[%s7324_s25 + $0x120] sm:$0xff] %v1286_v61  ;;  %2013 = vst [vmem:[%s7324_s25 + $0x5a0] sm:$0xff] %v1526_v37  ;;  %v1290_v43 = vadd.f32 %v1289_v41, %v7315_v5  ;;  %v1530_v48 = vadd.f32 %v1529_v42, %v7315_v5  ;;  %v1291_v49 = vpop.f32.mrb[27].mxu0  ;;  %v1531_v50 = vpop.f32.mrb[27].mxu1 }
 0x152   : > { %1870 = vst [vmem:[%s7324_s25 + $0x128] sm:$0xff] %v1288_v62  ;;  %2014 = vst [vmem:[%s7324_s25 + $0x5a8] sm:$0xff] %v1528_v40  ;;  %v1292_v51 = vadd.f32 %v1291_v49, %v7317_v6  ;;  %v1532_v52 = vadd.f32 %v1531_v50, %v7317_v6 }
 0x153   : > { %1872 = vst [vmem:[%s7324_s25 + $0x138] sm:$0xff] %v1290_v43  ;;  %2016 = vst [vmem:[%s7324_s25 + $0x5b8] sm:$0xff] %v1530_v48  ;;  %1777 = vmatmul.mubr.bf16.gmra.mrb[132].mxu1 %v6582_v57  ;;  %v7515_v58 = vpack.c.bf16 %v1290_v43, %v1286_v61  ;;  %v7517_v0 = vpack.c.bf16 %v1530_v48, %v1526_v37  ;;  %v6584_v37 = vld [vmem:[%s6852_s24 + $0x1a0] ss:$8 sps:$4 sm:$0xff]  }
 0x154   : > { %1873 = vst [vmem:[%s7324_s25 + $0x140] sm:$0xff] %v1292_v51  ;;  %2017 = vst [vmem:[%s7324_s25 + $0x5c0] sm:$0xff] %v1532_v52  ;;  %v7521_v1 = vpack.c.bf16 %v1292_v51, %v1288_v62  ;;  %5595 = vmatprep.mubr.msk.bf16.mxu1 %vm1094_vm0, %v6583_v2  ;;  %v7528_v4 = vpack.c.bf16 %v1532_v52, %v1528_v40  ;;  %v6585_v40 = vld [vmem:[%s6852_s24 + $0x1b4] ss:$8 sps:$4 sm:$0xff]  }
 0x155   : > { %9987 = vst [vmem:[#allocation22_spill] sm:$0xff] %v7517_v0 }
 0x156   : > { %9988 = vst [vmem:[#allocation23_spill] sm:$0xff] %v7528_v4  ;;  %v1295_v7 = vpop.f32.mrb[28].mxu0  ;;  %v1535_v13 = vpop.f32.mrb[28].mxu1  ;;  %2400 = vmatprep.mubr.bf16.mxu0 %v7521_v1 }
 0x157   : > { %v1296_v14 = vadd.f32 %v1295_v7, %v7315_v5  ;;  %v1536_v59 = vadd.f32 %v1535_v13, %v7315_v5  ;;  %v1297_v15 = vpop.f32.mrb[29].mxu0  ;;  %v1537_v16 = vpop.f32.mrb[29].mxu1  ;;  %2401 = vmatmul.mubr.bf16.gmra.mrb[120].mxu0 %v7515_v58 }
 0x158   : > { %v1298_v17 = vadd.f32 %v1297_v15, %v7317_v6  ;;  %v1538_v60 = vadd.f32 %v1537_v16, %v7317_v6  ;;  %v1299_v18 = vpop.f32.mrb[30].mxu0  ;;  %v1539_v19 = vpop.f32.mrb[30].mxu1  ;;  %v6586_v15 = vld [vmem:[%s6852_s24 + $0x1b0] ss:$8 sps:$4 sm:$0xff]  }
 0x159   : > { %1875 = vst [vmem:[%s7324_s25 + $0x150] sm:$0xff] %v1296_v14  ;;  %2019 = vst [vmem:[%s7324_s25 + $0x5d0] sm:$0xff] %v1536_v59  ;;  %v1300_v20 = vadd.f32 %v1299_v18, %v7315_v5  ;;  %v1540_v11 = vadd.f32 %v1539_v19, %v7315_v5  ;;  %v1301_v28 = vpop.f32.mrb[31].mxu0  ;;  %v1541_v35 = vpop.f32.mrb[31].mxu1  ;;  %v6587_v19 = vld [vmem:[%s6852_s24 + $0x1c4] ss:$8 sps:$4 sm:$0xff]  }
 0x15a   : > { %1876 = vst [vmem:[%s7324_s25 + $0x158] sm:$0xff] %v1298_v17  ;;  %2020 = vst [vmem:[%s7324_s25 + $0x5d8] sm:$0xff] %v1538_v60  ;;  %v1302_v36 = vadd.f32 %v1301_v28, %v7317_v6  ;;  %v1542_v61 = vadd.f32 %v1541_v35, %v7317_v6 }
 0x15b   : > { %1878 = vst [vmem:[%s7324_s25 + $0x168] sm:$0xff] %v1300_v20  ;;  %2022 = vst [vmem:[%s7324_s25 + $0x5e8] sm:$0xff] %v1540_v11  ;;  %1785 = vmatmul.mubr.bf16.gmra.mrb[136].mxu1 %v6584_v37  ;;  %v7548_v38 = vpack.c.bf16 %v1300_v20, %v1296_v14  ;;  %v7550_v39 = vpack.c.bf16 %v1540_v11, %v1536_v59 }
 0x15c   : > { %1879 = vst [vmem:[%s7324_s25 + $0x170] sm:$0xff] %v1302_v36  ;;  %2023 = vst [vmem:[%s7324_s25 + $0x5f0] sm:$0xff] %v1542_v61  ;;  %v7554_v62 = vpack.c.bf16 %v1302_v36, %v1298_v17  ;;  %5596 = vmatprep.mubr.msk.bf16.mxu1 %vm1094_vm0, %v6585_v40  ;;  %v7558_v41 = vpack.c.bf16 %v1542_v61, %v1538_v60  ;;  %v6533_v60 = vld [vmem:[%s9818_s7 + $0x10] sm:$0xff]  }
 0x15d   : > { %9989 = vst [vmem:[#allocation24_spill] sm:$0xff] %v7550_v39  ;;  %3558 = vmatpush1.bf16.msra.mxu0 %v6533_v60 }
 0x15e   : > { %9990 = vst [vmem:[#allocation25_spill] sm:$0xff] %v7558_v41  ;;  %v1305_v42 = vpop.f32.mrb[32].mxu0  ;;  %v1578_v43 = vpop.f32.mrb[32].mxu1  ;;  %2408 = vmatprep.mubr.bf16.mxu0 %v7554_v62  ;;  %3559 = vmatprep.subr.bf16.mxu0 %v9830_v30 }
 0x15f   : > { %v1306_v48 = vadd.f32 %v1305_v42, %v7315_v5  ;;  %v1579_v49 = vadd.f32 %v1578_v43, %v7241_v53  ;;  %v1307_v50 = vpop.f32.mrb[33].mxu0  ;;  %v1580_v51 = vpop.f32.mrb[33].mxu1  ;;  %2409 = vmatmul.mubr.bf16.gmra.mrb[124].mxu0 %v7548_v38 }
 0x160   : > { %v1308_v52 = vadd.f32 %v1307_v50, %v7317_v6  ;;  %v1309_v57 = vpop.f32.mrb[34].mxu0  ;;  %v1581_v2 = vpop.f32.mrb[34].mxu1 }
 0x161   : > { %1881 = vst [vmem:[%s7324_s25 + $0x180] sm:$0xff] %v1306_v48  ;;  %1835 = vst [vmem:[%s7324_s25 + $0x10] sm:$0xff] %v1579_v49  ;;  %v1310_v3 = vadd.f32 %v1309_v57, %v7315_v5  ;;  %v1582_v7 = vadd.f32 %v1581_v2, %v7241_v53  ;;  %v1311_v13 = vpop.f32.mrb[35].mxu0  ;;  %v1583_v14 = vpop.f32.mrb[35].mxu1  ;;  %v6588_v57 = vld [vmem:[%s6852_s24 + $0x1c0] ss:$8 sps:$4 sm:$0xff]  }
 0x162   : > { %1882 = vst [vmem:[%s7324_s25 + $0x188] sm:$0xff] %v1308_v52  ;;  %v1312_v59 = vadd.f32 %v1311_v13, %v7317_v6 }
 0x163   : > { %1884 = vst [vmem:[%s7324_s25 + $0x198] sm:$0xff] %v1310_v3  ;;  %1838 = vst [vmem:[%s7324_s25 + $0x28] sm:$0xff] %v1582_v7  ;;  %1793 = vmatmul.mubr.bf16.gmra.mrb[140].mxu1 %v6586_v15  ;;  %v7574_v16 = vpack.c.bf16 %v1310_v3, %v1306_v48  ;;  %v7576_v17 = vpack.c.bf16 %v1582_v7, %v1579_v49  ;;  %v6589_v7 = vld [vmem:[%s6852_s24 + $0x1d4] ss:$8 sps:$4 sm:$0xff]  }
 0x164   : > { %1885 = vst [vmem:[%s7324_s25 + $0x1a0] sm:$0xff] %v1312_v59  ;;  %v7582_v18 = vpack.c.bf16 %v1312_v59, %v1308_v52  ;;  %5597 = vmatprep.mubr.msk.bf16.mxu1 %vm1094_vm0, %v6587_v19 }
 0x165   : > { %9991 = vst [vmem:[#allocation26_spill] sm:$0xff] %v7576_v17 }
 0x166   : > { %v1315_v20 = vpop.f32.mrb[36].mxu0  ;;  %v1586_v11 = vpop.f32.mrb[36].mxu1  ;;  %2416 = vmatprep.mubr.bf16.mxu0 %v7582_v18 }
 0x167   : > { %v1316_v28 = vadd.f32 %v1315_v20, %v7315_v5  ;;  %v1587_v35 = vadd.f32 %v1586_v11, %v7241_v53  ;;  %v1317_v36 = vpop.f32.mrb[37].mxu0  ;;  %v1588_v61 = vpop.f32.mrb[37].mxu1  ;;  %2417 = vmatmul.mubr.bf16.gmra.mrb[128].mxu0 %v7574_v16 }
 0x168   : > { %v1318_v37 = vadd.f32 %v1317_v36, %v7317_v6  ;;  %v1319_v40 = vpop.f32.mrb[38].mxu0  ;;  %v1589_v42 = vpop.f32.mrb[38].mxu1 }
 0x169   : > { %1887 = vst [vmem:[%s7324_s25 + $0x1b0] sm:$0xff] %v1316_v28  ;;  %1841 = vst [vmem:[%s7324_s25 + $0x40] sm:$0xff] %v1587_v35  ;;  %v1320_v43 = vadd.f32 %v1319_v40, %v7315_v5  ;;  %v1590_v48 = vadd.f32 %v1589_v42, %v7241_v53  ;;  %v1321_v49 = vpop.f32.mrb[39].mxu0  ;;  %v1591_v50 = vpop.f32.mrb[39].mxu1  ;;  %v6534_v42 = vld [vmem:[%s9818_s7 + $0x18] sm:$0xff]  }
 0x16a   : > { %1888 = vst [vmem:[%s7324_s25 + $0x1b8] sm:$0xff] %v1318_v37  ;;  %v1322_v51 = vadd.f32 %v1321_v49, %v7317_v6  ;;  %3560 = vmatpush1.bf16.msra.mxu0 %v6534_v42  ;;  %v6592_v42 = vld [vmem:[%s6852_s24 + $0x1e0] ss:$8 sps:$4 sm:$0xff]  }
 0x16b   : > { %1890 = vst [vmem:[%s7324_s25 + $0x1c8] sm:$0xff] %v1320_v43  ;;  %1844 = vst [vmem:[%s7324_s25 + $0x58] sm:$0xff] %v1590_v48  ;;  %v7600_v52 = vpack.c.bf16 %v1590_v48, %v1587_v35  ;;  %1801 = vmatmul.mubr.bf16.gmra.mrb[144].mxu1 %v6588_v57  ;;  %v7603_v2 = vpack.c.bf16 %v1320_v43, %v1316_v28  ;;  %v6590_v43 = vld [vmem:[%s6852_s24 + $0x1d0] ss:$8 sps:$4 sm:$0xff]   ;;  %3561 = vmatprep.subr.bf16.mxu0 %v9830_v30 }
 0x16c   : > { %1891 = vst [vmem:[%s7324_s25 + $0x1d0] sm:$0xff] %v1322_v51  ;;  %v7606_v3 = vpack.c.bf16 %v1322_v51, %v1318_v37  ;;  %5598 = vmatprep.mubr.msk.bf16.mxu1 %vm1094_vm0, %v6589_v7  ;;  %v6591_v51 = vld [vmem:[%s6852_s24 + $0x1e4] ss:$8 sps:$4 sm:$0xff]  }
 0x16d   : > { %9992 = vst [vmem:[#allocation27_spill] sm:$0xff] %v7600_v52 }
 0x16e   : > { %v1325_v13 = vpop.f32.mrb[40].mxu0  ;;  %v1594_v14 = vpop.f32.mrb[40].mxu1  ;;  %2424 = vmatprep.mubr.bf16.mxu0 %v7606_v3 }
 0x16f   : > { %v1326_v59 = vadd.f32 %v1325_v13, %v7315_v5  ;;  %v1595_v15 = vadd.f32 %v1594_v14, %v7241_v53  ;;  %v1327_v60 = vpop.f32.mrb[41].mxu0  ;;  %v1596_v19 = vpop.f32.mrb[41].mxu1  ;;  %2425 = vmatmul.mubr.bf16.gmra.mrb[132].mxu0 %v7603_v2  ;;  %v6535_v13 = vld [vmem:[%s9818_s7 + $0x20] sm:$0xff]  }
 0x170   : > { %v1328_v20 = vadd.f32 %v1327_v60, %v7317_v6  ;;  %v1329_v11 = vpop.f32.mrb[42].mxu0  ;;  %v1597_v28 = vpop.f32.mrb[42].mxu1  ;;  %3562 = vmatpush1.bf16.msra.mxu0 %v6535_v13 }
 0x171   : > { %1893 = vst [vmem:[%s7324_s25 + $0x1e0] sm:$0xff] %v1326_v59  ;;  %1847 = vst [vmem:[%s7324_s25 + $0x70] sm:$0xff] %v1595_v15  ;;  %v1330_v35 = vadd.f32 %v1329_v11, %v7315_v5  ;;  %v1598_v36 = vadd.f32 %v1597_v28, %v7241_v53  ;;  %v1331_v61 = vpop.f32.mrb[43].mxu0  ;;  %v1599_v37 = vpop.f32.mrb[43].mxu1  ;;  %3563 = vmatprep.subr.bf16.mxu0 %v9830_v30 }
 0x172   : > { %1894 = vst [vmem:[%s7324_s25 + $0x1e8] sm:$0xff] %v1328_v20  ;;  %v1332_v40 = vadd.f32 %v1331_v61, %v7317_v6 }
 0x173   : > { %1896 = vst [vmem:[%s7324_s25 + $0x1f8] sm:$0xff] %v1330_v35  ;;  %1850 = vst [vmem:[%s7324_s25 + $0x88] sm:$0xff] %v1598_v36  ;;  %1809 = vmatmul.mubr.bf16.gmra.mrb[148].mxu1 %v6590_v43  ;;  %v7627_v48 = vpack.c.bf16 %v1330_v35, %v1326_v59  ;;  %v7629_v49 = vpack.c.bf16 %v1598_v36, %v1595_v15 }
 0x174   : > { %1897 = vst [vmem:[%s7324_s25 + $0x200] sm:$0xff] %v1332_v40  ;;  %v7632_v50 = vpack.c.bf16 %v1332_v40, %v1328_v20  ;;  %5599 = vmatprep.mubr.msk.bf16.mxu1 %vm1094_vm0, %v6591_v51  ;;  %v6536_v40 = vld [vmem:[%s9818_s7 + $0x28] sm:$0xff]  }
 0x175   : > { %9993 = vst [vmem:[#allocation28_spill] sm:$0xff] %v7629_v49  ;;  %3564 = vmatpush1.bf16.msra.mxu0 %v6536_v40 }
 0x176   : > { %v1335_v57 = vpop.f32.mrb[44].mxu0  ;;  %v1602_v7 = vpop.f32.mrb[44].mxu1  ;;  %2432 = vmatprep.mubr.bf16.mxu0 %v7632_v50  ;;  %3565 = vmatprep.subr.bf16.mxu0 %v9830_v30 }
 0x177   : > { %v1336_v14 = vadd.f32 %v1335_v57, %v7315_v5  ;;  %v1603_v59 = vadd.f32 %v1602_v7, %v7241_v53  ;;  %v1337_v15 = vpop.f32.mrb[45].mxu0  ;;  %v1604_v60 = vpop.f32.mrb[45].mxu1  ;;  %2433 = vmatmul.mubr.bf16.gmra.mrb[136].mxu0 %v7627_v48  ;;  %v6593_v7 = vld [vmem:[%s6852_s24 + $0x1f4] ss:$8 sps:$4 sm:$0xff]  }
 0x178   : > { %v1338_v19 = vadd.f32 %v1337_v15, %v7317_v6  ;;  %v1339_v20 = vpop.f32.mrb[46].mxu0  ;;  %v1605_v11 = vpop.f32.mrb[46].mxu1 }
 0x179   : > { %1899 = vst [vmem:[%s7324_s25 + $0x210] sm:$0xff] %v1336_v14  ;;  %1853 = vst [vmem:[%s7324_s25 + $0xa0] sm:$0xff] %v1603_v59  ;;  %v1340_v28 = vadd.f32 %v1339_v20, %v7315_v5  ;;  %v1606_v35 = vadd.f32 %v1605_v11, %v7241_v53  ;;  %v1341_v36 = vpop.f32.mrb[47].mxu0  ;;  %v1607_v61 = vpop.f32.mrb[47].mxu1 }
 0x17a   : > { %1900 = vst [vmem:[%s7324_s25 + $0x218] sm:$0xff] %v1338_v19  ;;  %v1342_v37 = vadd.f32 %v1341_v36, %v7317_v6 }
 0x17b   : > { %1902 = vst [vmem:[%s7324_s25 + $0x228] sm:$0xff] %v1340_v28  ;;  %1856 = vst [vmem:[%s7324_s25 + $0xb8] sm:$0xff] %v1606_v35  ;;  %1817 = vmatmul.mubr.bf16.gmra.mrb[152].mxu1 %v6592_v42  ;;  %v7658_v43 = vpack.c.bf16 %v1340_v28, %v1336_v14  ;;  %v7660_v51 = vpack.c.bf16 %v1606_v35, %v1603_v59  ;;  %v6537_v14 = vld [vmem:[%s9818_s7 + $0x30] sm:$0xff]  }
 0x17c   : > { %1903 = vst [vmem:[%s7324_s25 + $0x230] sm:$0xff] %v1342_v37  ;;  %v7663_v57 = vpack.c.bf16 %v1342_v37, %v1338_v19  ;;  %5600 = vmatprep.mubr.msk.bf16.mxu1 %vm1094_vm0, %v6593_v7  ;;  %3566 = vmatpush1.bf16.msra.mxu0 %v6537_v14  ;;  %v6538_v7 = vld [vmem:[%s9818_s7 + $0x38] sm:$0xff]  }
 0x17d   : > { %9994 = vst [vmem:[#allocation29_spill] sm:$0xff] %v7660_v51  ;;  %3567 = vmatprep.subr.bf16.mxu0 %v9830_v30 }
 0x17e   : > { %v1345_v13 = vpop.f32.mrb[48].mxu0  ;;  %v1610_v15 = vpop.f32.mrb[48].mxu1  ;;  %2440 = vmatprep.mubr.bf16.mxu0 %v7663_v57 }
 0x17f   : > { %v1346_v59 = vadd.f32 %v1345_v13, %v7315_v5  ;;  %v1611_v60 = vadd.f32 %v1610_v15, %v7241_v53  ;;  %v1347_v19 = vpop.f32.mrb[49].mxu0  ;;  %v1612_v20 = vpop.f32.mrb[49].mxu1  ;;  %2441 = vmatmul.mubr.bf16.gmra.mrb[140].mxu0 %v7658_v43  ;;  %v6594_v13 = vld [vmem:[%s6852_s24 + $0x1f0] ss:$8 sps:$4 sm:$0xff]   ;;  %s6313_s24 = smul.u32 24576, %s6794_s17 }
 0x180   : > { %v1348_v11 = vadd.f32 %v1347_v19, %v7317_v6  ;;  %v1349_v28 = vpop.f32.mrb[50].mxu0  ;;  %v1613_v35 = vpop.f32.mrb[50].mxu1  ;;  %3568 = vmatpush1.bf16.msra.mxu0 %v6538_v7 }
 0x181   : > { %1905 = vst [vmem:[%s7324_s25 + $0x240] sm:$0xff] %v1346_v59  ;;  %1859 = vst [vmem:[%s7324_s25 + $0xd0] sm:$0xff] %v1611_v60  ;;  %v1350_v36 = vadd.f32 %v1349_v28, %v7315_v5  ;;  %v1614_v61 = vadd.f32 %v1613_v35, %v7241_v53  ;;  %v1351_v37 = vpop.f32.mrb[51].mxu0  ;;  %v1615_v40 = vpop.f32.mrb[51].mxu1  ;;  %3569 = vmatprep.subr.bf16.mxu0 %v9830_v30  ;;  %s9475_s21 = scalar_lea.hbm %s9824_s13, %s6313_s24  ;;  %s6601_s24 = scalar_lea.vmem %s6600_s22, 49152 }
 0x182   : > { %1906 = vst [vmem:[%s7324_s25 + $0x248] sm:$0xff] %v1348_v11  ;;  %v1352_v42 = vadd.f32 %v1351_v37, %v7317_v6  ;;  %p6603_p1 = scmp.lt.s32.totalorder %s6601_s24, %s6595_s27 }
 0x183   : > { %1908 = vst [vmem:[%s7324_s25 + $0x258] sm:$0xff] %v1350_v36  ;;  %1862 = vst [vmem:[%s7324_s25 + $0xe8] sm:$0xff] %v1614_v61  ;;  %1825 = vmatmul.mubr.bf16.gmra.mrb[156].mxu1 %v6594_v13  ;;  %v7689_v15 = vpack.c.bf16 %v1350_v36, %v1346_v59  ;;  %v7691_v14 = vpack.c.bf16 %v1614_v61, %v1611_v60  ;;  %v6539_v59 = vld [vmem:[%s9818_s7 + $0x40] sm:$0xff]  }
 0x184   : > { %1909 = vst [vmem:[%s7324_s25 + $0x260] sm:$0xff] %v1352_v42  ;;  %5904 = vmatprep.mubr.bf16.mxu1 %v7576_v17  ;;  %v7695_v19 = vpack.c.bf16 %v1352_v42, %v1348_v11  ;;  %3570 = vmatpush1.bf16.msra.mxu0 %v6539_v59  ;;  %p6604_p2 = por %p6603_p1, %p6602_p0 }
 0x185   : > { %9995 = vst [vmem:[#allocation30_spill] sm:$0xff] %v7691_v14  ;;  %3571 = vmatprep.subr.bf16.mxu0 %v9830_v30 }
 0x186   : > { %v1355_v20 = vpop.f32.mrb[52].mxu0  ;;  %v1618_v28 = vpop.f32.mrb[52].mxu1  ;;  %2448 = vmatprep.mubr.bf16.mxu0 %v7695_v19  ;;  %p6605_p3 = pnand %p6604_p2, %p6598_p13 }
 0x187   : > { %v1356_v60 = vadd.f32 %v1355_v20, %v7315_v5  ;;  %v1619_v35 = vadd.f32 %v1618_v28, %v7241_v53  ;;  %v1357_v11 = vpop.f32.mrb[53].mxu0  ;;  %v1620_v36 = vpop.f32.mrb[53].mxu1  ;;  %2449 = vmatmul.mubr.bf16.gmra.mrb[144].mxu0 %v7689_v15 }
 0x188   : > { %v1358_v61 = vadd.f32 %v1357_v11, %v7317_v6  ;;  %v1359_v37 = vpop.f32.mrb[54].mxu0  ;;  %v1621_v40 = vpop.f32.mrb[54].mxu1  ;;  %v6540_v11 = vld [vmem:[%s9818_s7 + $0x48] sm:$0xff]  }
 0x189   : > { %1911 = vst [vmem:[%s7324_s25 + $0x270] sm:$0xff] %v1356_v60  ;;  %1865 = vst [vmem:[%s7324_s25 + $0x100] sm:$0xff] %v1619_v35  ;;  %v1360_v42 = vadd.f32 %v1359_v37, %v7315_v5  ;;  %v1622_v7 = vadd.f32 %v1621_v40, %v7241_v53  ;;  %v1361_v13 = vpop.f32.mrb[55].mxu0  ;;  %v1623_v20 = vpop.f32.mrb[55].mxu1  ;;  %3572 = vmatpush1.bf16.msra.mxu0 %v6540_v11 }
 0x18a   : > { %1912 = vst [vmem:[%s7324_s25 + $0x278] sm:$0xff] %v1358_v61  ;;  %v1362_v28 = vadd.f32 %v1361_v13, %v7317_v6  ;;  %3573 = vmatprep.subr.bf16.mxu0 %v9830_v30 }
 0x18b   : > { %1914 = vst [vmem:[%s7324_s25 + $0x288] sm:$0xff] %v1360_v42  ;;  %1868 = vst [vmem:[%s7324_s25 + $0x118] sm:$0xff] %v1622_v7  ;;  %5905 = vmatmul.mubr.bf16.vlgmr.msra.gmra.mrb[160].mxu1 %v7600_v52  ;;  %v7719_v59 = vpack.c.bf16 %v1360_v42, %v1356_v60  ;;  %v7721_v36 = vpack.c.bf16 %v1622_v7, %v1619_v35  ;;  %v6541_v60 = vld [vmem:[%s9818_s7 + $0x50] sm:$0xff]   ;;  %v9997_v52 = vmov 0  }
 0x18c   : > { %1915 = vst [vmem:[%s7324_s25 + $0x290] sm:$0xff] %v1362_v28  ;;  %5908 = vmatprep.mubr.bf16.mxu1 %v7629_v49  ;;  %v7725_v37 = vpack.c.bf16 %v1362_v28, %v1358_v61 }
 0x18d   : > { %9996 = vst [vmem:[#allocation31_spill] sm:$0xff] %v7721_v36  ;;  %3574 = vmatpush1.bf16.msra.mxu0 %v6541_v60 }
 0x18e   : > { %v1365_v40 = vpop.f32.mrb[56].mxu0  ;;  %v1626_v13 = vpop.f32.mrb[56].mxu1  ;;  %2456 = vmatprep.mubr.bf16.mxu0 %v7725_v37  ;;  %3575 = vmatprep.subr.bf16.mxu0 %v9997_v52 }
 0x18f   : > { %v1366_v35 = vadd.f32 %v1365_v40, %v7315_v5  ;;  %v1627_v42 = vadd.f32 %v1626_v13, %v7241_v53  ;;  %v1367_v61 = vpop.f32.mrb[57].mxu0  ;;  %v1628_v7 = vpop.f32.mrb[57].mxu1  ;;  %2457 = vmatmul.mubr.bf16.gmra.mrb[148].mxu0 %v7719_v59 }
 0x190   : > { %v1368_v20 = vadd.f32 %v1367_v61, %v7317_v6  ;;  %v1369_v28 = vpop.f32.mrb[58].mxu0  ;;  %v1629_v11 = vpop.f32.mrb[58].mxu1  ;;  %v6542_v61 = vld [vmem:[%s9818_s7 + $0x58] sm:$0xff]  }
 0x191   : > { %1917 = vst [vmem:[%s7324_s25 + $0x2a0] sm:$0xff] %v1366_v35  ;;  %1871 = vst [vmem:[%s7324_s25 + $0x130] sm:$0xff] %v1627_v42  ;;  %v1370_v30 = vadd.f32 %v1369_v28, %v7315_v5  ;;  %v1630_v40 = vadd.f32 %v1629_v11, %v7241_v53  ;;  %v1371_v49 = vpop.f32.mrb[59].mxu0  ;;  %v1631_v13 = vpop.f32.mrb[59].mxu1  ;;  %3576 = vmatpush1.bf16.msra.mxu0 %v6542_v61 }
 0x192   : > { %1918 = vst [vmem:[%s7324_s25 + $0x2a8] sm:$0xff] %v1368_v20  ;;  %v1372_v7 = vadd.f32 %v1371_v49, %v7317_v6  ;;  %3577 = vmatprep.subr.bf16.mxu0 %v9997_v52 }
 0x193   : > { %1920 = vst [vmem:[%s7324_s25 + $0x2b8] sm:$0xff] %v1370_v30  ;;  %1874 = vst [vmem:[%s7324_s25 + $0x148] sm:$0xff] %v1630_v40  ;;  %5909 = vmatmul.mubr.bf16.gmra.mrb[164].mxu1 %v7660_v51  ;;  %v7749_v60 = vpack.c.bf16 %v1370_v30, %v1366_v35  ;;  %v7751_v28 = vpack.c.bf16 %v1630_v40, %v1627_v42  ;;  %v6543_v30 = vld [vmem:[%s9818_s7 + $0x60] sm:$0xff]  }
 0x194   : > { %1921 = vst [vmem:[%s7324_s25 + $0x2c0] sm:$0xff] %v1372_v7  ;;  %5912 = vmatprep.mubr.bf16.mxu1 %v7691_v14  ;;  %v7755_v11 = vpack.c.bf16 %v1372_v7, %v1368_v20 }
 0x195   : > { %9998 = vst [vmem:[#allocation32_spill] sm:$0xff] %v7751_v28  ;;  %3578 = vmatpush1.bf16.msra.mxu0 %v6543_v30 }
 0x196   : > { %v1375_v49 = vpop.f32.mrb[60].mxu0  ;;  %v1634_v13 = vpop.f32.mrb[60].mxu1  ;;  %2464 = vmatprep.mubr.bf16.mxu0 %v7755_v11  ;;  %3579 = vmatprep.subr.bf16.mxu0 %v9997_v52 }
 0x197   : > { %v1376_v35 = vadd.f32 %v1375_v49, %v7315_v5  ;;  %v1635_v42 = vadd.f32 %v1634_v13, %v7241_v53  ;;  %v1377_v20 = vpop.f32.mrb[61].mxu0  ;;  %v1636_v40 = vpop.f32.mrb[61].mxu1  ;;  %2465 = vmatmul.mubr.bf16.gmra.mrb[152].mxu0 %v7749_v60 }
 0x198   : > { %v1378_v7 = vadd.f32 %v1377_v20, %v7317_v6  ;;  %v1379_v61 = vpop.f32.mrb[62].mxu0  ;;  %v1637_v14 = vpop.f32.mrb[62].mxu1  ;;  %v6544_v20 = vld [vmem:[%s9818_s7 + $0x68] sm:$0xff]  }
 0x199   : > { %1923 = vst [vmem:[%s7324_s25 + $0x2d0] sm:$0xff] %v1376_v35  ;;  %1877 = vst [vmem:[%s7324_s25 + $0x160] sm:$0xff] %v1635_v42  ;;  %v1380_v51 = vadd.f32 %v1379_v61, %v7315_v5  ;;  %v1638_v49 = vadd.f32 %v1637_v14, %v7241_v53  ;;  %v1381_v17 = vpop.f32.mrb[63].mxu0  ;;  %v1639_v13 = vpop.f32.mrb[63].mxu1  ;;  %3580 = vmatpush1.bf16.msra.mxu0 %v6544_v20 }
 0x19a   : > { %1924 = vst [vmem:[%s7324_s25 + $0x2d8] sm:$0xff] %v1378_v7  ;;  %v1382_v40 = vadd.f32 %v1381_v17, %v7317_v6  ;;  %3581 = vmatprep.subr.bf16.mxu0 %v9997_v52 }
 0x19b   : > { %1926 = vst [vmem:[%s7324_s25 + $0x2e8] sm:$0xff] %v1380_v51  ;;  %1880 = vst [vmem:[%s7324_s25 + $0x178] sm:$0xff] %v1638_v49  ;;  %5913 = vmatmul.mubr.bf16.gmra.mrb[168].mxu1 %v7721_v36  ;;  %v7779_v30 = vpack.c.bf16 %v1380_v51, %v1376_v35  ;;  %v7781_v61 = vpack.c.bf16 %v1638_v49, %v1635_v42  ;;  %v6545_v51 = vld [vmem:[%s9818_s7 + $0x70] sm:$0xff]  }
 0x19c   : > { %1927 = vst [vmem:[%s7324_s25 + $0x2f0] sm:$0xff] %v1382_v40  ;;  %5916 = vmatprep.mubr.bf16.mxu1 %v7751_v28  ;;  %v7785_v14 = vpack.c.bf16 %v1382_v40, %v1378_v7 }
 0x19d   : > { %9999 = vst [vmem:[#allocation33_spill] sm:$0xff] %v7781_v61  ;;  %3582 = vmatpush1.bf16.msra.mxu0 %v6545_v51 }
 0x19e   : > { %10000 = vst [vmem:[#allocation34_spill] sm:$0xff] %v7785_v14  ;;  %v1385_v17 = vpop.f32.mrb[64].mxu0  ;;  %v1642_v13 = vpop.f32.mrb[64].mxu1  ;;  %2472 = vmatprep.mubr.bf16.mxu0 %v7785_v14  ;;  %3583 = vmatprep.subr.bf16.mxu0 %v9997_v52 }
 0x19f   : > { %v1386_v35 = vadd.f32 %v1385_v17, %v7315_v5  ;;  %v1643_v42 = vadd.f32 %v1642_v13, %v7241_v53  ;;  %v1387_v7 = vpop.f32.mrb[65].mxu0  ;;  %v1644_v49 = vpop.f32.mrb[65].mxu1  ;;  %2473 = vmatmul.mubr.bf16.gmra.mrb[156].mxu0 %v7779_v30 }
 0x1a0   : > { %v1388_v40 = vadd.f32 %v1387_v7, %v7317_v6  ;;  %v1389_v20 = vpop.f32.mrb[66].mxu0  ;;  %v1645_v28 = vpop.f32.mrb[66].mxu1  ;;  %v6546_v7 = vld [vmem:[%s9818_s7 + $0x78] sm:$0xff]  }
 0x1a1   : > { %1929 = vst [vmem:[%s7324_s25 + $0x300] sm:$0xff] %v1386_v35  ;;  %1883 = vst [vmem:[%s7324_s25 + $0x190] sm:$0xff] %v1643_v42  ;;  %v1390_v36 = vadd.f32 %v1389_v20, %v7315_v5  ;;  %v1646_v17 = vadd.f32 %v1645_v28, %v7241_v53  ;;  %v1391_v14 = vpop.f32.mrb[67].mxu0  ;;  %v1647_v13 = vpop.f32.mrb[67].mxu1  ;;  %3584 = vmatpush1.bf16.msra.mxu0 %v6546_v7 }
 0x1a2   : > { %1930 = vst [vmem:[%s7324_s25 + $0x308] sm:$0xff] %v1388_v40  ;;  %v1392_v49 = vadd.f32 %v1391_v14, %v7317_v6 }
 0x1a3   : > { %1932 = vst [vmem:[%s7324_s25 + $0x318] sm:$0xff] %v1390_v36  ;;  %1886 = vst [vmem:[%s7324_s25 + $0x1a8] sm:$0xff] %v1646_v17  ;;  %5917 = vmatmul.mubr.bf16.gmra.mrb[172].mxu1 %v7781_v61  ;;  %v7809_v51 = vpack.c.bf16 %v1646_v17, %v1643_v42  ;;  %v7811_v20 = vpack.c.bf16 %v1390_v36, %v1386_v35 }
 0x1a4   : > { %1933 = vst [vmem:[%s7324_s25 + $0x320] sm:$0xff] %v1392_v49  ;;  %v7814_v28 = vpack.c.bf16 %v1392_v49, %v1388_v40 }
 0x1a5   : > { %10001 = vst [vmem:[#allocation35_spill] sm:$0xff] %v7809_v51  ;;  %10002 = vst [vmem:[#allocation36_spill] sm:$0xff] %v7811_v20  ;;  %5920 = vmatprep.mubr.bf16.mxu1 %v7809_v51 }
 0x1a6   : > { %10003 = vst [vmem:[#allocation37_spill] sm:$0xff] %v7814_v28  ;;  %v1395_v52 = vpop.f32.mrb[68].mxu0  ;;  %v1650_v14 = vpop.f32.mrb[68].mxu1  ;;  %2480 = vmatprep.mubr.bf16.mxu0 %v7814_v28 }
 0x1a7   : > { %v1396_v13 = vadd.f32 %v1395_v52, %v7315_v5  ;;  %v1651_v42 = vadd.f32 %v1650_v14, %v7241_v53  ;;  %v1397_v36 = vpop.f32.mrb[69].mxu0  ;;  %v1652_v35 = vpop.f32.mrb[69].mxu1  ;;  %2481 = vmatmul.mubr.bf16.gmra.mrb[160].mxu0 %v7811_v20 }
 0x1a8   : > { %v1398_v40 = vadd.f32 %v1397_v36, %v7317_v6  ;;  %v1399_v17 = vpop.f32.mrb[70].mxu0  ;;  %v1653_v49 = vpop.f32.mrb[70].mxu1 }
 0x1a9   : > { %1935 = vst [vmem:[%s7324_s25 + $0x330] sm:$0xff] %v1396_v13  ;;  %1889 = vst [vmem:[%s7324_s25 + $0x1c0] sm:$0xff] %v1651_v42  ;;  %v1400_v7 = vadd.f32 %v1399_v17, %v7315_v5  ;;  %v1654_v51 = vadd.f32 %v1653_v49, %v7241_v53  ;;  %v1401_v52 = vpop.f32.mrb[71].mxu0  ;;  %v1655_v61 = vpop.f32.mrb[71].mxu1 }
 0x1aa   : > { %1936 = vst [vmem:[%s7324_s25 + $0x338] sm:$0xff] %v1398_v40  ;;  %v1402_v14 = vadd.f32 %v1401_v52, %v7317_v6 }
 0x1ab   : > { %1938 = vst [vmem:[%s7324_s25 + $0x348] sm:$0xff] %v1400_v7  ;;  %1892 = vst [vmem:[%s7324_s25 + $0x1d8] sm:$0xff] %v1654_v51  ;;  %v7830_v35 = vpack.c.bf16 %v1654_v51, %v1651_v42  ;;  %v7832_v20 = vpack.c.bf16 %v1400_v7, %v1396_v13 }
 0x1ac   : > { %1939 = vst [vmem:[%s7324_s25 + $0x350] sm:$0xff] %v1402_v14  ;;  %v7835_v36 = vpack.c.bf16 %v1402_v14, %v1398_v40 }
 0x1ad   : > { %10004 = vst [vmem:[#allocation38_spill] sm:$0xff] %v7830_v35  ;;  %10005 = vst [vmem:[#allocation39_spill] sm:$0xff] %v7832_v20  ;;  %5921 = vmatmul.mubr.bf16.gmra.mrb[176].mxu1 %v7830_v35 }
 0x1ae   : > { %10006 = vst [vmem:[#allocation40_spill] sm:$0xff] %v7835_v36  ;;  %v1405_v17 = vpop.f32.mrb[72].mxu0  ;;  %v1658_v49 = vpop.f32.mrb[72].mxu1  ;;  %2488 = vmatprep.mubr.bf16.mxu0 %v7835_v36 }
 0x1af   : > { %v1406_v61 = vadd.f32 %v1405_v17, %v7315_v5  ;;  %v1659_v51 = vadd.f32 %v1658_v49, %v7241_v53  ;;  %v1407_v42 = vpop.f32.mrb[73].mxu0  ;;  %v1660_v13 = vpop.f32.mrb[73].mxu1  ;;  %2489 = vmatmul.mubr.bf16.gmra.mrb[164].mxu0 %v7832_v20 }
 0x1b0   : > { %v1408_v40 = vadd.f32 %v1407_v42, %v7317_v6  ;;  %v1409_v7 = vpop.f32.mrb[74].mxu0  ;;  %v1661_v52 = vpop.f32.mrb[74].mxu1 }
 0x1b1   : > { %1941 = vst [vmem:[%s7324_s25 + $0x360] sm:$0xff] %v1406_v61  ;;  %1895 = vst [vmem:[%s7324_s25 + $0x1f0] sm:$0xff] %v1659_v51  ;;  %v1410_v14 = vadd.f32 %v1409_v7, %v7315_v5  ;;  %v1662_v35 = vadd.f32 %v1661_v52, %v7241_v53  ;;  %v1411_v17 = vpop.f32.mrb[75].mxu0  ;;  %v1663_v36 = vpop.f32.mrb[75].mxu1 }
 0x1b2   : > { %1942 = vst [vmem:[%s7324_s25 + $0x368] sm:$0xff] %v1408_v40  ;;  %v1412_v49 = vadd.f32 %v1411_v17, %v7317_v6 }
 0x1b3   : > { %1944 = vst [vmem:[%s7324_s25 + $0x378] sm:$0xff] %v1410_v14  ;;  %1898 = vst [vmem:[%s7324_s25 + $0x208] sm:$0xff] %v1662_v35  ;;  %v7851_v13 = vpack.c.bf16 %v1662_v35, %v1659_v51  ;;  %v7853_v20 = vpack.c.bf16 %v1410_v14, %v1406_v61 }
 0x1b4   : > { %1945 = vst [vmem:[%s7324_s25 + $0x380] sm:$0xff] %v1412_v49  ;;  %v7856_v42 = vpack.c.bf16 %v1412_v49, %v1408_v40 }
 0x1b5   : > { %10007 = vst [vmem:[#allocation41_spill] sm:$0xff] %v7851_v13  ;;  %10008 = vst [vmem:[#allocation42_spill] sm:$0xff] %v7853_v20  ;;  %5924 = vmatprep.mubr.bf16.mxu1 %v7851_v13 }
 0x1b6   : > { %10009 = vst [vmem:[#allocation43_spill] sm:$0xff] %v7856_v42  ;;  %v1415_v7 = vpop.f32.mrb[76].mxu0  ;;  %v1666_v52 = vpop.f32.mrb[76].mxu1  ;;  %2496 = vmatprep.mubr.bf16.mxu0 %v7856_v42 }
 0x1b7   : > { %v1416_v36 = vadd.f32 %v1415_v7, %v7315_v5  ;;  %v1667_v35 = vadd.f32 %v1666_v52, %v7241_v53  ;;  %v1417_v51 = vpop.f32.mrb[77].mxu0  ;;  %v1668_v61 = vpop.f32.mrb[77].mxu1  ;;  %2497 = vmatmul.mubr.bf16.gmra.mrb[168].mxu0 %v7853_v20 }
 0x1b8   : > { %v1418_v40 = vadd.f32 %v1417_v51, %v7317_v6  ;;  %v1419_v14 = vpop.f32.mrb[78].mxu0  ;;  %v1669_v17 = vpop.f32.mrb[78].mxu1 }
 0x1b9   : > { %1947 = vst [vmem:[%s7324_s25 + $0x390] sm:$0xff] %v1416_v36  ;;  %1901 = vst [vmem:[%s7324_s25 + $0x220] sm:$0xff] %v1667_v35  ;;  %v1420_v49 = vadd.f32 %v1419_v14, %v7315_v5  ;;  %v1670_v13 = vadd.f32 %v1669_v17, %v7241_v53  ;;  %v1421_v7 = vpop.f32.mrb[79].mxu0  ;;  %v1671_v42 = vpop.f32.mrb[79].mxu1 }
 0x1ba   : > { %1948 = vst [vmem:[%s7324_s25 + $0x398] sm:$0xff] %v1418_v40  ;;  %v1422_v52 = vadd.f32 %v1421_v7, %v7317_v6 }
 0x1bb   : > { %1950 = vst [vmem:[%s7324_s25 + $0x3a8] sm:$0xff] %v1420_v49  ;;  %1904 = vst [vmem:[%s7324_s25 + $0x238] sm:$0xff] %v1670_v13  ;;  %v7872_v61 = vpack.c.bf16 %v1670_v13, %v1667_v35  ;;  %v7874_v20 = vpack.c.bf16 %v1420_v49, %v1416_v36 }
 0x1bc   : > { %1951 = vst [vmem:[%s7324_s25 + $0x3b0] sm:$0xff] %v1422_v52  ;;  %v7877_v51 = vpack.c.bf16 %v1422_v52, %v1418_v40 }
 0x1bd   : > { %10010 = vst [vmem:[#allocation44_spill] sm:$0xff] %v7872_v61  ;;  %10011 = vst [vmem:[#allocation45_spill] sm:$0xff] %v7874_v20  ;;  %5925 = vmatmul.mubr.bf16.gmra.mrb[180].mxu1 %v7872_v61 }
 0x1be   : > { %10012 = vst [vmem:[#allocation46_spill] sm:$0xff] %v7877_v51  ;;  %v1425_v14 = vpop.f32.mrb[80].mxu0  ;;  %v1674_v17 = vpop.f32.mrb[80].mxu1  ;;  %2504 = vmatprep.mubr.bf16.mxu0 %v7877_v51 }
 0x1bf   : > { %v1426_v42 = vadd.f32 %v1425_v14, %v7315_v5  ;;  %v1675_v13 = vadd.f32 %v1674_v17, %v7241_v53  ;;  %v1427_v35 = vpop.f32.mrb[81].mxu0  ;;  %v1676_v36 = vpop.f32.mrb[81].mxu1  ;;  %2505 = vmatmul.mubr.bf16.gmra.mrb[172].mxu0 %v7874_v20 }
 0x1c0   : > { %v1428_v40 = vadd.f32 %v1427_v35, %v7317_v6  ;;  %v1429_v49 = vpop.f32.mrb[82].mxu0  ;;  %v1677_v7 = vpop.f32.mrb[82].mxu1  ;;  %v6547_v35 = vld [vmem:[%s9816_s5] sm:$0xff]  }
 0x1c1   : > { %1953 = vst [vmem:[%s7324_s25 + $0x3c0] sm:$0xff] %v1426_v42  ;;  %1907 = vst [vmem:[%s7324_s25 + $0x250] sm:$0xff] %v1675_v13  ;;  %v1430_v52 = vadd.f32 %v1429_v49, %v7315_v5  ;;  %v1678_v61 = vadd.f32 %v1677_v7, %v7241_v53  ;;  %v1431_v14 = vpop.f32.mrb[83].mxu0  ;;  %v1679_v51 = vpop.f32.mrb[83].mxu1  ;;  %5968 = vmatprep.subr.bf16.mxu1 %v6547_v35 }
 0x1c2   : > { %1954 = vst [vmem:[%s7324_s25 + $0x3c8] sm:$0xff] %v1428_v40  ;;  %v1432_v17 = vadd.f32 %v1431_v14, %v7317_v6  ;;  %5969 = vmatpush3.bf16.msra.mxu1 %v6547_v35 }
 0x1c3   : > { %1956 = vst [vmem:[%s7324_s25 + $0x3d8] sm:$0xff] %v1430_v52  ;;  %1910 = vst [vmem:[%s7324_s25 + $0x268] sm:$0xff] %v1678_v61  ;;  %v7893_v36 = vpack.c.bf16 %v1678_v61, %v1675_v13  ;;  %v7895_v20 = vpack.c.bf16 %v1430_v52, %v1426_v42 }
 0x1c4   : > { %1957 = vst [vmem:[%s7324_s25 + $0x3e0] sm:$0xff] %v1432_v17  ;;  %v7901_v49 = vpack.c.bf16 %v1432_v17, %v1428_v40 }
 0x1c5   : > { %10013 = vst [vmem:[#allocation47_spill] sm:$0xff] %v7893_v36  ;;  %10014 = vst [vmem:[#allocation48_spill] sm:$0xff] %v7895_v20  ;;  %5928 = vmatprep.mubr.bf16.mxu1 %v7893_v36 }
 0x1c6   : > { %10015 = vst [vmem:[#allocation49_spill] sm:$0xff] %v7901_v49  ;;  %v1435_v51 = vpop.f32.mrb[84].mxu0  ;;  %v1682_v7 = vpop.f32.mrb[84].mxu1  ;;  %2512 = vmatprep.mubr.bf16.mxu0 %v7901_v49 }
 0x1c7   : > { %v1436_v61 = vadd.f32 %v1435_v51, %v7315_v5  ;;  %v1683_v42 = vadd.f32 %v1682_v7, %v7241_v53  ;;  %v1437_v13 = vpop.f32.mrb[85].mxu0  ;;  %v1684_v52 = vpop.f32.mrb[85].mxu1  ;;  %2513 = vmatmul.mubr.bf16.gmra.mrb[176].mxu0 %v7895_v20 }
 0x1c8   : > { %v1438_v40 = vadd.f32 %v1437_v13, %v7317_v6  ;;  %v1439_v14 = vpop.f32.mrb[86].mxu0  ;;  %v1685_v17 = vpop.f32.mrb[86].mxu1  ;;  %v6548_v13 = vld [vmem:[%s9816_s5 + $0x8] sm:$0xff]  }
 0x1c9   : > { %1959 = vst [vmem:[%s7324_s25 + $0x3f0] sm:$0xff] %v1436_v61  ;;  %1913 = vst [vmem:[%s7324_s25 + $0x280] sm:$0xff] %v1683_v42  ;;  %v1440_v36 = vadd.f32 %v1439_v14, %v7315_v5  ;;  %v1686_v35 = vadd.f32 %v1685_v17, %v7241_v53  ;;  %v1441_v51 = vpop.f32.mrb[87].mxu0  ;;  %v1687_v49 = vpop.f32.mrb[87].mxu1  ;;  %5970 = vmatprep.subr.bf16.mxu1 %v6548_v13 }
 0x1ca   : > { %1960 = vst [vmem:[%s7324_s25 + $0x3f8] sm:$0xff] %v1438_v40  ;;  %v1442_v7 = vadd.f32 %v1441_v51, %v7317_v6  ;;  %5971 = vmatpush3.bf16.msra.mxu1 %v6548_v13 }
 0x1cb   : > { %1962 = vst [vmem:[%s7324_s25 + $0x408] sm:$0xff] %v1440_v36  ;;  %1916 = vst [vmem:[%s7324_s25 + $0x298] sm:$0xff] %v1686_v35  ;;  %v7917_v52 = vpack.c.bf16 %v1686_v35, %v1683_v42  ;;  %v7919_v20 = vpack.c.bf16 %v1440_v36, %v1436_v61 }
 0x1cc   : > { %1963 = vst [vmem:[%s7324_s25 + $0x410] sm:$0xff] %v1442_v7  ;;  %v7925_v28 = vpack.c.bf16 %v1442_v7, %v1438_v40  ;;  %v6549_v40 = vld [vmem:[%s9816_s5 + $0x10] sm:$0xff]  }
 0x1cd   : > { %10016 = vst [vmem:[#allocation50_spill] sm:$0xff] %v7917_v52  ;;  %10017 = vst [vmem:[#allocation51_spill] sm:$0xff] %v7919_v20  ;;  %5929 = vmatmul.mubr.bf16.gmra.mrb[184].mxu1 %v7917_v52  ;;  %5972 = vmatprep.subr.bf16.mxu1 %v6549_v40 }
 0x1ce   : > { %10018 = vst [vmem:[#allocation52_spill] sm:$0xff] %v7925_v28  ;;  %v1445_v49 = vpop.f32.mrb[88].mxu0  ;;  %v1690_v14 = vpop.f32.mrb[88].mxu1  ;;  %2520 = vmatprep.mubr.bf16.mxu0 %v7925_v28  ;;  %5973 = vmatpush3.bf16.msra.mxu1 %v6549_v40  ;;  %v6550_v28 = vld [vmem:[%s9816_s5 + $0x18] sm:$0xff]  }
 0x1cf   : > { %v1446_v36 = vadd.f32 %v1445_v49, %v7315_v5  ;;  %v1691_v61 = vadd.f32 %v1690_v14, %v7241_v53  ;;  %v1447_v42 = vpop.f32.mrb[89].mxu0  ;;  %v1692_v17 = vpop.f32.mrb[89].mxu1  ;;  %2521 = vmatmul.mubr.bf16.gmra.mrb[180].mxu0 %v7919_v20  ;;  %5974 = vmatprep.subr.bf16.mxu1 %v6550_v28 }
 0x1d0   : > { %v1448_v35 = vadd.f32 %v1447_v42, %v7317_v6  ;;  %v1449_v51 = vpop.f32.mrb[90].mxu0  ;;  %v1693_v7 = vpop.f32.mrb[90].mxu1 }
 0x1d1   : > { %1965 = vst [vmem:[%s7324_s25 + $0x420] sm:$0xff] %v1446_v36  ;;  %1919 = vst [vmem:[%s7324_s25 + $0x2b0] sm:$0xff] %v1691_v61  ;;  %v1450_v13 = vadd.f32 %v1449_v51, %v7315_v5  ;;  %v1694_v49 = vadd.f32 %v1693_v7, %v7241_v53  ;;  %v1451_v14 = vpop.f32.mrb[91].mxu0  ;;  %v1695_v17 = vpop.f32.mrb[91].mxu1 }
 0x1d2   : > { %1966 = vst [vmem:[%s7324_s25 + $0x428] sm:$0xff] %v1448_v35  ;;  %v1452_v52 = vadd.f32 %v1451_v14, %v7317_v6  ;;  %5975 = vmatpush3.bf16.msra.mxu1 %v6550_v28 }
 0x1d3   : > { %1968 = vst [vmem:[%s7324_s25 + $0x438] sm:$0xff] %v1450_v13  ;;  %1922 = vst [vmem:[%s7324_s25 + $0x2c8] sm:$0xff] %v1694_v49  ;;  %v7944_v20 = vpack.c.bf16 %v1694_v49, %v1691_v61  ;;  %v7946_v42 = vpack.c.bf16 %v1450_v13, %v1446_v36 }
 0x1d4   : > { %1969 = vst [vmem:[%s7324_s25 + $0x440] sm:$0xff] %v1452_v52  ;;  %v7952_v51 = vpack.c.bf16 %v1452_v52, %v1448_v35  ;;  %v6551_v52 = vld [vmem:[%s9816_s5 + $0x20] sm:$0xff]  }
 0x1d5   : > { %10019 = vst [vmem:[#allocation53_spill] sm:$0xff] %v7944_v20  ;;  %10020 = vst [vmem:[#allocation54_spill] sm:$0xff] %v7946_v42  ;;  %5932 = vmatprep.mubr.bf16.mxu1 %v7944_v20  ;;  %5976 = vmatprep.subr.bf16.mxu1 %v6551_v52 }
 0x1d6   : > { %v1455_v7 = vpop.f32.mrb[92].mxu0  ;;  %v1698_v40 = vpop.f32.mrb[92].mxu1  ;;  %2528 = vmatprep.mubr.bf16.mxu0 %v7952_v51  ;;  %5977 = vmatpush3.bf16.msra.mxu1 %v6551_v52 }
 0x1d7   : > { %v1456_v36 = vadd.f32 %v1455_v7, %v7315_v5  ;;  %v1699_v61 = vadd.f32 %v1698_v40, %v7241_v53  ;;  %v1457_v13 = vpop.f32.mrb[93].mxu0  ;;  %v1700_v49 = vpop.f32.mrb[93].mxu1  ;;  %2529 = vmatmul.mubr.bf16.gmra.mrb[184].mxu0 %v7946_v42 }
 0x1d8   : > { %v1458_v35 = vadd.f32 %v1457_v13, %v7317_v6  ;;  %v1459_v14 = vpop.f32.mrb[94].mxu0  ;;  %v1701_v17 = vpop.f32.mrb[94].mxu1 }
 0x1d9   : > { %1971 = vst [vmem:[%s7324_s25 + $0x450] sm:$0xff] %v1456_v36  ;;  %1925 = vst [vmem:[%s7324_s25 + $0x2e0] sm:$0xff] %v1699_v61  ;;  %v1460_v28 = vadd.f32 %v1459_v14, %v7315_v5  ;;  %v1702_v7 = vadd.f32 %v1701_v17, %v7241_v53  ;;  %v1461_v40 = vpop.f32.mrb[95].mxu0  ;;  %v1703_v49 = vpop.f32.mrb[95].mxu1  ;;  %v6552_v5 = vld [vmem:[%s9816_s5 + $0x28] sm:$0xff]  }
 0x1da   : > { %1972 = vst [vmem:[%s7324_s25 + $0x458] sm:$0xff] %v1458_v35  ;;  %v1462_v20 = vadd.f32 %v1461_v40, %v7317_v6  ;;  %5978 = vmatprep.subr.bf16.mxu1 %v6552_v5 }
 0x1db   : > { %1974 = vst [vmem:[%s7324_s25 + $0x468] sm:$0xff] %v1460_v28  ;;  %1928 = vst [vmem:[%s7324_s25 + $0x2f8] sm:$0xff] %v1702_v7  ;;  %v7971_v42 = vpack.c.bf16 %v1702_v7, %v1699_v61  ;;  %v7973_v13 = vpack.c.bf16 %v1460_v28, %v1456_v36  ;;  %5979 = vmatpush3.bf16.msra.mxu1 %v6552_v5  ;;  %v6553_v36 = vld [vmem:[%s9816_s5 + $0x30] sm:$0xff]   ;;  %v6554_v7 = vld [vmem:[%s9816_s5 + $0x38] sm:$0xff]  }
 0x1dc   : > { %1975 = vst [vmem:[%s7324_s25 + $0x470] sm:$0xff] %v1462_v20  ;;  %v7979_v14 = vpack.c.bf16 %v1462_v20, %v1458_v35  ;;  %5980 = vmatprep.subr.bf16.mxu1 %v6553_v36 }
 0x1dd   : > { %10021 = vst [vmem:[#allocation55_spill] sm:$0xff] %v7971_v42  ;;  %5933 = vmatmul.mubr.bf16.gmra.mrb[188].mxu1 %v7971_v42 }
 0x1de   : > { %v1706_v6 = vpop.f32.mrb[96].mxu1  ;;  %2536 = vmatprep.mubr.bf16.mxu0 %v7979_v14 }
 0x1df   : > { %v1707_v61 = vadd.f32 %v1706_v6, %v7241_v53  ;;  %v1708_v52 = vpop.f32.mrb[97].mxu1  ;;  %2537 = vmatmul.mubr.bf16.gmra.mrb[188].mxu0 %v7973_v13  ;;  %5981 = vmatpush3.bf16.msra.mxu1 %v6553_v36 }
 0x1e0   : > { %v1709_v17 = vpop.f32.mrb[98].mxu1  ;;  %2544 = vmatprep.mubr.bf16.mxu0 %v7347_v26  ;;  %5982 = vmatprep.subr.bf16.mxu1 %v6554_v7 }
 0x1e1   : > { %1931 = vst [vmem:[%s7324_s25 + $0x310] sm:$0xff] %v1707_v61  ;;  %v1710_v20 = vadd.f32 %v1709_v17, %v7241_v53  ;;  %v1711_v35 = vpop.f32.mrb[99].mxu1 }
 0x1e3   : > { %1934 = vst [vmem:[%s7324_s25 + $0x328] sm:$0xff] %v1710_v20  ;;  %v7992_v28 = vpack.c.bf16 %v1710_v20, %v1707_v61  ;;  %5983 = vmatpush3.bf16.msra.mxu1 %v6554_v7 }
 0x1e5   : > { %10022 = vst [vmem:[#allocation56_spill] sm:$0xff] %v7992_v28  ;;  %5936 = vmatprep.mubr.bf16.mxu1 %v7992_v28 }
 0x1e6   : > { %v1714_v40 = vpop.f32.mrb[100].mxu1 }
 0x1e7   : > { %v1715_v49 = vadd.f32 %v1714_v40, %v7241_v53  ;;  %v1716_v5 = vpop.f32.mrb[101].mxu1  ;;  %2545 = vmatmul.mubr.bf16.gmra.mrb[192].mxu0 %v7339_v24 }
 0x1e8   : > { %v1717_v6 = vpop.f32.mrb[102].mxu1  ;;  %2552 = vmatprep.mubr.bf16.mxu0 %v7376_v47 }
 0x1e9   : > { %1937 = vst [vmem:[%s7324_s25 + $0x340] sm:$0xff] %v1715_v49  ;;  %v1718_v61 = vadd.f32 %v1717_v6, %v7241_v53  ;;  %v1719_v52 = vpop.f32.mrb[103].mxu1 }
 0x1eb   : > { %1940 = vst [vmem:[%s7324_s25 + $0x358] sm:$0xff] %v1718_v61  ;;  %v8004_v36 = vpack.c.bf16 %v1718_v61, %v1715_v49 }
 0x1ed   : > { %10023 = vst [vmem:[#allocation57_spill] sm:$0xff] %v8004_v36  ;;  %5937 = vmatmul.mubr.bf16.gmra.mrb[192].mxu1 %v8004_v36 }
 0x1ee   : > { %v1722_v17 = vpop.f32.mrb[104].mxu1 }
 0x1ef   : > { %v1723_v20 = vadd.f32 %v1722_v17, %v7241_v53  ;;  %v1724_v35 = vpop.f32.mrb[105].mxu1  ;;  %2553 = vmatmul.mubr.bf16.gmra.mrb[196].mxu0 %v7368_v45 }
 0x1f0   : > { %v1725_v7 = vpop.f32.mrb[106].mxu1  ;;  %2560 = vmatprep.mubr.bf16.mxu0 %v7405_v12 }
 0x1f1   : > { %1943 = vst [vmem:[%s7324_s25 + $0x370] sm:$0xff] %v1723_v20  ;;  %v1726_v40 = vadd.f32 %v1725_v7, %v7241_v53  ;;  %v1727_v5 = vpop.f32.mrb[107].mxu1 }
 0x1f3   : > { %1946 = vst [vmem:[%s7324_s25 + $0x388] sm:$0xff] %v1726_v40  ;;  %v8013_v49 = vpack.c.bf16 %v1726_v40, %v1723_v20 }
 0x1f5   : > { %10024 = vst [vmem:[#allocation58_spill] sm:$0xff] %v8013_v49  ;;  %5940 = vmatprep.mubr.bf16.mxu1 %v8013_v49 }
 0x1f6   : > { %v1730_v6 = vpop.f32.mrb[108].mxu1 }
 0x1f7   : > { %v1731_v61 = vadd.f32 %v1730_v6, %v7241_v53  ;;  %v1732_v52 = vpop.f32.mrb[109].mxu1  ;;  %2561 = vmatmul.mubr.bf16.gmra.mrb[200].mxu0 %v7397_v9 }
 0x1f8   : > { %v1733_v17 = vpop.f32.mrb[110].mxu1  ;;  %2568 = vmatprep.mubr.bf16.mxu0 %v7434_v34 }
 0x1f9   : > { %1949 = vst [vmem:[%s7324_s25 + $0x3a0] sm:$0xff] %v1731_v61  ;;  %v1734_v35 = vadd.f32 %v1733_v17, %v7241_v53  ;;  %v1735_v7 = vpop.f32.mrb[111].mxu1 }
 0x1fa   : > { %v8021_v5 = vpop.f32.mrb[96].mxu0 }
 0x1fb   : > { %1952 = vst [vmem:[%s7324_s25 + $0x3b8] sm:$0xff] %v1734_v35  ;;  %v8024_v20 = vpack.c.bf16 %v1734_v35, %v1731_v61  ;;  %v2356_v40 = vpop.f32.mrb[97].mxu0 }
 0x1fc   : > { %v8026_v49 = vpop.f32.mrb[98].mxu0 }
 0x1fd   : > { %10025 = vst [vmem:[#allocation59_spill] sm:$0xff] %v8024_v20  ;;  %5941 = vmatmul.mubr.bf16.gmra.mrb[196].mxu1 %v8024_v20  ;;  %v2359_v6 = vpop.f32.mrb[99].mxu0 }
 0x1fe   : > { %v1738_v52 = vpop.f32.mrb[112].mxu1 }
 0x1ff   : > { %v1739_v36 = vadd.f32 %v1738_v52, %v7241_v53  ;;  %v1740_v28 = vpop.f32.mrb[113].mxu1  ;;  %2569 = vmatmul.mubr.bf16.gmra.mrb[204].mxu0 %v7426_v32 }
 0x200   : > { %v1741_v17 = vpop.f32.mrb[114].mxu1  ;;  %2576 = vmatprep.mubr.bf16.mxu0 %v7466_v63 }
 0x201   : > { %1955 = vst [vmem:[%s7324_s25 + $0x3d0] sm:$0xff] %v1739_v36  ;;  %v1742_v61 = vadd.f32 %v1741_v17, %v7241_v53  ;;  %v1743_v35 = vpop.f32.mrb[115].mxu1 }
 0x202   : > { %v8034_v7 = vpop.f32.mrb[100].mxu0 }
 0x203   : > { %1958 = vst [vmem:[%s7324_s25 + $0x3e8] sm:$0xff] %v1742_v61  ;;  %v8037_v40 = vpack.c.bf16 %v1742_v61, %v1739_v36  ;;  %v2364_v6 = vpop.f32.mrb[101].mxu0 }
 0x204   : > { %v8039_v20 = vpop.f32.mrb[102].mxu0 }
 0x205   : > { %10026 = vst [vmem:[#allocation60_spill] sm:$0xff] %v8037_v40  ;;  %5944 = vmatprep.mubr.bf16.mxu1 %v8037_v40  ;;  %v2367_v28 = vpop.f32.mrb[103].mxu0 }
 0x206   : > { %v1746_v52 = vpop.f32.mrb[116].mxu1 }
 0x207   : > { %v1747_v42 = vadd.f32 %v1746_v52, %v7241_v53  ;;  %v1748_v63 = vpop.f32.mrb[117].mxu1  ;;  %2577 = vmatmul.mubr.bf16.gmra.mrb[208].mxu0 %v7455_v55 }
 0x208   : > { %v1749_v17 = vpop.f32.mrb[118].mxu1  ;;  %2584 = vmatprep.mubr.bf16.mxu0 %v7496_v29 }
 0x209   : > { %1961 = vst [vmem:[%s7324_s25 + $0x400] sm:$0xff] %v1747_v42  ;;  %v1750_v36 = vadd.f32 %v1749_v17, %v7241_v53  ;;  %v1751_v61 = vpop.f32.mrb[119].mxu1 }
 0x20a   : > { %v8047_v35 = vpop.f32.mrb[104].mxu0 }
 0x20b   : > { %1964 = vst [vmem:[%s7324_s25 + $0x418] sm:$0xff] %v1750_v36  ;;  %v8050_v6 = vpack.c.bf16 %v1750_v36, %v1747_v42  ;;  %v2372_v28 = vpop.f32.mrb[105].mxu0 }
 0x20c   : > { %v8052_v40 = vpop.f32.mrb[106].mxu0 }
 0x20d   : > { %10027 = vst [vmem:[#allocation61_spill] sm:$0xff] %v8050_v6  ;;  %5945 = vmatmul.mubr.bf16.gmra.mrb[200].mxu1 %v8050_v6  ;;  %v2375_v63 = vpop.f32.mrb[107].mxu0 }
 0x20e   : > { %v1754_v52 = vpop.f32.mrb[120].mxu1 }
 0x20f   : > { %v1755_v29 = vadd.f32 %v1754_v52, %v7241_v53  ;;  %v1756_v55 = vpop.f32.mrb[121].mxu1  ;;  %2585 = vmatmul.mubr.bf16.gmra.mrb[212].mxu0 %v7488_v22 }
 0x210   : > { %v1757_v17 = vpop.f32.mrb[122].mxu1  ;;  %2592 = vmatprep.mubr.bf16.mxu0 %v7528_v4 }
 0x211   : > { %1967 = vst [vmem:[%s7324_s25 + $0x430] sm:$0xff] %v1755_v29  ;;  %v1758_v42 = vadd.f32 %v1757_v17, %v7241_v53  ;;  %v1759_v36 = vpop.f32.mrb[123].mxu1 }
 0x212   : > { %v8060_v61 = vpop.f32.mrb[108].mxu0 }
 0x213   : > { %1970 = vst [vmem:[%s7324_s25 + $0x448] sm:$0xff] %v1758_v42  ;;  %v8063_v28 = vpack.c.bf16 %v1758_v42, %v1755_v29  ;;  %v2380_v63 = vpop.f32.mrb[109].mxu0 }
 0x214   : > { %v8065_v6 = vpop.f32.mrb[110].mxu0 }
 0x215   : > { %10028 = vst [vmem:[#allocation62_spill] sm:$0xff] %v8063_v28  ;;  %5948 = vmatprep.mubr.bf16.mxu1 %v8063_v28  ;;  %v2383_v55 = vpop.f32.mrb[111].mxu0 }
 0x216   : > { %v1762_v52 = vpop.f32.mrb[124].mxu1 }
 0x217   : > { %v1763_v4 = vadd.f32 %v1762_v52, %v7241_v53  ;;  %v1764_v22 = vpop.f32.mrb[125].mxu1  ;;  %2593 = vmatmul.mubr.bf16.gmra.mrb[216].mxu0 %v7517_v0 }
 0x218   : > { %v1765_v17 = vpop.f32.mrb[126].mxu1  ;;  %2600 = vmatprep.mubr.bf16.mxu0 %v7558_v41 }
 0x219   : > { %1973 = vst [vmem:[%s7324_s25 + $0x460] sm:$0xff] %v1763_v4  ;;  %v1766_v29 = vadd.f32 %v1765_v17, %v7241_v53  ;;  %v1767_v42 = vpop.f32.mrb[127].mxu1 }
 0x21a   : > { %v8073_v36 = vpop.f32.mrb[112].mxu0 }
 0x21b   : > { %1976 = vst [vmem:[%s7324_s25 + $0x478] sm:$0xff] %v1766_v29  ;;  %v8076_v63 = vpack.c.bf16 %v1766_v29, %v1763_v4  ;;  %v2388_v55 = vpop.f32.mrb[113].mxu0 }
 0x21c   : > { %v8078_v28 = vpop.f32.mrb[114].mxu0 }
 0x21d   : > { %10029 = vst [vmem:[#allocation63_spill] sm:$0xff] %v8076_v63  ;;  %5949 = vmatmul.mubr.bf16.gmra.mrb[204].mxu1 %v8076_v63  ;;  %v2391_v22 = vpop.f32.mrb[115].mxu0 }
 0x21e   : > { %v1770_v52 = vpop.f32.mrb[128].mxu1 }
 0x21f   : > { %v1771_v41 = vadd.f32 %v1770_v52, %v7241_v53  ;;  %v1772_v0 = vpop.f32.mrb[129].mxu1  ;;  %2601 = vmatmul.mubr.bf16.gmra.mrb[220].mxu0 %v7550_v39 }
 0x220   : > { %v1773_v17 = vpop.f32.mrb[130].mxu1  ;;  %3585 = vmatprep.mubr.bf16.mxu0 %v7343_v25 }
 0x221   : > { %1979 = vst [vmem:[%s7324_s25 + $0x490] sm:$0xff] %v1771_v41  ;;  %v1774_v4 = vadd.f32 %v1773_v17, %v7241_v53  ;;  %v1775_v29 = vpop.f32.mrb[131].mxu1 }
 0x222   : > { %v8086_v42 = vpop.f32.mrb[116].mxu0 }
 0x223   : > { %1982 = vst [vmem:[%s7324_s25 + $0x4a8] sm:$0xff] %v1774_v4  ;;  %v8089_v55 = vpack.c.bf16 %v1774_v4, %v1771_v41  ;;  %v2396_v22 = vpop.f32.mrb[117].mxu0 }
 0x224   : > { %v8091_v63 = vpop.f32.mrb[118].mxu0 }
 0x225   : > { %10030 = vst [vmem:[#allocation64_spill] sm:$0xff] %v8089_v55  ;;  %5952 = vmatprep.mubr.bf16.mxu1 %v8089_v55  ;;  %v2399_v0 = vpop.f32.mrb[119].mxu0 }
 0x226   : > { %v1778_v52 = vpop.f32.mrb[132].mxu1 }
 0x227   : > { %v1779_v25 = vadd.f32 %v1778_v52, %v7241_v53  ;;  %v1780_v39 = vpop.f32.mrb[133].mxu1  ;;  %3586 = vmatmul.mubr.bf16.vlgmr.msra.gmra.mrb[224].mxu0 %v7335_v23 }
 0x228   : > { %v1781_v17 = vpop.f32.mrb[134].mxu1  ;;  %3593 = vmatprep.mubr.bf16.mxu0 %v7372_v46 }
 0x229   : > { %1985 = vst [vmem:[%s7324_s25 + $0x4c0] sm:$0xff] %v1779_v25  ;;  %v1782_v41 = vadd.f32 %v1781_v17, %v7241_v53  ;;  %v1783_v4 = vpop.f32.mrb[135].mxu1 }
 0x22a   : > { %v8099_v29 = vpop.f32.mrb[120].mxu0 }
 0x22b   : > { %1988 = vst [vmem:[%s7324_s25 + $0x4d8] sm:$0xff] %v1782_v41  ;;  %v8102_v22 = vpack.c.bf16 %v1782_v41, %v1779_v25  ;;  %v2404_v0 = vpop.f32.mrb[121].mxu0 }
 0x22c   : > { %v8104_v55 = vpop.f32.mrb[122].mxu0 }
 0x22d   : > { %10031 = vst [vmem:[#allocation65_spill] sm:$0xff] %v8102_v22  ;;  %5953 = vmatmul.mubr.bf16.gmra.mrb[208].mxu1 %v8102_v22  ;;  %v2407_v23 = vpop.f32.mrb[123].mxu0 }
 0x22e   : > { %v1786_v39 = vpop.f32.mrb[136].mxu1 }
 0x22f   : > { %v1787_v46 = vadd.f32 %v1786_v39, %v7241_v53  ;;  %v1788_v52 = vpop.f32.mrb[137].mxu1  ;;  %3594 = vmatmul.mubr.bf16.gmra.mrb[228].mxu0 %v7366_v44 }
 0x230   : > { %v1789_v17 = vpop.f32.mrb[138].mxu1  ;;  %3601 = vmatprep.mubr.bf16.mxu0 %v7401_v10 }
 0x231   : > { %1991 = vst [vmem:[%s7324_s25 + $0x4f0] sm:$0xff] %v1787_v46  ;;  %v1790_v25 = vadd.f32 %v1789_v17, %v7241_v53  ;;  %v1791_v41 = vpop.f32.mrb[139].mxu1 }
 0x232   : > { %v8112_v4 = vpop.f32.mrb[124].mxu0 }
 0x233   : > { %1994 = vst [vmem:[%s7324_s25 + $0x508] sm:$0xff] %v1790_v25  ;;  %v8115_v0 = vpack.c.bf16 %v1790_v25, %v1787_v46  ;;  %v2412_v23 = vpop.f32.mrb[125].mxu0 }
 0x234   : > { %v8117_v22 = vpop.f32.mrb[126].mxu0 }
 0x235   : > { %10032 = vst [vmem:[#allocation66_spill] sm:$0xff] %v8115_v0  ;;  %5956 = vmatprep.mubr.bf16.mxu1 %v8115_v0  ;;  %v2415_v44 = vpop.f32.mrb[127].mxu0 }
 0x236   : > { %v1794_v39 = vpop.f32.mrb[140].mxu1 }
 0x237   : > { %v1795_v10 = vadd.f32 %v1794_v39, %v7241_v53  ;;  %v1796_v52 = vpop.f32.mrb[141].mxu1  ;;  %3602 = vmatmul.mubr.bf16.gmra.mrb[232].mxu0 %v7395_v8 }
 0x238   : > { %v1797_v17 = vpop.f32.mrb[142].mxu1  ;;  %3609 = vmatprep.mubr.bf16.mxu0 %v7430_v33 }
 0x239   : > { %1997 = vst [vmem:[%s7324_s25 + $0x520] sm:$0xff] %v1795_v10  ;;  %v1798_v46 = vadd.f32 %v1797_v17, %v7241_v53  ;;  %v1799_v25 = vpop.f32.mrb[143].mxu1 }
 0x23a   : > { %v8125_v41 = vpop.f32.mrb[128].mxu0 }
 0x23b   : > { %2000 = vst [vmem:[%s7324_s25 + $0x538] sm:$0xff] %v1798_v46  ;;  %v8128_v23 = vpack.c.bf16 %v1798_v46, %v1795_v10  ;;  %v2420_v44 = vpop.f32.mrb[129].mxu0 }
 0x23c   : > { %v8130_v0 = vpop.f32.mrb[130].mxu0 }
 0x23d   : > { %10033 = vst [vmem:[#allocation67_spill] sm:$0xff] %v8128_v23  ;;  %5957 = vmatmul.mubr.bf16.gmra.mrb[212].mxu1 %v8128_v23  ;;  %v2423_v8 = vpop.f32.mrb[131].mxu0 }
 0x23e   : > { %v1802_v39 = vpop.f32.mrb[144].mxu1 }
 0x23f   : > { %v1803_v33 = vadd.f32 %v1802_v39, %v7241_v53  ;;  %v1804_v52 = vpop.f32.mrb[145].mxu1  ;;  %3610 = vmatmul.mubr.bf16.gmra.mrb[236].mxu0 %v7424_v31 }
 0x240   : > { %v1805_v17 = vpop.f32.mrb[146].mxu1  ;;  %3617 = vmatprep.mubr.bf16.mxu0 %v7459_v56 }
 0x241   : > { %2003 = vst [vmem:[%s7324_s25 + $0x550] sm:$0xff] %v1803_v33  ;;  %v1806_v25 = vadd.f32 %v1805_v17, %v7241_v53  ;;  %v1807_v10 = vpop.f32.mrb[147].mxu1 }
 0x242   : > { %v8138_v46 = vpop.f32.mrb[132].mxu0 }
 0x243   : > { %2006 = vst [vmem:[%s7324_s25 + $0x568] sm:$0xff] %v1806_v25  ;;  %v8141_v44 = vpack.c.bf16 %v1806_v25, %v1803_v33  ;;  %v2428_v8 = vpop.f32.mrb[133].mxu0  ;;  %v8152_v33 = vld [vmem:[%s9818_s7 + $0x80] sm:$0xff]  }
 0x244   : > { %v8143_v23 = vpop.f32.mrb[134].mxu0  ;;  %6048 = vmatprep.subr.bf16.mxu1 %v8152_v33 }
 0x245   : > { %10034 = vst [vmem:[#allocation68_spill] sm:$0xff] %v8141_v44  ;;  %5960 = vmatprep.mubr.bf16.mxu1 %v8141_v44  ;;  %v2431_v31 = vpop.f32.mrb[135].mxu0 }
 0x246   : > { %v1810_v39 = vpop.f32.mrb[148].mxu1 }
 0x247   : > { %v1811_v56 = vadd.f32 %v1810_v39, %v7241_v53  ;;  %v1812_v52 = vpop.f32.mrb[149].mxu1  ;;  %3618 = vmatmul.mubr.bf16.gmra.mrb[240].mxu0 %v7453_v54 }
 0x248   : > { %v1813_v17 = vpop.f32.mrb[150].mxu1  ;;  %3625 = vmatprep.mubr.bf16.mxu0 %v7492_v27 }
 0x249   : > { %2009 = vst [vmem:[%s7324_s25 + $0x580] sm:$0xff] %v1811_v56  ;;  %v1814_v25 = vadd.f32 %v1813_v17, %v7241_v53  ;;  %v1815_v10 = vpop.f32.mrb[151].mxu1 }
 0x24a   : > { %v8156_v8 = vpop.f32.mrb[136].mxu0 }
 0x24b   : > { %2012 = vst [vmem:[%s7324_s25 + $0x598] sm:$0xff] %v1814_v25  ;;  %v8160_v54 = vpack.c.bf16 %v1814_v25, %v1811_v56  ;;  %v2436_v31 = vpop.f32.mrb[137].mxu0 }
 0x24c   : > { %v8162_v27 = vpop.f32.mrb[138].mxu0 }
 0x24d   : > { %10035 = vst [vmem:[#allocation69_spill] sm:$0xff] %v8160_v54  ;;  %5961 = vmatmul.mubr.bf16.gmra.mrb[216].mxu1 %v8160_v54  ;;  %v2439_v39 = vpop.f32.mrb[139].mxu0 }
 0x24e   : > { %v1818_v52 = vpop.f32.mrb[152].mxu1 }
 0x24f   : > { %v1819_v44 = vadd.f32 %v1818_v52, %v7241_v53  ;;  %v1820_v17 = vpop.f32.mrb[153].mxu1  ;;  %3626 = vmatmul.mubr.bf16.gmra.mrb[244].mxu0 %v7486_v21 }
 0x250   : > { %v1821_v10 = vpop.f32.mrb[154].mxu1  ;;  %3633 = vmatprep.mubr.bf16.mxu0 %v7521_v1 }
 0x251   : > { %2015 = vst [vmem:[%s7324_s25 + $0x5b0] sm:$0xff] %v1819_v44  ;;  %v1822_v56 = vadd.f32 %v1821_v10, %v7241_v53  ;;  %v1823_v25 = vpop.f32.mrb[155].mxu1 }
 0x252   : > { %v8170_v31 = vpop.f32.mrb[140].mxu0 }
 0x253   : > { %2018 = vst [vmem:[%s7324_s25 + $0x5c8] sm:$0xff] %v1822_v56  ;;  %v8173_v54 = vpack.c.bf16 %v1822_v56, %v1819_v44  ;;  %v2444_v39 = vpop.f32.mrb[141].mxu0 }
 0x254   : > { %v8175_v32 = vpop.f32.mrb[142].mxu0 }
 0x255   : > { %10036 = vst [vmem:[#allocation70_spill] sm:$0xff] %v8173_v54  ;;  %5964 = vmatprep.mubr.bf16.mxu1 %v8173_v54  ;;  %v2447_v21 = vpop.f32.mrb[143].mxu0 }
 0x256   : > { %v1826_v52 = vpop.f32.mrb[156].mxu1  ;;  %v8191_v21 = vld [vmem:[%s9815_s4] ss:$0 sm:$0xff] }
 0x257   : > { %v1827_v1 = vadd.f32 %v1826_v52, %v7241_v53  ;;  %v1828_v17 = vpop.f32.mrb[157].mxu1  ;;  %3634 = vmatmul.mubr.bf16.gmra.mrb[248].mxu0 %v7515_v58  ;;  %v2363_v58 = vadd.f32 %v8191_v21, %v8034_v7 }
 0x258   : > { %v1829_v10 = vpop.f32.mrb[158].mxu1  ;;  %3641 = vmatprep.mubr.bf16.mxu0 %v7554_v62 }
 0x259   : > { %2021 = vst [vmem:[%s7324_s25 + $0x5e0] sm:$0xff] %v1827_v1  ;;  %v1830_v25 = vadd.f32 %v1829_v10, %v7241_v53  ;;  %v1831_v44 = vpop.f32.mrb[159].mxu1  ;;  %v2355_v10 = vadd.f32 %v8191_v21, %v8021_v5 }
 0x25a   : > { %v8183_v56 = vpop.f32.mrb[144].mxu0  ;;  %v2366_v44 = vadd.f32 %v8191_v21, %v8039_v20 }
 0x25b   : > { %2024 = vst [vmem:[%s7324_s25 + $0x5f8] sm:$0xff] %v1830_v25  ;;  %v8186_v39 = vpack.c.bf16 %v1830_v25, %v1827_v1  ;;  %v2452_v52 = vpop.f32.mrb[145].mxu0 }
 0x25c   : > { %v8193_v17 = vpop.f32.mrb[146].mxu0 }
 0x25d   : > { %10037 = vst [vmem:[#allocation71_spill] sm:$0xff] %v8186_v39  ;;  %5965 = vmatmul.mubr.bf16.gmra.mrb[220].mxu1 %v8186_v39  ;;  %v2455_v53 = vpop.f32.mrb[147].mxu0  ;;  %v2358_v39 = vadd.f32 %v8191_v21, %v8026_v49  ;;  %v2371_v49 = vadd.f32 %v8191_v21, %v8047_v35 }
 0x25e   : > { %v5906_v62 = vpop.f32.mrb[160].mxu1 }
 0x25f   : > { %v2652_v1 = vadd.f32 %v5906_v62, %v2363_v58  ;;  %v2643_v25 = vpop.f32.mrb[161].mxu1  ;;  %3642 = vmatmul.mubr.bf16.gmra.mrb[252].mxu0 %v7548_v38 }
 0x260   : > { %v2644_v52 = vadd.f32 %v2643_v25, %v2355_v10  ;;  %v5907_v54 = vpop.f32.mrb[162].mxu1  ;;  %3649 = vmatprep.mubr.bf16.mxu0 %v7582_v18  ;;  %v2379_v10 = vadd.f32 %v8191_v21, %v8060_v61 }
 0x261   : > { %v2655_v7 = vadd.f32 %v5907_v54, %v2366_v44  ;;  %v2646_v53 = vpop.f32.mrb[163].mxu1  ;;  %v2900_v5 = vmax.f32 %v2652_v1, 0.0  ;;  %v2382_v1 = vadd.f32 %v8191_v21, %v8065_v6 }
 0x262   : > { %v2647_v34 = vadd.f32 %v2646_v53, %v2358_v39  ;;  %v8206_v9 = vpop.f32.mrb[148].mxu0  ;;  %v2898_v12 = vmax.f32 %v2644_v52, 0.0 }
 0x263   : > { %v2901_v58 = vmax.f32 %v2655_v7, 0.0  ;;  %v2460_v62 = vpop.f32.mrb[149].mxu0 }
 0x264   : > { %v2899_v38 = vmax.f32 %v2647_v34, 0.0  ;;  %v8208_v45 = vpop.f32.mrb[150].mxu0  ;;  %v6556_v34 = vld [vmem:[%s9818_s7 + $0x88] sm:$0xff]  }
 0x265   : > { %v2963_v20 = vpack.c.bf16 %v2901_v58, %v2900_v5  ;;  %v2463_v18 = vpop.f32.mrb[151].mxu0  ;;  %v6557_v5 = vld [vmem:[%s9818_s7 + $0x90] sm:$0xff]  }
 0x266   : > { %v2962_v25 = vpack.c.bf16 %v2899_v38, %v2898_v12  ;;  %v5910_v47 = vpop.f32.mrb[164].mxu1  ;;  %v2374_v12 = vadd.f32 %v8191_v21, %v8052_v40  ;;  %v2395_v38 = vadd.f32 %v8191_v21, %v8086_v42  ;;  %v2390_v42 = vadd.f32 %v8191_v21, %v8078_v28 }
 0x267   : > { %v2668_v54 = vadd.f32 %v5910_v47, %v2379_v10  ;;  %v2659_v39 = vpop.f32.mrb[165].mxu1  ;;  %3650 = vmatmul.mubr.bf16.gmra.mrb[0].mxu0 %v7574_v16 }
 0x268   : > { %v2660_v44 = vadd.f32 %v2659_v39, %v2371_v49  ;;  %v5911_v52 = vpop.f32.mrb[166].mxu1  ;;  %5984 = vmatprep.mubr.bf16.mxu1 %v2962_v25  ;;  %3657 = vmatprep.mubr.bf16.mxu0 %v7606_v3 }
 0x269   : > { %v2671_v35 = vadd.f32 %v5911_v52, %v2382_v1  ;;  %v2662_v47 = vpop.f32.mrb[167].mxu1  ;;  %5985 = vmatmul.mubr.bf16.vlgmr.msra.gmra.mrb[224].mxu1 %v2963_v20  ;;  %v2904_v6 = vmax.f32 %v2668_v54, 0.0  ;;  %v2398_v54 = vadd.f32 %v8191_v21, %v8091_v63 }
 0x26a   : > { %v2663_v61 = vadd.f32 %v2662_v47, %v2374_v12  ;;  %v8223_v16 = vpop.f32.mrb[152].mxu0  ;;  %6049 = vmatpush3.bf16.msra.mxu1 %v8152_v33  ;;  %v2902_v3 = vmax.f32 %v2660_v44, 0.0  ;;  %v2387_v33 = vadd.f32 %v8191_v21, %v8073_v36 }
 0x26b   : > { %v2905_v7 = vmax.f32 %v2671_v35, 0.0  ;;  %v2468_v53 = vpop.f32.mrb[153].mxu0  ;;  %6050 = vmatprep.subr.bf16.mxu1 %v6556_v34 }
 0x26c   : > { %v2903_v58 = vmax.f32 %v2663_v61, 0.0  ;;  %v8229_v62 = vpop.f32.mrb[154].mxu0 }
 0x26d   : > { %v2965_v40 = vpack.c.bf16 %v2905_v7, %v2904_v6  ;;  %v2471_v20 = vpop.f32.mrb[155].mxu0 }
 0x26e   : > { %v2964_v10 = vpack.c.bf16 %v2903_v58, %v2902_v3  ;;  %v5914_v18 = vpop.f32.mrb[168].mxu1  ;;  %6051 = vmatpush3.bf16.msra.mxu1 %v6556_v34  ;;  %v2403_v3 = vadd.f32 %v8191_v21, %v8099_v29 }
 0x26f   : > { %v2684_v25 = vadd.f32 %v5914_v18, %v2395_v38  ;;  %v2675_v49 = vpop.f32.mrb[169].mxu1  ;;  %3658 = vmatmul.mubr.bf16.gmra.mrb[4].mxu0 %v7603_v2  ;;  %6052 = vmatprep.subr.bf16.mxu1 %v6557_v5 }
 0x270   : > { %v2676_v39 = vadd.f32 %v2675_v49, %v2387_v33  ;;  %v5915_v1 = vpop.f32.mrb[170].mxu1  ;;  %5988 = vmatprep.mubr.bf16.mxu1 %v2964_v10  ;;  %3665 = vmatprep.mubr.bf16.mxu0 %v7632_v50  ;;  %v2411_v50 = vadd.f32 %v8191_v21, %v8112_v4  ;;  %v2406_v4 = vadd.f32 %v8191_v21, %v8104_v55  ;;  %v6558_v10 = vld [vmem:[%s9818_s7 + $0x98] sm:$0xff]  }
 0x271   : > { %v2687_v44 = vadd.f32 %v5915_v1, %v2398_v54  ;;  %v2678_v52 = vpop.f32.mrb[171].mxu1  ;;  %5989 = vmatmul.mubr.bf16.gmra.mrb[228].mxu1 %v2965_v40  ;;  %v2908_v2 = vmax.f32 %v2684_v25, 0.0 }
 0x272   : > { %v2679_v36 = vadd.f32 %v2678_v52, %v2390_v42  ;;  %v8241_v34 = vpop.f32.mrb[156].mxu0  ;;  %6053 = vmatpush3.bf16.msra.mxu1 %v6557_v5  ;;  %v2906_v63 = vmax.f32 %v2676_v39, 0.0  ;;  %v2414_v5 = vadd.f32 %v8191_v21, %v8117_v22 }
 0x273   : > { %v2909_v12 = vmax.f32 %v2687_v44, 0.0  ;;  %v2476_v35 = vpop.f32.mrb[157].mxu0  ;;  %6054 = vmatprep.subr.bf16.mxu1 %v6558_v10  ;;  %v2427_v44 = vadd.f32 %v8191_v21, %v8138_v46 }
 0x274   : > { %v2907_v47 = vmax.f32 %v2679_v36, 0.0  ;;  %v8243_v61 = vpop.f32.mrb[158].mxu0  ;;  %v2419_v36 = vadd.f32 %v8191_v21, %v8125_v41  ;;  %v2430_v35 = vadd.f32 %v8191_v21, %v8143_v23 }
 0x275   : > { %v2967_v6 = vpack.c.bf16 %v2909_v12, %v2908_v2  ;;  %v2479_v7 = vpop.f32.mrb[159].mxu0 }
 0x276   : > { %v2966_v28 = vpack.c.bf16 %v2907_v47, %v2906_v63  ;;  %v5918_v53 = vpop.f32.mrb[172].mxu1  ;;  %6055 = vmatpush3.bf16.msra.mxu1 %v6558_v10 }
 0x277   : > { %v2700_v58 = vadd.f32 %v5918_v53, %v2411_v50  ;;  %v2691_v40 = vpop.f32.mrb[173].mxu1  ;;  %3666 = vmatmul.mubr.bf16.gmra.mrb[8].mxu0 %v7627_v48 }
 0x278   : > { %v2692_v38 = vadd.f32 %v2691_v40, %v2403_v3  ;;  %v5919_v20 = vpop.f32.mrb[174].mxu1  ;;  %5992 = vmatprep.mubr.bf16.mxu1 %v2966_v28  ;;  %3673 = vmatprep.mubr.bf16.mxu0 %v7663_v57 }
 0x279   : > { %v2703_v29 = vadd.f32 %v5919_v20, %v2414_v5  ;;  %v2694_v18 = vpop.f32.mrb[175].mxu1  ;;  %5993 = vmatmul.mubr.bf16.gmra.mrb[232].mxu1 %v2967_v6  ;;  %v2912_v22 = vmax.f32 %v2700_v58, 0.0 }
 0x27a   : > { %v2695_v33 = vadd.f32 %v2694_v18, %v2406_v4  ;;  %v8258_v48 = vpop.f32.mrb[160].mxu0  ;;  %v2910_v54 = vmax.f32 %v2692_v38, 0.0 }
 0x27b   : > { %v2913_v25 = vmax.f32 %v2703_v29, 0.0  ;;  %v2484_v49 = vpop.f32.mrb[161].mxu0  ;;  %v2435_v29 = vadd.f32 %v8191_v21, %v8156_v8 }
 0x27c   : > { %v2911_v57 = vmax.f32 %v2695_v33, 0.0  ;;  %v8260_v39 = vpop.f32.mrb[162].mxu0 }
 0x27d   : > { %v2969_v55 = vpack.c.bf16 %v2913_v25, %v2912_v22  ;;  %v2487_v1 = vpop.f32.mrb[163].mxu0  ;;  %v2446_v22 = vadd.f32 %v8191_v21, %v8175_v32 }
 0x27e   : > { %v2968_v42 = vpack.c.bf16 %v2911_v57, %v2910_v54  ;;  %v2438_v54 = vadd.f32 %v8191_v21, %v8162_v27  ;;  %v6560_v27 = vld [vmem:[%s9818_s7 + $0xa8] sm:$0xff]  }
 0x27f   : > { %3674 = vmatmul.mubr.bf16.gmra.mrb[12].mxu0 %v7658_v43  ;;  %v2422_v43 = vadd.f32 %v8191_v21, %v8130_v0  ;;  %v6559_v0 = vld [vmem:[%s9818_s7 + $0xa0] sm:$0xff]  }
 0x280   : > { %v5922_v52 = vpop.f32.mrb[176].mxu1  ;;  %5996 = vmatprep.mubr.bf16.mxu1 %v2968_v42  ;;  %3681 = vmatprep.mubr.bf16.mxu0 %v7695_v19 }
 0x281   : > { %v2716_v2 = vadd.f32 %v5922_v52, %v2427_v44  ;;  %v2707_v12 = vpop.f32.mrb[177].mxu1  ;;  %5997 = vmatmul.mubr.bf16.gmra.mrb[236].mxu1 %v2969_v55  ;;  %6056 = vmatprep.subr.bf16.mxu1 %v6559_v0 }
 0x282   : > { %v2708_v63 = vadd.f32 %v2707_v12, %v2419_v36  ;;  %v5923_v47 = vpop.f32.mrb[178].mxu1  ;;  %v8272_v6 = vpop.f32.mrb[164].mxu0  ;;  %6057 = vmatpush3.bf16.msra.mxu1 %v6559_v0  ;;  %v10038_v12 = vld [vmem:[#allocation34_spill] sm:$0xff] }
 0x283   : > { %v2719_v46 = vadd.f32 %v5923_v47, %v2430_v35  ;;  %v2710_v50 = vpop.f32.mrb[179].mxu1  ;;  %v2492_v7 = vpop.f32.mrb[165].mxu0  ;;  %v2916_v41 = vmax.f32 %v2716_v2, 0.0  ;;  %6058 = vmatprep.subr.bf16.mxu1 %v6560_v27 }
 0x284   : > { %v2711_v19 = vadd.f32 %v2710_v50, %v2422_v43  ;;  %v8274_v28 = vpop.f32.mrb[166].mxu0  ;;  %v2914_v58 = vmax.f32 %v2708_v63, 0.0  ;;  %v10039_v50 = vld [vmem:[#allocation37_spill] sm:$0xff]  ;;  %v2451_v7 = vadd.f32 %v8191_v21, %v8183_v56 }
 0x285   : > { %v2917_v53 = vmax.f32 %v2719_v46, 0.0  ;;  %v2495_v3 = vpop.f32.mrb[167].mxu0 }
 0x286   : > { %v2915_v40 = vmax.f32 %v2711_v19, 0.0  ;;  %6059 = vmatpush3.bf16.msra.mxu1 %v6560_v27 }
 0x287   : > { %v2971_v5 = vpack.c.bf16 %v2917_v53, %v2916_v41  ;;  %3682 = vmatmul.mubr.bf16.gmra.mrb[16].mxu0 %v7689_v15  ;;  %v2443_v15 = vadd.f32 %v8191_v21, %v8170_v31  ;;  %v2462_v53 = vadd.f32 %v8191_v21, %v8208_v45  ;;  %v10040_v45 = vld [vmem:[#allocation36_spill] sm:$0xff] }
 0x288   : > { %v2970_v23 = vpack.c.bf16 %v2915_v40, %v2914_v58  ;;  %3689 = vmatprep.mubr.bf16.mxu0 %v7725_v37  ;;  %v2454_v40 = vadd.f32 %v8191_v21, %v8193_v17  ;;  %v6561_v17 = vld [vmem:[%s9818_s7 + $0xb0] sm:$0xff]  }
 0x289   : > { %6060 = vmatprep.subr.bf16.mxu1 %v6561_v17 }
 0x28a   : > { %6000 = vmatprep.mubr.bf16.mxu1 %v2970_v23  ;;  %v8281_v38 = vpop.f32.mrb[168].mxu0  ;;  %6061 = vmatpush3.bf16.msra.mxu1 %v6561_v17 }
 0x28b   : > { %6001 = vmatmul.mubr.bf16.gmra.mrb[240].mxu1 %v2971_v5  ;;  %v2500_v20 = vpop.f32.mrb[169].mxu0 }
 0x28c   : > { %v8283_v4 = vpop.f32.mrb[170].mxu0 }
 0x28d   : > { %v2503_v10 = vpop.f32.mrb[171].mxu0 }
 0x28f   : > { %3690 = vmatmul.mubr.bf16.gmra.mrb[20].mxu0 %v7719_v59 }
 0x290   : > { %v5926_v37 = vpop.f32.mrb[180].mxu1  ;;  %3697 = vmatprep.mubr.bf16.mxu0 %v7755_v11 }
 0x291   : > { %v2732_v18 = vadd.f32 %v5926_v37, %v2443_v15  ;;  %v2723_v33 = vpop.f32.mrb[181].mxu1 }
 0x292   : > { %v2724_v25 = vadd.f32 %v2723_v33, %v2435_v29  ;;  %v5927_v49 = vpop.f32.mrb[182].mxu1  ;;  %v8295_v59 = vpop.f32.mrb[172].mxu0 }
 0x293   : > { %v2735_v57 = vadd.f32 %v5927_v49, %v2446_v22  ;;  %v2726_v31 = vpop.f32.mrb[183].mxu1  ;;  %v2508_v55 = vpop.f32.mrb[173].mxu0  ;;  %v2920_v42 = vmax.f32 %v2732_v18, 0.0  ;;  %v10041_v22 = vld [vmem:[#allocation40_spill] sm:$0xff] }
 0x294   : > { %v2727_v1 = vadd.f32 %v2726_v31, %v2438_v54  ;;  %v8297_v11 = vpop.f32.mrb[174].mxu0  ;;  %v2918_v52 = vmax.f32 %v2724_v25, 0.0  ;;  %v10042_v31 = vld [vmem:[#allocation39_spill] sm:$0xff]  ;;  %v2475_v55 = vadd.f32 %v8191_v21, %v8241_v34 }
 0x295   : > { %v2921_v8 = vmax.f32 %v2735_v57, 0.0  ;;  %v2511_v44 = vpop.f32.mrb[175].mxu0 }
 0x296   : > { %v2919_v36 = vmax.f32 %v2727_v1, 0.0 }
 0x297   : > { %v2973_v2 = vpack.c.bf16 %v2921_v8, %v2920_v42  ;;  %3698 = vmatmul.mubr.bf16.gmra.mrb[24].mxu0 %v7749_v60  ;;  %v2459_v60 = vadd.f32 %v8191_v21, %v8206_v9  ;;  %v10043_v42 = vld [vmem:[#allocation43_spill] sm:$0xff]  ;;  %v2467_v8 = vadd.f32 %v8191_v21, %v8223_v16 }
 0x298   : > { %v2972_v32 = vpack.c.bf16 %v2919_v36, %v2918_v52  ;;  %3705 = vmatprep.mubr.bf16.mxu0 %v10038_v12  ;;  %v2478_v36 = vadd.f32 %v8191_v21, %v8243_v61  ;;  %v2470_v12 = vadd.f32 %v8191_v21, %v8229_v62  ;;  %v10044_v61 = vld [vmem:[#allocation42_spill] sm:$0xff]  ;;  %v6562_v62 = vld [vmem:[%s9818_s7 + $0xb8] sm:$0xff]  }
 0x299   : > { %6062 = vmatprep.subr.bf16.mxu1 %v6562_v62 }
 0x29a   : > { %6004 = vmatprep.mubr.bf16.mxu1 %v2972_v32  ;;  %v8304_v35 = vpop.f32.mrb[176].mxu0  ;;  %6063 = vmatpush3.bf16.msra.mxu1 %v6562_v62 }
 0x29b   : > { %6005 = vmatmul.mubr.bf16.gmra.mrb[244].mxu1 %v2973_v2  ;;  %v2516_v63 = vpop.f32.mrb[177].mxu0 }
 0x29c   : > { %v8306_v47 = vpop.f32.mrb[178].mxu0 }
 0x29d   : > { %v2519_v43 = vpop.f32.mrb[179].mxu0 }
 0x29f   : > { %3706 = vmatmul.mubr.bf16.gmra.mrb[28].mxu0 %v7779_v30 }
 0x2a0   : > { %v5930_v46 = vpop.f32.mrb[184].mxu1  ;;  %3713 = vmatprep.mubr.bf16.mxu0 %v10039_v50 }
 0x2a1   : > { %v2748_v19 = vadd.f32 %v5930_v46, %v2459_v60  ;;  %v2739_v41 = vpop.f32.mrb[185].mxu1 }
 0x2a2   : > { %v2740_v3 = vadd.f32 %v2739_v41, %v2451_v7  ;;  %v5931_v58 = vpop.f32.mrb[186].mxu1  ;;  %v8318_v30 = vpop.f32.mrb[180].mxu0 }
 0x2a3   : > { %v2751_v5 = vadd.f32 %v5931_v58, %v2462_v53  ;;  %v2742_v9 = vpop.f32.mrb[187].mxu1  ;;  %v2524_v23 = vpop.f32.mrb[181].mxu0  ;;  %v2924_v10 = vmax.f32 %v2748_v19, 0.0  ;;  %v10045_v58 = vld [vmem:[#allocation46_spill] sm:$0xff] }
 0x2a4   : > { %v2743_v0 = vadd.f32 %v2742_v9, %v2454_v40  ;;  %v8320_v20 = vpop.f32.mrb[182].mxu0  ;;  %v2922_v37 = vmax.f32 %v2740_v3, 0.0 }
 0x2a5   : > { %v2925_v56 = vmax.f32 %v2751_v5, 0.0  ;;  %v2527_v15 = vpop.f32.mrb[183].mxu0 }
 0x2a6   : > { %v2923_v29 = vmax.f32 %v2743_v0, 0.0  ;;  %v2491_v0 = vadd.f32 %v8191_v21, %v8272_v6 }
 0x2a7   : > { %v2975_v18 = vpack.c.bf16 %v2925_v56, %v2924_v10  ;;  %3714 = vmatmul.mubr.bf16.gmra.mrb[32].mxu0 %v10040_v45  ;;  %v10046_v10 = vld [vmem:[#allocation45_spill] sm:$0xff]  ;;  %v2483_v56 = vadd.f32 %v8191_v21, %v8258_v48 }
 0x2a8   : > { %v2974_v33 = vpack.c.bf16 %v2923_v29, %v2922_v37  ;;  %3721 = vmatprep.mubr.bf16.mxu0 %v10041_v22  ;;  %v10047_v37 = vld [vmem:[#allocation49_spill] sm:$0xff]  ;;  %v2494_v29 = vadd.f32 %v8191_v21, %v8274_v28 }
 0x2aa   : > { %6008 = vmatprep.mubr.bf16.mxu1 %v2974_v33  ;;  %v8327_v25 = vpop.f32.mrb[184].mxu0  ;;  %v2486_v33 = vadd.f32 %v8191_v21, %v8260_v39  ;;  %v10049_v39 = vld [vmem:[#allocation52_spill] sm:$0xff] }
 0x2ab   : > { %6009 = vmatmul.mubr.bf16.gmra.mrb[248].mxu1 %v2975_v18  ;;  %v2532_v49 = vpop.f32.mrb[185].mxu0 }
 0x2ac   : > { %v8329_v54 = vpop.f32.mrb[186].mxu0 }
 0x2ad   : > { %v2535_v57 = vpop.f32.mrb[187].mxu0 }
 0x2af   : > { %3722 = vmatmul.mubr.bf16.gmra.mrb[36].mxu0 %v10042_v31 }
 0x2b0   : > { %v5934_v1 = vpop.f32.mrb[188].mxu1  ;;  %3729 = vmatprep.mubr.bf16.mxu0 %v10043_v42 }
 0x2b1   : > { %v2764_v44 = vadd.f32 %v5934_v1, %v2475_v55  ;;  %v2755_v52 = vpop.f32.mrb[189].mxu1 }
 0x2b2   : > { %v2756_v2 = vadd.f32 %v2755_v52, %v2467_v8  ;;  %v5935_v32 = vpop.f32.mrb[190].mxu1  ;;  %v8341_v27 = vpop.f32.mrb[188].mxu0 }
 0x2b3   : > { %v2767_v63 = vadd.f32 %v5935_v32, %v2478_v36  ;;  %v2758_v34 = vpop.f32.mrb[191].mxu1  ;;  %v2540_v43 = vpop.f32.mrb[189].mxu0  ;;  %v2928_v50 = vmax.f32 %v2764_v44, 0.0  ;;  %v10048_v36 = vld [vmem:[#allocation48_spill] sm:$0xff] }
 0x2b4   : > { %v2759_v60 = vadd.f32 %v2758_v34, %v2470_v12  ;;  %v8343_v46 = vpop.f32.mrb[190].mxu0  ;;  %v2926_v19 = vmax.f32 %v2756_v2, 0.0  ;;  %v2507_v43 = vadd.f32 %v8191_v21, %v8295_v59 }
 0x2b5   : > { %v2929_v16 = vmax.f32 %v2767_v63, 0.0  ;;  %v2543_v7 = vpop.f32.mrb[191].mxu0 }
 0x2b6   : > { %v2927_v41 = vmax.f32 %v2759_v60, 0.0  ;;  %v10050_v60 = vld [vmem:[#allocation51_spill] sm:$0xff]  ;;  %v2510_v7 = vadd.f32 %v8191_v21, %v8297_v11 }
 0x2b7   : > { %v2977_v53 = vpack.c.bf16 %v2929_v16, %v2928_v50  ;;  %3730 = vmatmul.mubr.bf16.gmra.mrb[40].mxu0 %v10044_v61  ;;  %v2499_v50 = vadd.f32 %v8191_v21, %v8281_v38 }
 0x2b8   : > { %v2976_v3 = vpack.c.bf16 %v2927_v41, %v2926_v19  ;;  %3737 = vmatprep.mubr.bf16.mxu0 %v10045_v58 }
 0x2ba   : > { %v8350_v40 = vpop.f32.mrb[192].mxu0  ;;  %6012 = vmatprep.mubr.bf16.mxu1 %v2976_v3 }
 0x2bb   : > { %v2548_v5 = vpop.f32.mrb[193].mxu0  ;;  %6013 = vmatmul.mubr.bf16.gmra.mrb[252].mxu1 %v2977_v53  ;;  %v2502_v53 = vadd.f32 %v8191_v21, %v8283_v4 }
 0x2bc   : > { %v8352_v9 = vpop.f32.mrb[194].mxu0 }
 0x2bd   : > { %v2551_v23 = vpop.f32.mrb[195].mxu0 }
 0x2bf   : > { %3738 = vmatmul.mubr.bf16.gmra.mrb[44].mxu0 %v10046_v10 }
 0x2c0   : > { %v5938_v15 = vpop.f32.mrb[192].mxu1  ;;  %3745 = vmatprep.mubr.bf16.mxu0 %v10047_v37  ;;  %v10051_v37 = vld [vmem:[#allocation54_spill] sm:$0xff] }
 0x2c1   : > { %v2780_v18 = vadd.f32 %v5938_v15, %v2491_v0  ;;  %v2771_v45 = vpop.f32.mrb[193].mxu1 }
 0x2c2   : > { %v2772_v22 = vadd.f32 %v2771_v45, %v2483_v56  ;;  %v8364_v17 = vpop.f32.mrb[196].mxu0  ;;  %v5939_v6 = vpop.f32.mrb[194].mxu1 }
 0x2c3   : > { %v2783_v49 = vadd.f32 %v5939_v6, %v2494_v29  ;;  %v2556_v57 = vpop.f32.mrb[197].mxu0  ;;  %v2774_v31 = vpop.f32.mrb[195].mxu1  ;;  %v2932_v1 = vmax.f32 %v2780_v18, 0.0  ;;  %v2515_v6 = vadd.f32 %v8191_v21, %v8304_v35 }
 0x2c4   : > { %v2775_v55 = vadd.f32 %v2774_v31, %v2486_v33  ;;  %v8366_v48 = vpop.f32.mrb[198].mxu0  ;;  %v2930_v44 = vmax.f32 %v2772_v22, 0.0  ;;  %v2523_v22 = vadd.f32 %v8191_v21, %v8318_v30 }
 0x2c5   : > { %v2933_v42 = vmax.f32 %v2783_v49, 0.0  ;;  %v2559_v8 = vpop.f32.mrb[199].mxu0 }
 0x2c6   : > { %v2931_v28 = vmax.f32 %v2775_v55, 0.0  ;;  %v2518_v55 = vadd.f32 %v8191_v21, %v8306_v47  ;;  %v10052_v47 = vld [vmem:[#allocation13_spill] sm:$0xff] }
 0x2c7   : > { %v2979_v52 = vpack.c.bf16 %v2933_v42, %v2932_v1  ;;  %3746 = vmatmul.mubr.bf16.gmra.mrb[48].mxu0 %v10048_v36 }
 0x2c8   : > { %v2978_v2 = vpack.c.bf16 %v2931_v28, %v2930_v44  ;;  %3753 = vmatprep.mubr.bf16.mxu0 %v10049_v39 }
 0x2ca   : > { %v8370_v32 = vpop.f32.mrb[200].mxu0  ;;  %6016 = vmatprep.mubr.bf16.mxu1 %v2978_v2 }
 0x2cb   : > { %v2564_v12 = vpop.f32.mrb[201].mxu0  ;;  %6017 = vmatmul.mubr.bf16.gmra.mrb[0].mxu1 %v2979_v52 }
 0x2cc   : > { %v8372_v63 = vpop.f32.mrb[202].mxu0 }
 0x2cd   : > { %v2567_v34 = vpop.f32.mrb[203].mxu0 }
 0x2cf   : > { %3754 = vmatmul.mubr.bf16.gmra.mrb[52].mxu0 %v10050_v60 }
 0x2d0   : > { %v5942_v16 = vpop.f32.mrb[196].mxu1  ;;  %3761 = vmatprep.mubr.bf16.mxu0 %v7952_v51 }
 0x2d1   : > { %v2796_v19 = vadd.f32 %v5942_v16, %v2507_v43  ;;  %v2787_v41 = vpop.f32.mrb[197].mxu1  ;;  %v2539_v16 = vadd.f32 %v8191_v21, %v8341_v27 }
 0x2d2   : > { %v2788_v61 = vadd.f32 %v2787_v41, %v2499_v50  ;;  %v8384_v3 = vpop.f32.mrb[204].mxu0  ;;  %v5943_v59 = vpop.f32.mrb[198].mxu1  ;;  %v10054_v41 = vld [vmem:[#allocation15_spill] sm:$0xff] }
 0x2d3   : > { %v2799_v58 = vadd.f32 %v5943_v59, %v2510_v7  ;;  %v2572_v62 = vpop.f32.mrb[205].mxu0  ;;  %v2790_v5 = vpop.f32.mrb[199].mxu1  ;;  %v2936_v0 = vmax.f32 %v2796_v19, 0.0  ;;  %v10053_v7 = vld [vmem:[#allocation12_spill] sm:$0xff]  ;;  %v2531_v19 = vadd.f32 %v8191_v21, %v8327_v25 }
 0x2d4   : > { %v2791_v23 = vadd.f32 %v2790_v5, %v2502_v53  ;;  %v8386_v38 = vpop.f32.mrb[206].mxu0  ;;  %v2934_v56 = vmax.f32 %v2788_v61, 0.0  ;;  %v2542_v53 = vadd.f32 %v8191_v21, %v8343_v46 }
 0x2d5   : > { %v2937_v51 = vmax.f32 %v2799_v58, 0.0  ;;  %v2575_v10 = vpop.f32.mrb[207].mxu0  ;;  %v2534_v58 = vadd.f32 %v8191_v21, %v8329_v54  ;;  %v10056_v54 = vld [vmem:[#allocation17_spill] sm:$0xff] }
 0x2d6   : > { %v2935_v11 = vmax.f32 %v2791_v23, 0.0 }
 0x2d7   : > { %v2981_v15 = vpack.c.bf16 %v2937_v51, %v2936_v0  ;;  %3762 = vmatmul.mubr.bf16.gmra.mrb[56].mxu0 %v10051_v37 }
 0x2d8   : > { %v2980_v29 = vpack.c.bf16 %v2935_v11, %v2934_v56  ;;  %3769 = vmatprep.mubr.bf16.mxu0 %v7979_v14  ;;  %v2526_v14 = vadd.f32 %v8191_v21, %v8320_v20 }
 0x2da   : > { %v8390_v4 = vpop.f32.mrb[208].mxu0  ;;  %6020 = vmatprep.mubr.bf16.mxu1 %v2980_v29 }
 0x2db   : > { %v2580_v18 = vpop.f32.mrb[209].mxu0  ;;  %6021 = vmatmul.mubr.bf16.gmra.mrb[4].mxu1 %v2981_v15 }
 0x2dc   : > { %v8392_v45 = vpop.f32.mrb[210].mxu0  ;;  %v10055_v18 = vld [vmem:[#allocation14_spill] sm:$0xff] }
 0x2dd   : > { %v2583_v33 = vpop.f32.mrb[211].mxu0 }
 0x2df   : > { %3770 = vmatmul.mubr.bf16.gmra.mrb[60].mxu0 %v7973_v13 }
 0x2e0   : > { %v5946_v49 = vpop.f32.mrb[200].mxu1  ;;  %3777 = vmatprep.mubr.bf16.mxu0 %v7347_v26 }
 0x2e1   : > { %v2812_v57 = vadd.f32 %v5946_v49, %v2523_v22  ;;  %v2803_v31 = vpop.f32.mrb[201].mxu1 }
 0x2e2   : > { %v2804_v1 = vadd.f32 %v2803_v31, %v2515_v6  ;;  %v8404_v42 = vpop.f32.mrb[212].mxu0  ;;  %v5947_v30 = vpop.f32.mrb[202].mxu1  ;;  %v10057_v31 = vld [vmem:[#allocation16_spill] sm:$0xff] }
 0x2e3   : > { %v2815_v8 = vadd.f32 %v5947_v30, %v2526_v14  ;;  %v2588_v13 = vpop.f32.mrb[213].mxu0  ;;  %v2806_v44 = vpop.f32.mrb[203].mxu1  ;;  %v2940_v52 = vmax.f32 %v2812_v57, 0.0  ;;  %v2555_v57 = vadd.f32 %v8191_v21, %v8364_v17  ;;  %v10058_v30 = vld [vmem:[#allocation19_spill] sm:$0xff] }
 0x2e4   : > { %v2807_v28 = vadd.f32 %v2806_v44, %v2518_v55  ;;  %v8406_v35 = vpop.f32.mrb[214].mxu0  ;;  %v2938_v2 = vmax.f32 %v2804_v1, 0.0  ;;  %v2547_v55 = vadd.f32 %v8191_v21, %v8350_v40 }
 0x2e5   : > { %v2941_v26 = vmax.f32 %v2815_v8, 0.0  ;;  %v2591_v36 = vpop.f32.mrb[215].mxu0  ;;  %v2558_v8 = vadd.f32 %v8191_v21, %v8366_v48 }
 0x2e6   : > { %v2939_v20 = vmax.f32 %v2807_v28, 0.0  ;;  %v2550_v28 = vadd.f32 %v8191_v21, %v8352_v9  ;;  %v10060_v9 = vld [vmem:[#allocation21_spill] sm:$0xff] }
 0x2e7   : > { %v2983_v39 = vpack.c.bf16 %v2941_v26, %v2940_v52  ;;  %3778 = vmatmul.mubr.bf16.gmra.mrb[64].mxu0 %v7339_v24 }
 0x2e8   : > { %v2982_v12 = vpack.c.bf16 %v2939_v20, %v2938_v2  ;;  %3785 = vmatprep.mubr.bf16.mxu0 %v10052_v47 }
 0x2ea   : > { %v8410_v34 = vpop.f32.mrb[216].mxu0  ;;  %6024 = vmatprep.mubr.bf16.mxu1 %v2982_v12 }
 0x2eb   : > { %v2596_v43 = vpop.f32.mrb[217].mxu0  ;;  %6025 = vmatmul.mubr.bf16.gmra.mrb[8].mxu1 %v2983_v39 }
 0x2ec   : > { %v8412_v60 = vpop.f32.mrb[218].mxu0 }
 0x2ed   : > { %v2599_v50 = vpop.f32.mrb[219].mxu0 }
 0x2ef   : > { %3786 = vmatmul.mubr.bf16.gmra.mrb[68].mxu0 %v10053_v7  ;;  %v10059_v7 = vld [vmem:[#allocation18_spill] sm:$0xff] }
 0x2f0   : > { %v5950_v24 = vpop.f32.mrb[204].mxu1  ;;  %3793 = vmatprep.mubr.bf16.mxu0 %v10054_v41 }
 0x2f1   : > { %v2828_v61 = vadd.f32 %v5950_v24, %v2539_v16  ;;  %v2819_v59 = vpop.f32.mrb[205].mxu1 }
 0x2f2   : > { %v2820_v62 = vadd.f32 %v2819_v59, %v2531_v19  ;;  %v8424_v5 = vpop.f32.mrb[220].mxu0  ;;  %v5951_v27 = vpop.f32.mrb[206].mxu1  ;;  %v2571_v59 = vadd.f32 %v8191_v21, %v8384_v3 }
 0x2f3   : > { %v2831_v23 = vadd.f32 %v5951_v27, %v2542_v53  ;;  %v2604_v0 = vpop.f32.mrb[221].mxu0  ;;  %v2822_v51 = vpop.f32.mrb[207].mxu1  ;;  %v2944_v56 = vmax.f32 %v2828_v61, 0.0 }
 0x2f4   : > { %v2823_v10 = vadd.f32 %v2822_v51, %v2534_v58  ;;  %v8426_v25 = vpop.f32.mrb[222].mxu0  ;;  %v2942_v37 = vmax.f32 %v2820_v62, 0.0  ;;  %v10061_v58 = vld [vmem:[#allocation20_spill] sm:$0xff]  ;;  %v2563_v62 = vadd.f32 %v8191_v21, %v8370_v32  ;;  %v2574_v0 = vadd.f32 %v8191_v21, %v8386_v38 }
 0x2f5   : > { %v2945_v11 = vmax.f32 %v2831_v23, 0.0  ;;  %v2607_v15 = vpop.f32.mrb[223].mxu0  ;;  %v10062_v23 = vld [vmem:[#allocation23_spill] sm:$0xff] }
 0x2f6   : > { %v2943_v46 = vmax.f32 %v2823_v10, 0.0 }
 0x2f7   : > { %v2985_v29 = vpack.c.bf16 %v2945_v11, %v2944_v56  ;;  %3794 = vmatmul.mubr.bf16.gmra.mrb[72].mxu0 %v10055_v18  ;;  %v2566_v56 = vadd.f32 %v8191_v21, %v8372_v63  ;;  %v10064_v63 = vld [vmem:[#allocation25_spill] sm:$0xff] }
 0x2f8   : > { %v2984_v33 = vpack.c.bf16 %v2943_v46, %v2942_v37  ;;  %3801 = vmatprep.mubr.bf16.mxu0 %v10056_v54 }
 0x2fa   : > { %6028 = vmatprep.mubr.bf16.mxu1 %v2984_v33  ;;  %v8430_v22 = vpop.f32.mrb[224].mxu0 }
 0x2fb   : > { %6029 = vmatmul.mubr.bf16.gmra.mrb[12].mxu1 %v2985_v29  ;;  %v3589_v6 = vpop.f32.mrb[225].mxu0 }
 0x2fc   : > { %v8432_v49 = vpop.f32.mrb[226].mxu0 }
 0x2fd   : > { %v3592_v14 = vpop.f32.mrb[227].mxu0 }
 0x2ff   : > { %3802 = vmatmul.mubr.bf16.gmra.mrb[76].mxu0 %v10057_v31  ;;  %v10063_v31 = vld [vmem:[#allocation22_spill] sm:$0xff] }
 0x300   : > { %v5954_v1 = vpop.f32.mrb[208].mxu1  ;;  %3809 = vmatprep.mubr.bf16.mxu0 %v10058_v30 }
 0x301   : > { %v2844_v13 = vadd.f32 %v5954_v1, %v2555_v57  ;;  %v2835_v44 = vpop.f32.mrb[209].mxu1 }
 0x302   : > { %v2836_v52 = vadd.f32 %v2835_v44, %v2547_v55  ;;  %v5955_v26 = vpop.f32.mrb[210].mxu1  ;;  %v8444_v36 = vpop.f32.mrb[228].mxu0  ;;  %v2587_v44 = vadd.f32 %v8191_v21, %v8404_v42 }
 0x303   : > { %v2847_v17 = vadd.f32 %v5955_v26, %v2558_v8  ;;  %v2838_v2 = vpop.f32.mrb[211].mxu1  ;;  %v3597_v20 = vpop.f32.mrb[229].mxu0  ;;  %v2948_v12 = vmax.f32 %v2844_v13, 0.0 }
 0x304   : > { %v2839_v39 = vadd.f32 %v2838_v2, %v2550_v28  ;;  %v8446_v40 = vpop.f32.mrb[230].mxu0  ;;  %v2946_v50 = vmax.f32 %v2836_v52, 0.0  ;;  %v10065_v28 = vld [vmem:[#allocation24_spill] sm:$0xff]  ;;  %v2579_v52 = vadd.f32 %v8191_v21, %v8390_v4 }
 0x305   : > { %v2949_v47 = vmax.f32 %v2847_v17, 0.0  ;;  %v3600_v43 = vpop.f32.mrb[231].mxu0  ;;  %v2590_v17 = vadd.f32 %v8191_v21, %v8406_v35  ;;  %v6563_v4 = vld [vmem:[%s9820_s9] sm:$0xff]  }
 0x306   : > { %v2947_v48 = vmax.f32 %v2839_v39, 0.0  ;;  %v2582_v39 = vadd.f32 %v8191_v21, %v8392_v45  ;;  %6128 = vmatprep.subr.bf16.mxu1 %v6563_v4 }
 0x307   : > { %v2987_v16 = vpack.c.bf16 %v2949_v47, %v2948_v12  ;;  %3810 = vmatmul.mubr.bf16.gmra.mrb[80].mxu0 %v10059_v7 }
 0x308   : > { %v2986_v19 = vpack.c.bf16 %v2947_v48, %v2946_v50  ;;  %3817 = vmatprep.mubr.bf16.mxu0 %v10060_v9 }
 0x30a   : > { %6032 = vmatprep.mubr.bf16.mxu1 %v2986_v19  ;;  %v8450_v24 = vpop.f32.mrb[232].mxu0 }
 0x30b   : > { %6033 = vmatmul.mubr.bf16.gmra.mrb[16].mxu1 %v2987_v16  ;;  %v3605_v41 = vpop.f32.mrb[233].mxu0 }
 0x30c   : > { %v8452_v53 = vpop.f32.mrb[234].mxu0 }
 0x30d   : > { %v3608_v61 = vpop.f32.mrb[235].mxu0 }
 0x30f   : > { %3818 = vmatmul.mubr.bf16.gmra.mrb[84].mxu0 %v10061_v58 }
 0x310   : > { %v5958_v27 = vpop.f32.mrb[212].mxu1  ;;  %3825 = vmatprep.mubr.bf16.mxu0 %v10062_v23 }
 0x311   : > { %v2860_v51 = vadd.f32 %v5958_v27, %v2571_v59  ;;  %v2851_v10 = vpop.f32.mrb[213].mxu1 }
 0x312   : > { %v2852_v11 = vadd.f32 %v2851_v10, %v2563_v62  ;;  %v5959_v15 = vpop.f32.mrb[214].mxu1  ;;  %v8464_v37 = vpop.f32.mrb[236].mxu0 }
 0x313   : > { %v2863_v3 = vadd.f32 %v5959_v15, %v2574_v0  ;;  %v2854_v46 = vpop.f32.mrb[215].mxu1  ;;  %v3613_v29 = vpop.f32.mrb[237].mxu0  ;;  %v2952_v33 = vmax.f32 %v2860_v51, 0.0  ;;  %v2603_v0 = vadd.f32 %v8191_v21, %v8424_v5  ;;  %v2595_v51 = vadd.f32 %v8191_v21, %v8410_v34 }
 0x314   : > { %v2855_v18 = vadd.f32 %v2854_v46, %v2566_v56  ;;  %v8466_v32 = vpop.f32.mrb[238].mxu0  ;;  %v2950_v14 = vmax.f32 %v2852_v11, 0.0  ;;  %v2606_v56 = vadd.f32 %v8191_v21, %v8426_v25 }
 0x315   : > { %v2953_v54 = vmax.f32 %v2863_v3, 0.0  ;;  %v3616_v6 = vpop.f32.mrb[239].mxu0  ;;  %v2598_v3 = vadd.f32 %v8191_v21, %v8412_v60 }
 0x316   : > { %v2951_v38 = vmax.f32 %v2855_v18, 0.0 }
 0x317   : > { %v2989_v57 = vpack.c.bf16 %v2953_v54, %v2952_v33  ;;  %3826 = vmatmul.mubr.bf16.gmra.mrb[88].mxu0 %v10063_v31 }
 0x318   : > { %v2988_v55 = vpack.c.bf16 %v2951_v38, %v2950_v14  ;;  %3833 = vmatprep.mubr.bf16.mxu0 %v10064_v63 }
 0x31a   : > { %6036 = vmatprep.mubr.bf16.mxu1 %v2988_v55  ;;  %v8470_v1 = vpop.f32.mrb[240].mxu0 }
 0x31b   : > { %6037 = vmatmul.mubr.bf16.gmra.mrb[20].mxu1 %v2989_v57  ;;  %v3621_v30 = vpop.f32.mrb[241].mxu0 }
 0x31c   : > { %v8472_v8 = vpop.f32.mrb[242].mxu0 }
 0x31d   : > { %v3624_v13 = vpop.f32.mrb[243].mxu0 }
 0x31f   : > { %3834 = vmatmul.mubr.bf16.gmra.mrb[92].mxu0 %v10065_v28 }
 0x320   : > { %v5962_v26 = vpop.f32.mrb[216].mxu1 }
 0x321   : > { %v2876_v2 = vadd.f32 %v5962_v26, %v2587_v44  ;;  %v2867_v20 = vpop.f32.mrb[217].mxu1  ;;  %v10066_v44 = vld [vmem:[#allocation26_spill] sm:$0xff] }
 0x322   : > { %v2868_v12 = vadd.f32 %v2867_v20, %v2579_v52  ;;  %v5963_v47 = vpop.f32.mrb[218].mxu1  ;;  %v8483_v43 = vpop.f32.mrb[244].mxu0 }
 0x323   : > { %v2879_v50 = vadd.f32 %v5963_v47, %v2590_v17  ;;  %v2870_v42 = vpop.f32.mrb[219].mxu1  ;;  %v3629_v48 = vpop.f32.mrb[245].mxu0  ;;  %v2956_v35 = vmax.f32 %v2876_v2, 0.0  ;;  %v6564_v2 = vld [vmem:[%s9820_s9 + $0x8] sm:$0xff]  }
 0x324   : > { %v2871_v16 = vadd.f32 %v2870_v42, %v2582_v39  ;;  %v8488_v7 = vpop.f32.mrb[246].mxu0  ;;  %v2954_v41 = vmax.f32 %v2868_v12, 0.0  ;;  %v10067_v12 = vld [vmem:[#allocation27_spill] sm:$0xff]  ;;  %v10068_v42 = vld [vmem:[#allocation28_spill] sm:$0xff] }
 0x325   : > { %v2957_v19 = vmax.f32 %v2879_v50, 0.0  ;;  %v3632_v9 = vpop.f32.mrb[247].mxu0 }
 0x326   : > { %v2955_v45 = vmax.f32 %v2871_v16, 0.0 }
 0x327   : > { %v2991_v61 = vpack.c.bf16 %v2957_v19, %v2956_v35  ;;  %v6565_v35 = vld [vmem:[%s9820_s9 + $0x10] sm:$0xff]  }
 0x328   : > { %v2990_v59 = vpack.c.bf16 %v2955_v45, %v2954_v41 }
 0x32a   : > { %6040 = vmatprep.mubr.bf16.mxu1 %v2990_v59  ;;  %v8490_v58 = vpop.f32.mrb[248].mxu0 }
 0x32b   : > { %6041 = vmatmul.mubr.bf16.gmra.mrb[24].mxu1 %v2991_v61  ;;  %v3637_v62 = vpop.f32.mrb[249].mxu0  ;;  %v10069_v61 = vld [vmem:[#allocation29_spill] sm:$0xff] }
 0x32c   : > { %v8492_v27 = vpop.f32.mrb[250].mxu0  ;;  %v10070_v62 = vld [vmem:[#allocation30_spill] sm:$0xff] }
 0x32d   : > { %v3640_v23 = vpop.f32.mrb[251].mxu0 }
 0x330   : > { %v5966_v10 = vpop.f32.mrb[220].mxu1 }
 0x331   : > { %v2892_v11 = vadd.f32 %v5966_v10, %v2603_v0  ;;  %v2883_v15 = vpop.f32.mrb[221].mxu1 }
 0x332   : > { %v2884_v46 = vadd.f32 %v2883_v15, %v2595_v51  ;;  %v5967_v29 = vpop.f32.mrb[222].mxu1  ;;  %v8502_v18 = vpop.f32.mrb[252].mxu0  ;;  %v10071_v15 = vld [vmem:[#allocation31_spill] sm:$0xff] }
 0x333   : > { %v2895_v33 = vadd.f32 %v5967_v29, %v2606_v56  ;;  %v2886_v54 = vpop.f32.mrb[223].mxu1  ;;  %v3645_v6 = vpop.f32.mrb[253].mxu0  ;;  %v2960_v34 = vmax.f32 %v2892_v11, 0.0 }
 0x334   : > { %v2887_v5 = vadd.f32 %v2886_v54, %v2598_v3  ;;  %v8504_v14 = vpop.f32.mrb[254].mxu0  ;;  %v2958_v31 = vmax.f32 %v2884_v46, 0.0  ;;  %v6566_v3 = vld [vmem:[%s9820_s9 + $0x18] sm:$0xff]  }
 0x335   : > { %v2961_v38 = vmax.f32 %v2895_v33, 0.0  ;;  %v3648_v57 = vpop.f32.mrb[255].mxu0  ;;  %v10072_v33 = vld [vmem:[#allocation32_spill] sm:$0xff] }
 0x336   : > { %v2959_v25 = vmax.f32 %v2887_v5, 0.0 }
 0x337   : > { %v2993_v55 = vpack.c.bf16 %v2961_v38, %v2960_v34 }
 0x338   : > { %v2992_v63 = vpack.c.bf16 %v2959_v25, %v2958_v31  ;;  %v10074_v31 = vld [vmem:[#allocation33_spill] sm:$0xff] }
 0x33a   : > { %6044 = vmatprep.mubr.bf16.mxu1 %v2992_v63  ;;  %v8506_v30 = vpop.f32.mrb[0].mxu0 }
 0x33b   : > { %6045 = vmatmul.mubr.bf16.gmra.mrb[28].mxu1 %v2993_v55  ;;  %v3653_v21 = vpop.f32.mrb[1].mxu0  ;;  %v10076_v55 = vld [vmem:[#allocation35_spill] sm:$0xff] }
 0x33c   : > { %v8508_v60 = vpop.f32.mrb[224].mxu1  ;;  %v8510_v13 = vpop.f32.mrb[2].mxu0  ;;  %6064 = vmatprep.mubr.bf16.mxu1 %v10066_v44 }
 0x33d   : > { %v8513_v28 = vpop.f32.mrb[225].mxu1  ;;  %v3656_v52 = vpop.f32.mrb[3].mxu0 }
 0x33e   : > { %v8515_v26 = vpop.f32.mrb[226].mxu1 }
 0x33f   : > { %v8517_v17 = vpop.f32.mrb[227].mxu1 }
 0x342   : > { %v8522_v20 = vpop.f32.mrb[4].mxu0 }
 0x343   : > { %v3661_v39 = vpop.f32.mrb[5].mxu0  ;;  %6065 = vmatmul.mubr.bf16.vlgmr.msra.gmra.mrb[32].mxu1 %v10067_v12 }
 0x344   : > { %v8525_v47 = vpop.f32.mrb[228].mxu1  ;;  %v8527_v50 = vpop.f32.mrb[6].mxu0  ;;  %6068 = vmatprep.mubr.bf16.mxu1 %v10068_v42  ;;  %6129 = vmatpush3.bf16.msra.mxu1 %v6563_v4  ;;  %v10077_v42 = vld [vmem:[#allocation38_spill] sm:$0xff] }
 0x345   : > { %v8530_v48 = vpop.f32.mrb[229].mxu1  ;;  %v3664_v16 = vpop.f32.mrb[7].mxu0  ;;  %6130 = vmatprep.subr.bf16.mxu1 %v6564_v2 }
 0x346   : > { %v8535_v19 = vpop.f32.mrb[230].mxu1  ;;  %v6567_v16 = vld [vmem:[%s9820_s9 + $0x20] sm:$0xff]  }
 0x347   : > { %v8537_v9 = vpop.f32.mrb[231].mxu1 }
 0x348   : > { %6131 = vmatpush3.bf16.msra.mxu1 %v6564_v2 }
 0x349   : > { %6132 = vmatprep.subr.bf16.mxu1 %v6565_v35 }
 0x34a   : > { %v8539_v41 = vpop.f32.mrb[8].mxu0 }
 0x34b   : > { %v3669_v45 = vpop.f32.mrb[9].mxu0  ;;  %6069 = vmatmul.mubr.bf16.gmra.mrb[36].mxu1 %v10069_v61 }
 0x34c   : > { %v8542_v4 = vpop.f32.mrb[232].mxu1  ;;  %v8544_v59 = vpop.f32.mrb[10].mxu0  ;;  %6072 = vmatprep.mubr.bf16.mxu1 %v10070_v62  ;;  %6133 = vmatpush3.bf16.msra.mxu1 %v6565_v35  ;;  %v10079_v45 = vld [vmem:[#allocation41_spill] sm:$0xff] }
 0x34d   : > { %v8547_v23 = vpop.f32.mrb[233].mxu1  ;;  %v3672_v0 = vpop.f32.mrb[11].mxu0  ;;  %6134 = vmatprep.subr.bf16.mxu1 %v6566_v3 }
 0x34e   : > { %v8549_v51 = vpop.f32.mrb[234].mxu1 }
 0x34f   : > { %v8551_v10 = vpop.f32.mrb[235].mxu1 }
 0x350   : > { %6135 = vmatpush3.bf16.msra.mxu1 %v6566_v3  ;;  %v10083_v3 = vld [vmem:[#allocation47_spill] sm:$0xff] }
 0x351   : > { %6136 = vmatprep.subr.bf16.mxu1 %v6567_v16 }
 0x352   : > { %v8553_v56 = vpop.f32.mrb[12].mxu0 }
 0x353   : > { %v3677_v11 = vpop.f32.mrb[13].mxu0  ;;  %6073 = vmatmul.mubr.bf16.gmra.mrb[40].mxu1 %v10071_v15 }
 0x354   : > { %v8559_v46 = vpop.f32.mrb[236].mxu1  ;;  %v8561_v29 = vpop.f32.mrb[14].mxu0  ;;  %6076 = vmatprep.mubr.bf16.mxu1 %v10072_v33  ;;  %6137 = vmatpush3.bf16.msra.mxu1 %v6567_v16  ;;  %v10081_v11 = vld [vmem:[#allocation44_spill] sm:$0xff]  ;;  %v6568_v16 = vld [vmem:[%s9820_s9 + $0x28] sm:$0xff]  }
 0x355   : > { %v8564_v54 = vpop.f32.mrb[237].mxu1  ;;  %v3680_v6 = vpop.f32.mrb[15].mxu0  ;;  %6138 = vmatprep.subr.bf16.mxu1 %v6568_v16 }
 0x356   : > { %v8566_v5 = vpop.f32.mrb[238].mxu1 }
 0x357   : > { %v8568_v34 = vpop.f32.mrb[239].mxu1 }
 0x358   : > { %6139 = vmatpush3.bf16.msra.mxu1 %v6568_v16  ;;  %v6569_v16 = vld [vmem:[%s9822_s11] sm:$0xff]  }
 0x359   : > { %6208 = vmatprep.subr.bf16.mxu0 %v6569_v16 }
 0x35a   : > { %v8570_v38 = vpop.f32.mrb[16].mxu0  ;;  %6209 = vmatpush3.bf16.msra.mxu0 %v6569_v16 }
 0x35b   : > { %10073 = vst [vmem:[#allocation34_spill] sm:$0xff] %v8570_v38  ;;  %v3685_v57 = vpop.f32.mrb[17].mxu0  ;;  %6077 = vmatmul.mubr.bf16.gmra.mrb[44].mxu1 %v10074_v31 }
 0x35c   : > { %v8573_v25 = vpop.f32.mrb[18].mxu0  ;;  %6080 = vmatprep.mubr.bf16.mxu1 %v10076_v55 }
 0x35d   : > { %10075 = vst [vmem:[#allocation37_spill] sm:$0xff] %v8573_v25  ;;  %v3688_v63 = vpop.f32.mrb[19].mxu0  ;;  %v10103_v25 = vld [vmem:[#allocation60_spill] sm:$0xff] }
 0x35e   : > { %v8576_v21 = vpop.f32.mrb[240].mxu1 }
 0x35f   : > { %v8578_v44 = vpop.f32.mrb[241].mxu1 }
 0x360   : > { %v8580_v52 = vpop.f32.mrb[242].mxu1 }
 0x361   : > { %v8582_v2 = vpop.f32.mrb[243].mxu1 }
 0x362   : > { %v8584_v39 = vpop.f32.mrb[20].mxu0 }
 0x363   : > { %v3693_v12 = vpop.f32.mrb[21].mxu0  ;;  %6081 = vmatmul.mubr.bf16.gmra.mrb[48].mxu1 %v10077_v42  ;;  %v10085_v42 = vld [vmem:[#allocation50_spill] sm:$0xff] }
 0x364   : > { %v8590_v35 = vpop.f32.mrb[22].mxu0  ;;  %6084 = vmatprep.mubr.bf16.mxu1 %v10079_v45 }
 0x365   : > { %10078 = vst [vmem:[#allocation36_spill] sm:$0xff] %v8590_v35  ;;  %v3696_v61 = vpop.f32.mrb[23].mxu0 }
 0x366   : > { %v10087_v61 = vld [vmem:[#allocation53_spill] sm:$0xff] }
 0x36a   : > { %v8593_v62 = vpop.f32.mrb[24].mxu0 }
 0x36b   : > { %10080 = vst [vmem:[#allocation40_spill] sm:$0xff] %v8593_v62  ;;  %v3701_v0 = vpop.f32.mrb[25].mxu0  ;;  %6085 = vmatmul.mubr.bf16.gmra.mrb[52].mxu1 %v10081_v11 }
 0x36c   : > { %v8596_v15 = vpop.f32.mrb[26].mxu0  ;;  %6088 = vmatprep.mubr.bf16.mxu1 %v10083_v3 }
 0x36d   : > { %10082 = vst [vmem:[#allocation39_spill] sm:$0xff] %v8596_v15  ;;  %v3704_v33 = vpop.f32.mrb[27].mxu0 }
 0x36e   : > { %v8599_v6 = vpop.f32.mrb[244].mxu1  ;;  %v10089_v33 = vld [vmem:[#allocation55_spill] sm:$0xff] }
 0x36f   : > { %v8601_v57 = vpop.f32.mrb[245].mxu1 }
 0x370   : > { %v8603_v31 = vpop.f32.mrb[246].mxu1 }
 0x371   : > { %v8605_v55 = vpop.f32.mrb[247].mxu1 }
 0x372   : > { %v8607_v63 = vpop.f32.mrb[28].mxu0 }
 0x373   : > { %10084 = vst [vmem:[#allocation43_spill] sm:$0xff] %v8607_v63  ;;  %v3709_v12 = vpop.f32.mrb[29].mxu0  ;;  %6089 = vmatmul.mubr.bf16.gmra.mrb[56].mxu1 %v10085_v42 }
 0x374   : > { %v8613_v45 = vpop.f32.mrb[30].mxu0  ;;  %6092 = vmatprep.mubr.bf16.mxu1 %v10087_v61  ;;  %v10091_v12 = vld [vmem:[#allocation56_spill] sm:$0xff] }
 0x375   : > { %10086 = vst [vmem:[#allocation42_spill] sm:$0xff] %v8613_v45  ;;  %v3712_v0 = vpop.f32.mrb[31].mxu0 }
 0x37a   : > { %v8616_v11 = vpop.f32.mrb[32].mxu0 }
 0x37b   : > { %10088 = vst [vmem:[#allocation46_spill] sm:$0xff] %v8616_v11  ;;  %v3717_v3 = vpop.f32.mrb[33].mxu0  ;;  %6093 = vmatmul.mubr.bf16.gmra.mrb[60].mxu1 %v10089_v33 }
 0x37c   : > { %v8619_v15 = vpop.f32.mrb[34].mxu0  ;;  %6096 = vmatprep.mubr.bf16.mxu1 %v10091_v12  ;;  %v6570_v3 = vld [vmem:[%s9820_s9 + $0x30] sm:$0xff]   ;;  %v10097_v12 = vld [vmem:[#allocation57_spill] sm:$0xff] }
 0x37d   : > { %10090 = vst [vmem:[#allocation45_spill] sm:$0xff] %v8619_v15  ;;  %v3720_v42 = vpop.f32.mrb[35].mxu0  ;;  %v10099_v15 = vld [vmem:[#allocation58_spill] sm:$0xff]  ;;  %6140 = vmatprep.subr.bf16.mxu1 %v6570_v3 }
 0x37e   : > { %v8622_v62 = vpop.f32.mrb[248].mxu1  ;;  %6141 = vmatpush3.bf16.msra.mxu1 %v6570_v3  ;;  %v10109_v3 = vld [vmem:[#allocation61_spill] sm:$0xff] }
 0x37f   : > { %10092 = vst [vmem:[#allocation49_spill] sm:$0xff] %v8622_v62  ;;  %v8624_v63 = vpop.f32.mrb[249].mxu1 }
 0x380   : > { %10093 = vst [vmem:[#allocation48_spill] sm:$0xff] %v8624_v63  ;;  %v8626_v45 = vpop.f32.mrb[250].mxu1 }
 0x381   : > { %10094 = vst [vmem:[#allocation52_spill] sm:$0xff] %v8626_v45  ;;  %v8628_v61 = vpop.f32.mrb[251].mxu1  ;;  %v10101_v45 = vld [vmem:[#allocation59_spill] sm:$0xff] }
 0x382   : > { %10095 = vst [vmem:[#allocation51_spill] sm:$0xff] %v8628_v61  ;;  %v8630_v0 = vpop.f32.mrb[36].mxu0 }
 0x383   : > { %10096 = vst [vmem:[#allocation54_spill] sm:$0xff] %v8630_v0  ;;  %v3725_v33 = vpop.f32.mrb[37].mxu0  ;;  %6097 = vmatmul.mubr.bf16.gmra.mrb[64].mxu1 %v10097_v12 }
 0x384   : > { %v8639_v42 = vpop.f32.mrb[38].mxu0  ;;  %6100 = vmatprep.mubr.bf16.mxu1 %v10099_v15 }
 0x385   : > { %10098 = vst [vmem:[#allocation13_spill] sm:$0xff] %v8639_v42  ;;  %v3728_v11 = vpop.f32.mrb[39].mxu0 }
 0x38a   : > { %v8642_v0 = vpop.f32.mrb[40].mxu0 }
 0x38b   : > { %10100 = vst [vmem:[#allocation12_spill] sm:$0xff] %v8642_v0  ;;  %v3733_v61 = vpop.f32.mrb[41].mxu0  ;;  %6101 = vmatmul.mubr.bf16.gmra.mrb[68].mxu1 %v10101_v45 }
 0x38c   : > { %v8645_v63 = vpop.f32.mrb[42].mxu0  ;;  %6104 = vmatprep.mubr.bf16.mxu1 %v10103_v25  ;;  %v6571_v61 = vld [vmem:[%s9820_s9 + $0x38] sm:$0xff]   ;;  %v10111_v25 = vld [vmem:[#allocation62_spill] sm:$0xff] }
 0x38d   : > { %10102 = vst [vmem:[#allocation15_spill] sm:$0xff] %v8645_v63  ;;  %v3736_v33 = vpop.f32.mrb[43].mxu0  ;;  %6142 = vmatprep.subr.bf16.mxu1 %v6571_v61 }
 0x38e   : > { %v8648_v12 = vpop.f32.mrb[252].mxu1  ;;  %6143 = vmatpush3.bf16.msra.mxu1 %v6571_v61 }
 0x38f   : > { %10104 = vst [vmem:[#allocation14_spill] sm:$0xff] %v8648_v12  ;;  %v8650_v42 = vpop.f32.mrb[253].mxu1 }
 0x390   : > { %10105 = vst [vmem:[#allocation17_spill] sm:$0xff] %v8650_v42  ;;  %v8652_v15 = vpop.f32.mrb[254].mxu1  ;;  %v10115_v42 = vld [vmem:[#allocation64_spill] sm:$0xff] }
 0x391   : > { %10106 = vst [vmem:[#allocation16_spill] sm:$0xff] %v8652_v15  ;;  %v8654_v11 = vpop.f32.mrb[255].mxu1 }
 0x392   : > { %10107 = vst [vmem:[#allocation19_spill] sm:$0xff] %v8654_v11  ;;  %v8656_v16 = vpop.f32.mrb[44].mxu0  ;;  %v10113_v11 = vld [vmem:[#allocation63_spill] sm:$0xff] }
 0x393   : > { %10108 = vst [vmem:[#allocation18_spill] sm:$0xff] %v8656_v16  ;;  %v3741_v45 = vpop.f32.mrb[45].mxu0  ;;  %6105 = vmatmul.mubr.bf16.gmra.mrb[72].mxu1 %v10109_v3 }
 0x394   : > { %v8662_v63 = vpop.f32.mrb[46].mxu0  ;;  %6108 = vmatprep.mubr.bf16.mxu1 %v10111_v25 }
 0x395   : > { %10110 = vst [vmem:[#allocation21_spill] sm:$0xff] %v8662_v63  ;;  %v3744_v33 = vpop.f32.mrb[47].mxu0 }
 0x39a   : > { %v8665_v0 = vpop.f32.mrb[48].mxu0 }
 0x39b   : > { %10112 = vst [vmem:[#allocation20_spill] sm:$0xff] %v8665_v0  ;;  %v3749_v15 = vpop.f32.mrb[49].mxu0  ;;  %6109 = vmatmul.mubr.bf16.gmra.mrb[76].mxu1 %v10113_v11  ;;  %v10121_v0 = vld [vmem:[#allocation65_spill] sm:$0xff]  ;;  %v10123_v11 = vld [vmem:[#allocation66_spill] sm:$0xff] }
 0x39c   : > { %v8668_v16 = vpop.f32.mrb[50].mxu0  ;;  %6112 = vmatprep.mubr.bf16.mxu1 %v10115_v42  ;;  %v6572_v42 = vld [vmem:[%s9822_s11 + $0x8] sm:$0xff]  }
 0x39d   : > { %10114 = vst [vmem:[#allocation23_spill] sm:$0xff] %v8668_v16  ;;  %v3752_v12 = vpop.f32.mrb[51].mxu0  ;;  %6210 = vmatprep.subr.bf16.mxu0 %v6572_v42 }
 0x39e   : > { %v8671_v45 = vpop.f32.mrb[0].mxu1  ;;  %6211 = vmatpush3.bf16.msra.mxu0 %v6572_v42  ;;  %v10133_v42 = vld [vmem:[#allocation69_spill] sm:$0xff] }
 0x39f   : > { %10116 = vst [vmem:[#allocation22_spill] sm:$0xff] %v8671_v45  ;;  %v8673_v3 = vpop.f32.mrb[1].mxu1 }
 0x3a0   : > { %10117 = vst [vmem:[#allocation25_spill] sm:$0xff] %v8673_v3  ;;  %v8675_v63 = vpop.f32.mrb[2].mxu1 }
 0x3a1   : > { %10118 = vst [vmem:[#allocation24_spill] sm:$0xff] %v8675_v63  ;;  %v8677_v25 = vpop.f32.mrb[3].mxu1 }
 0x3a2   : > { %10119 = vst [vmem:[#allocation26_spill] sm:$0xff] %v8677_v25  ;;  %v8679_v33 = vpop.f32.mrb[52].mxu0  ;;  %v10125_v25 = vld [vmem:[#allocation67_spill] sm:$0xff] }
 0x3a3   : > { %10120 = vst [vmem:[#allocation27_spill] sm:$0xff] %v8679_v33  ;;  %v3757_v61 = vpop.f32.mrb[53].mxu0  ;;  %6113 = vmatmul.mubr.bf16.gmra.mrb[80].mxu1 %v10121_v0 }
 0x3a4   : > { %v8682_v15 = vpop.f32.mrb[54].mxu0  ;;  %6116 = vmatprep.mubr.bf16.mxu1 %v10123_v11  ;;  %v10127_v61 = vld [vmem:[#allocation68_spill] sm:$0xff] }
 0x3a5   : > { %10122 = vst [vmem:[#allocation28_spill] sm:$0xff] %v8682_v15  ;;  %v3760_v16 = vpop.f32.mrb[55].mxu0 }
 0x3aa   : > { %v8688_v12 = vpop.f32.mrb[56].mxu0 }
 0x3ab   : > { %10124 = vst [vmem:[#allocation29_spill] sm:$0xff] %v8688_v12  ;;  %v3765_v63 = vpop.f32.mrb[57].mxu0  ;;  %6117 = vmatmul.mubr.bf16.gmra.mrb[84].mxu1 %v10125_v25  ;;  %v10135_v25 = vld [vmem:[#allocation70_spill] sm:$0xff] }
 0x3ac   : > { %v8691_v33 = vpop.f32.mrb[58].mxu0  ;;  %6120 = vmatprep.mubr.bf16.mxu1 %v10127_v61 }
 0x3ad   : > { %10126 = vst [vmem:[#allocation30_spill] sm:$0xff] %v8691_v33  ;;  %v3768_v0 = vpop.f32.mrb[59].mxu0 }
 0x3ae   : > { %v8694_v15 = vpop.f32.mrb[4].mxu1 }
 0x3af   : > { %10128 = vst [vmem:[#allocation31_spill] sm:$0xff] %v8694_v15  ;;  %v8696_v11 = vpop.f32.mrb[5].mxu1  ;;  %v10137_v15 = vld [vmem:[#allocation71_spill] sm:$0xff] }
 0x3b0   : > { %10129 = vst [vmem:[#allocation32_spill] sm:$0xff] %v8696_v11  ;;  %v8698_v16 = vpop.f32.mrb[6].mxu1 }
 0x3b1   : > { %10130 = vst [vmem:[#allocation33_spill] sm:$0xff] %v8698_v16  ;;  %v8700_v3 = vpop.f32.mrb[7].mxu1 }
 0x3b2   : > { %10131 = vst [vmem:[#allocation35_spill] sm:$0xff] %v8700_v3  ;;  %v8702_v45 = vpop.f32.mrb[60].mxu0 }
 0x3b3   : > { %10132 = vst [vmem:[#allocation38_spill] sm:$0xff] %v8702_v45  ;;  %v3773_v12 = vpop.f32.mrb[61].mxu0  ;;  %6121 = vmatmul.mubr.bf16.gmra.mrb[88].mxu1 %v10133_v42 }
 0x3b4   : > { %v8705_v63 = vpop.f32.mrb[62].mxu0  ;;  %6124 = vmatprep.mubr.bf16.mxu1 %v10135_v25 }
 0x3b5   : > { %10134 = vst [vmem:[#allocation41_spill] sm:$0xff] %v8705_v63  ;;  %v3776_v33 = vpop.f32.mrb[63].mxu0 }
 0x3ba   : > { %v8708_v61 = vpop.f32.mrb[64].mxu0 }
 0x3bb   : > { %10136 = vst [vmem:[#allocation44_spill] sm:$0xff] %v8708_v61  ;;  %v3781_v0 = vpop.f32.mrb[65].mxu0  ;;  %6125 = vmatmul.mubr.bf16.gmra.mrb[92].mxu1 %v10137_v15  ;;  %v6573_v15 = vld [vmem:[%s9822_s11 + $0x10] sm:$0xff]  }
 0x3bc   : > { %v8711_v11 = vpop.f32.mrb[66].mxu0  ;;  %6212 = vmatprep.subr.bf16.mxu0 %v6573_v15 }
 0x3bd   : > { %10138 = vst [vmem:[#allocation47_spill] sm:$0xff] %v8711_v11  ;;  %v3784_v16 = vpop.f32.mrb[67].mxu0  ;;  %6213 = vmatpush3.bf16.msra.mxu0 %v6573_v15 }
 0x3be   : > { %v8713_v62 = vpop.f32.mrb[8].mxu1 }
 0x3bf   : > { %10139 = vst [vmem:[#allocation50_spill] sm:$0xff] %v8713_v62  ;;  %v8715_v3 = vpop.f32.mrb[9].mxu1 }
 0x3c0   : > { %10140 = vst [vmem:[#allocation53_spill] sm:$0xff] %v8715_v3  ;;  %v8717_v12 = vpop.f32.mrb[10].mxu1 }
 0x3c1   : > { %10141 = vst [vmem:[#allocation55_spill] sm:$0xff] %v8717_v12  ;;  %v8719_v42 = vpop.f32.mrb[11].mxu1 }
 0x3c2   : > { %10142 = vst [vmem:[#allocation56_spill] sm:$0xff] %v8719_v42  ;;  %v8721_v63 = vpop.f32.mrb[68].mxu0 }
 0x3c3   : > { %10143 = vst [vmem:[#allocation57_spill] sm:$0xff] %v8721_v63  ;;  %v3789_v25 = vpop.f32.mrb[69].mxu0 }
 0x3c4   : > { %v8723_v33 = vpop.f32.mrb[70].mxu0 }
 0x3c5   : > { %10144 = vst [vmem:[#allocation58_spill] sm:$0xff] %v8723_v33  ;;  %v3792_v61 = vpop.f32.mrb[71].mxu0 }
 0x3ca   : > { %v8728_v16 = vpop.f32.mrb[72].mxu0 }
 0x3cb   : > { %10145 = vst [vmem:[#allocation59_spill] sm:$0xff] %v8728_v16  ;;  %v3797_v0 = vpop.f32.mrb[73].mxu0 }
 0x3cc   : > { %v8730_v11 = vpop.f32.mrb[74].mxu0 }
 0x3cd   : > { %10146 = vst [vmem:[#allocation60_spill] sm:$0xff] %v8730_v11  ;;  %v3800_v45 = vpop.f32.mrb[75].mxu0 }
 0x3ce   : > { %v8732_v12 = vpop.f32.mrb[12].mxu1 }
 0x3cf   : > { %10147 = vst [vmem:[#allocation61_spill] sm:$0xff] %v8732_v12  ;;  %v8734_v42 = vpop.f32.mrb[13].mxu1 }
 0x3d0   : > { %10148 = vst [vmem:[#allocation62_spill] sm:$0xff] %v8734_v42  ;;  %v8736_v25 = vpop.f32.mrb[14].mxu1 }
 0x3d1   : > { %10149 = vst [vmem:[#allocation63_spill] sm:$0xff] %v8736_v25  ;;  %v8738_v33 = vpop.f32.mrb[15].mxu1 }
 0x3d2   : > { %10150 = vst [vmem:[#allocation64_spill] sm:$0xff] %v8738_v33  ;;  %v8740_v61 = vpop.f32.mrb[76].mxu0 }
 0x3d3   : > { %10151 = vst [vmem:[#allocation65_spill] sm:$0xff] %v8740_v61  ;;  %v3805_v63 = vpop.f32.mrb[77].mxu0 }
 0x3d4   : > { %v8742_v3 = vpop.f32.mrb[78].mxu0 }
 0x3d5   : > { %10152 = vst [vmem:[#allocation66_spill] sm:$0xff] %v8742_v3  ;;  %v3808_v62 = vpop.f32.mrb[79].mxu0 }
 0x3da   : > { %v8744_v16 = vpop.f32.mrb[80].mxu0 }
 0x3db   : > { %10153 = vst [vmem:[#allocation67_spill] sm:$0xff] %v8744_v16  ;;  %v3813_v15 = vpop.f32.mrb[81].mxu0 }
 0x3dc   : > { %v8746_v0 = vpop.f32.mrb[82].mxu0  ;;  %v6574_v15 = vld [vmem:[%s9822_s11 + $0x18] sm:$0xff]  }
 0x3dd   : > { %10154 = vst [vmem:[#allocation68_spill] sm:$0xff] %v8746_v0  ;;  %v3816_v45 = vpop.f32.mrb[83].mxu0  ;;  %6214 = vmatprep.subr.bf16.mxu0 %v6574_v15 }
 0x3de   : > { %v8748_v11 = vpop.f32.mrb[16].mxu1  ;;  %6215 = vmatpush3.bf16.msra.mxu0 %v6574_v15 }
 0x3df   : > { %10155 = vst [vmem:[#allocation69_spill] sm:$0xff] %v8748_v11  ;;  %v8750_v12 = vpop.f32.mrb[17].mxu1 }
 0x3e0   : > { %10156 = vst [vmem:[#allocation70_spill] sm:$0xff] %v8750_v12  ;;  %v8752_v42 = vpop.f32.mrb[18].mxu1 }
 0x3e1   : > { %10157 = vst [vmem:[#allocation71_spill] sm:$0xff] %v8752_v42  ;;  %v8754_v25 = vpop.f32.mrb[19].mxu1 }
 0x3e2   : > { %10158 = vst [vmem:[#allocation72_spill] sm:$0xff] %v8754_v25  ;;  %v8756_v33 = vpop.f32.mrb[84].mxu0 }
 0x3e3   : > { %10159 = vst [vmem:[#allocation73_spill] sm:$0xff] %v8756_v33  ;;  %v3821_v63 = vpop.f32.mrb[85].mxu0 }
 0x3e4   : > { %v8758_v61 = vpop.f32.mrb[86].mxu0 }
 0x3e5   : > { %10160 = vst [vmem:[#allocation74_spill] sm:$0xff] %v8758_v61  ;;  %v3824_v62 = vpop.f32.mrb[87].mxu0 }
 0x3ea   : > { %v8763_v45 = vpop.f32.mrb[88].mxu0 }
 0x3eb   : > { %10161 = vst [vmem:[#allocation75_spill] sm:$0xff] %v8763_v45  ;;  %v3829_v0 = vpop.f32.mrb[89].mxu0 }
 0x3ec   : > { %v8765_v16 = vpop.f32.mrb[90].mxu0 }
 0x3ed   : > { %10162 = vst [vmem:[#allocation76_spill] sm:$0xff] %v8765_v16  ;;  %v3832_v3 = vpop.f32.mrb[91].mxu0  ;;  %v6575_v16 = vld [vmem:[%s9822_s11 + $0x20] sm:$0xff]  }
 0x3ee   : > { %v8767_v42 = vpop.f32.mrb[20].mxu1  ;;  %6216 = vmatprep.subr.bf16.mxu0 %v6575_v16 }
 0x3ef   : > { %10163 = vst [vmem:[#allocation77_spill] sm:$0xff] %v8767_v42  ;;  %v8769_v25 = vpop.f32.mrb[21].mxu1  ;;  %6217 = vmatpush3.bf16.msra.mxu0 %v6575_v16 }
 0x3f0   : > { %10164 = vst [vmem:[#allocation78_spill] sm:$0xff] %v8769_v25  ;;  %v8771_v63 = vpop.f32.mrb[22].mxu1 }
 0x3f1   : > { %10165 = vst [vmem:[#allocation79_spill] sm:$0xff] %v8771_v63  ;;  %v8773_v61 = vpop.f32.mrb[23].mxu1 }
 0x3f2   : > { %10166 = vst [vmem:[#allocation80_spill] sm:$0xff] %v8773_v61  ;;  %v8775_v62 = vpop.f32.mrb[92].mxu0 }
 0x3f3   : > { %10167 = vst [vmem:[#allocation81_spill] sm:$0xff] %v8775_v62  ;;  %v3837_v33 = vpop.f32.mrb[93].mxu0  ;;  %v8801_v62 = vld [vmem:[%s9819_s8] ss:$0 sm:$0xff] }
 0x3f4   : > { %v8777_v12 = vpop.f32.mrb[94].mxu0  ;;  %v3596_v16 = vadd.f32 %v8801_v62, %v8444_v36 }
 0x3f5   : > { %10168 = vst [vmem:[#allocation82_spill] sm:$0xff] %v8777_v12  ;;  %v3840_v11 = vpop.f32.mrb[95].mxu0 }
 0x3fe   : > { %v8779_v45 = vpop.f32.mrb[24].mxu1 }
 0x3ff   : > { %10169 = vst [vmem:[#allocation83_spill] sm:$0xff] %v8779_v45  ;;  %v8781_v0 = vpop.f32.mrb[25].mxu1  ;;  %v3591_v45 = vadd.f32 %v8801_v62, %v8432_v49  ;;  %v6576_v49 = vld [vmem:[%s9822_s11 + $0x28] sm:$0xff]  }
 0x400   : > { %10170 = vst [vmem:[#allocation84_spill] sm:$0xff] %v8781_v0  ;;  %v8783_v15 = vpop.f32.mrb[26].mxu1  ;;  %6218 = vmatprep.subr.bf16.mxu0 %v6576_v49 }
 0x401   : > { %10171 = vst [vmem:[#allocation85_spill] sm:$0xff] %v8783_v15  ;;  %v8785_v3 = vpop.f32.mrb[27].mxu1  ;;  %6219 = vmatpush3.bf16.msra.mxu0 %v6576_v49 }
 0x402   : > { %10172 = vst [vmem:[#allocation86_spill] sm:$0xff] %v8785_v3  ;;  %v8806_v3 = vld [vmem:[%s9817_s6] ss:$0 sm:$0xff] }
 0x403   : > { %v3100_v63 = vadd.f32 %v8806_v3, %v8513_v28  ;;  %v6577_v28 = vld [vmem:[%s9822_s11 + $0x30] sm:$0xff]  }
 0x404   : > { %6220 = vmatprep.subr.bf16.mxu0 %v6577_v28 }
 0x405   : > { %6221 = vmatpush3.bf16.msra.mxu0 %v6577_v28  ;;  %v3631_v28 = vadd.f32 %v8801_v62, %v8488_v7 }
 0x40e   : > { %v8790_v61 = vpop.f32.mrb[28].mxu1 }
 0x40f   : > { %10173 = vst [vmem:[#allocation87_spill] sm:$0xff] %v8790_v61  ;;  %v8792_v33 = vpop.f32.mrb[29].mxu1 }
 0x410   : > { %10174 = vst [vmem:[#allocation88_spill] sm:$0xff] %v8792_v33  ;;  %v8794_v12 = vpop.f32.mrb[30].mxu1  ;;  %v3588_v33 = vadd.f32 %v8801_v62, %v8430_v22  ;;  %v3111_v22 = vadd.f32 %v8515_v26, %v8806_v3 }
 0x411   : > { %10175 = vst [vmem:[#allocation89_spill] sm:$0xff] %v8794_v12  ;;  %v8796_v11 = vpop.f32.mrb[31].mxu1  ;;  %v3108_v12 = vadd.f32 %v8508_v60, %v8806_v3  ;;  %v3103_v60 = vadd.f32 %v8806_v3, %v8517_v17 }
 0x412   : > { %10176 = vst [vmem:[#allocation90_spill] sm:$0xff] %v8796_v11  ;;  %v3599_v11 = vadd.f32 %v8801_v62, %v8446_v40 }
 0x416   : > { %v6066_v61 = vpop.f32.mrb[32].mxu1 }
 0x417   : > { %v3885_v15 = vadd.f32 %v6066_v61, %v3596_v16  ;;  %v3876_v0 = vpop.f32.mrb[33].mxu1 }
 0x418   : > { %v3877_v25 = vadd.f32 %v3876_v0, %v3588_v33  ;;  %v6067_v36 = vpop.f32.mrb[34].mxu1  ;;  %v3615_v0 = vadd.f32 %v8801_v62, %v8466_v32 }
 0x419   : > { %v8822_v42 = vadd.f32 %v3885_v15, %v3108_v12  ;;  %v3888_v35 = vadd.f32 %v6067_v36, %v3599_v11  ;;  %v3879_v40 = vpop.f32.mrb[35].mxu1  ;;  %v3612_v12 = vadd.f32 %v8801_v62, %v8464_v37  ;;  %v3124_v15 = vadd.f32 %v8525_v47, %v8806_v3 }
 0x41a   : > { %v8826_v61 = vadd.f32 %v3877_v25, %v3100_v63  ;;  %v3880_v16 = vadd.f32 %v3879_v40, %v3591_v45  ;;  %v3607_v36 = vadd.f32 %v8801_v62, %v8452_v53 }
 0x41b   : > { %v8828_v38 = vadd.f32 %v3888_v35, %v3111_v22  ;;  %v3604_v35 = vadd.f32 %v8801_v62, %v8450_v24  ;;  %v9927_v37 = vmax.f32 %v8822_v42, 0.0  ;;  %v6578_v24 = vld [vmem:[%s9822_s11 + $0x38] sm:$0xff]   ;;  %v3116_v22 = vadd.f32 %v8806_v3, %v8530_v48 }
 0x41c   : > { %v8836_v26 = vadd.f32 %v3880_v16, %v3103_v60  ;;  %v9926_v25 = vmax.f32 %v8826_v61, 0.0  ;;  %v3127_v60 = vadd.f32 %v8535_v19, %v8806_v3  ;;  %v3119_v48 = vadd.f32 %v8806_v3, %v8537_v9  ;;  %6222 = vmatprep.subr.bf16.mxu0 %v6578_v24 }
 0x41d   : > { %v9925_v17 = vmax.f32 %v8828_v38, 0.0  ;;  %6223 = vmatpush3.bf16.msra.mxu0 %v6578_v24 }
 0x41e   : > { %v9922_v45 = vmax.f32 %v8836_v26, 0.0  ;;  %v6070_v63 = vpop.f32.mrb[36].mxu1 }
 0x41f   : > { %v3901_v33 = vadd.f32 %v6070_v63, %v3612_v12  ;;  %v3892_v11 = vpop.f32.mrb[37].mxu1  ;;  %v4260_v16 = vpack.c.bf16 %v9925_v17, %v9927_v37  ;;  %v10217_v17 = vld [vmem:[#allocation55_spill] sm:$0xff] }
 0x420   : > { %v3893_v40 = vadd.f32 %v3892_v11, %v3604_v35  ;;  %v6071_v32 = vpop.f32.mrb[38].mxu1  ;;  %v4259_v47 = vpack.c.bf16 %v9922_v45, %v9926_v25 }
 0x421   : > { %v8867_v49 = vadd.f32 %v3901_v33, %v3124_v15  ;;  %v3904_v53 = vadd.f32 %v6071_v32, %v3615_v0  ;;  %v3895_v12 = vpop.f32.mrb[39].mxu1  ;;  %v3628_v15 = vadd.f32 %v8801_v62, %v8483_v43  ;;  %v3620_v33 = vadd.f32 %v8801_v62, %v8470_v1 }
 0x422   : > { %v8871_v35 = vadd.f32 %v3893_v40, %v3116_v22  ;;  %v3896_v63 = vadd.f32 %v3895_v12, %v3607_v36  ;;  %6144 = vmatprep.mubr.bf16.mxu1 %v4259_v47  ;;  %v3140_v40 = vadd.f32 %v8542_v4, %v8806_v3  ;;  %v3132_v1 = vadd.f32 %v8806_v3, %v8547_v23 }
 0x423   : > { %v8873_v11 = vadd.f32 %v3904_v53, %v3127_v60  ;;  %6145 = vmatmul.mubr.bf16.vlgmr.msra.gmra.mrb[96].mxu1 %v4260_v16  ;;  %v9919_v32 = vmax.f32 %v8867_v49, 0.0  ;;  %v3623_v60 = vadd.f32 %v8801_v62, %v8472_v8  ;;  %v3143_v4 = vadd.f32 %v8549_v51, %v8806_v3 }
 0x424   : > { %v8875_v19 = vadd.f32 %v3896_v63, %v3119_v48  ;;  %v9918_v9 = vmax.f32 %v8871_v35, 0.0  ;;  %v3135_v23 = vadd.f32 %v8806_v3, %v8551_v10 }
 0x425   : > { %v9917_v0 = vmax.f32 %v8873_v11, 0.0 }
 0x426   : > { %v9914_v36 = vmax.f32 %v8875_v19, 0.0  ;;  %v6074_v22 = vpop.f32.mrb[40].mxu1 }
 0x427   : > { %v3917_v43 = vadd.f32 %v6074_v22, %v3628_v15  ;;  %v3908_v47 = vpop.f32.mrb[41].mxu1  ;;  %v4262_v24 = vpack.c.bf16 %v9917_v0, %v9919_v32  ;;  %v3644_v22 = vadd.f32 %v8801_v62, %v8502_v18  ;;  %v10206_v0 = vld [vmem:[#allocation33_spill] sm:$0xff] }
 0x428   : > { %v3909_v16 = vadd.f32 %v3908_v47, %v3620_v33  ;;  %v6075_v53 = vpop.f32.mrb[42].mxu1  ;;  %v4261_v7 = vpack.c.bf16 %v9914_v36, %v9918_v9 }
 0x429   : > { %v8903_v12 = vadd.f32 %v3917_v43, %v3140_v40  ;;  %v3920_v8 = vadd.f32 %v6075_v53, %v3631_v28  ;;  %v3911_v48 = vpop.f32.mrb[43].mxu1  ;;  %v3636_v28 = vadd.f32 %v8801_v62, %v8490_v58  ;;  %v3148_v58 = vadd.f32 %v8806_v3, %v8564_v54 }
 0x42a   : > { %v8907_v63 = vadd.f32 %v3909_v16, %v3132_v1  ;;  %v3912_v15 = vadd.f32 %v3911_v48, %v3623_v60  ;;  %6148 = vmatprep.mubr.bf16.mxu1 %v4261_v7  ;;  %v3647_v60 = vadd.f32 %v8801_v62, %v8504_v14  ;;  %v3156_v1 = vadd.f32 %v8559_v46, %v8806_v3 }
 0x42b   : > { %v8909_v33 = vadd.f32 %v3920_v8, %v3143_v4  ;;  %6149 = vmatmul.mubr.bf16.gmra.mrb[100].mxu1 %v4262_v24  ;;  %v9911_v16 = vmax.f32 %v8903_v12, 0.0  ;;  %v3639_v7 = vadd.f32 %v8801_v62, %v8492_v27  ;;  %v3159_v46 = vadd.f32 %v8566_v5, %v8806_v3 }
 0x42c   : > { %v8911_v51 = vadd.f32 %v3912_v15, %v3135_v23  ;;  %v9910_v43 = vmax.f32 %v8907_v63, 0.0  ;;  %v3151_v54 = vadd.f32 %v8806_v3, %v8568_v34 }
 0x42d   : > { %v9909_v40 = vmax.f32 %v8909_v33, 0.0 }
 0x42e   : > { %v9906_v10 = vmax.f32 %v8911_v51, 0.0  ;;  %v6078_v47 = vpop.f32.mrb[44].mxu1 }
 0x42f   : > { %v3933_v53 = vadd.f32 %v6078_v47, %v3644_v22  ;;  %v3924_v18 = vpop.f32.mrb[45].mxu1  ;;  %v4264_v8 = vpack.c.bf16 %v9909_v40, %v9911_v16  ;;  %v3660_v47 = vadd.f32 %v8801_v62, %v8522_v20  ;;  %v10198_v40 = vld [vmem:[#allocation24_spill] sm:$0xff] }
 0x430   : > { %v3925_v4 = vadd.f32 %v3924_v18, %v3636_v28  ;;  %v6079_v24 = vpop.f32.mrb[46].mxu1  ;;  %v4263_v14 = vpack.c.bf16 %v9906_v10, %v9910_v43 }
 0x431   : > { %v8939_v48 = vadd.f32 %v3933_v53, %v3156_v1  ;;  %v3936_v27 = vadd.f32 %v6079_v24, %v3647_v60  ;;  %v3927_v23 = vpop.f32.mrb[47].mxu1  ;;  %v3652_v60 = vadd.f32 %v8801_v62, %v8506_v30  ;;  %v3164_v30 = vadd.f32 %v8806_v3, %v8578_v44 }
 0x432   : > { %v8943_v15 = vadd.f32 %v3925_v4, %v3148_v58  ;;  %v3928_v22 = vadd.f32 %v3927_v23, %v3639_v7  ;;  %6152 = vmatprep.mubr.bf16.mxu1 %v4263_v14  ;;  %v3663_v7 = vadd.f32 %v8801_v62, %v8527_v50  ;;  %v3172_v58 = vadd.f32 %v8576_v21, %v8806_v3 }
 0x433   : > { %v8945_v28 = vadd.f32 %v3936_v27, %v3159_v46  ;;  %6153 = vmatmul.mubr.bf16.gmra.mrb[104].mxu1 %v4264_v8  ;;  %v9903_v4 = vmax.f32 %v8939_v48, 0.0  ;;  %v3655_v14 = vadd.f32 %v8801_v62, %v8510_v13  ;;  %v3175_v21 = vadd.f32 %v8580_v52, %v8806_v3 }
 0x434   : > { %v8947_v5 = vadd.f32 %v3928_v22, %v3151_v54  ;;  %v9902_v53 = vmax.f32 %v8943_v15, 0.0  ;;  %v3167_v44 = vadd.f32 %v8806_v3, %v8582_v2 }
 0x435   : > { %v9901_v1 = vmax.f32 %v8945_v28, 0.0 }
 0x436   : > { %v9898_v34 = vmax.f32 %v8947_v5, 0.0  ;;  %v6082_v18 = vpop.f32.mrb[48].mxu1 }
 0x437   : > { %v3949_v24 = vadd.f32 %v6082_v18, %v3660_v47  ;;  %v3940_v20 = vpop.f32.mrb[49].mxu1  ;;  %v4266_v27 = vpack.c.bf16 %v9901_v1, %v9903_v4  ;;  %v3676_v18 = vadd.f32 %v8801_v62, %v8553_v56  ;;  %v10190_v1 = vld [vmem:[#allocation16_spill] sm:$0xff] }
 0x438   : > { %v3941_v46 = vadd.f32 %v3940_v20, %v3652_v60  ;;  %v6083_v8 = vpop.f32.mrb[50].mxu1  ;;  %v4265_v50 = vpack.c.bf16 %v9898_v34, %v9902_v53 }
 0x439   : > { %v8975_v23 = vadd.f32 %v3949_v24, %v3172_v58  ;;  %v3952_v13 = vadd.f32 %v6083_v8, %v3663_v7  ;;  %v3943_v54 = vpop.f32.mrb[51].mxu1  ;;  %v3668_v7 = vadd.f32 %v8801_v62, %v8539_v41  ;;  %v3180_v41 = vadd.f32 %v8806_v3, %v8601_v57 }
 0x43a   : > { %v8979_v22 = vadd.f32 %v3941_v46, %v3164_v30  ;;  %v3944_v47 = vadd.f32 %v3943_v54, %v3655_v14  ;;  %6156 = vmatprep.mubr.bf16.mxu1 %v4265_v50  ;;  %v3679_v14 = vadd.f32 %v8801_v62, %v8561_v29  ;;  %v3188_v30 = vadd.f32 %v8599_v6, %v8806_v3 }
 0x43b   : > { %v8981_v60 = vadd.f32 %v3952_v13, %v3175_v21  ;;  %6157 = vmatmul.mubr.bf16.gmra.mrb[108].mxu1 %v4266_v27  ;;  %v9895_v46 = vmax.f32 %v8975_v23, 0.0  ;;  %v3671_v50 = vadd.f32 %v8801_v62, %v8544_v59  ;;  %v3191_v6 = vadd.f32 %v8603_v31, %v8806_v3 }
 0x43c   : > { %v8983_v52 = vadd.f32 %v3944_v47, %v3167_v44  ;;  %v9894_v24 = vmax.f32 %v8979_v22, 0.0  ;;  %v3183_v57 = vadd.f32 %v8806_v3, %v8605_v55 }
 0x43d   : > { %v9893_v58 = vmax.f32 %v8981_v60, 0.0 }
 0x43e   : > { %v9892_v2 = vmax.f32 %v8983_v52, 0.0  ;;  %v6086_v20 = vpop.f32.mrb[52].mxu1 }
 0x43f   : > { %v3965_v8 = vadd.f32 %v6086_v20, %v3676_v18  ;;  %v3956_v56 = vpop.f32.mrb[53].mxu1  ;;  %v4268_v13 = vpack.c.bf16 %v9893_v58, %v9895_v46  ;;  %v3692_v20 = vadd.f32 %v8801_v62, %v8584_v39  ;;  %v10182_v58 = vld [vmem:[#allocation52_spill] sm:$0xff] }
 0x440   : > { %v3957_v21 = vadd.f32 %v3956_v56, %v3668_v7  ;;  %v6087_v27 = vpop.f32.mrb[54].mxu1  ;;  %v4267_v29 = vpack.c.bf16 %v9892_v2, %v9894_v24 }
 0x441   : > { %v9011_v54 = vadd.f32 %v3965_v8, %v3188_v30  ;;  %v3968_v59 = vadd.f32 %v6087_v27, %v3679_v14  ;;  %v3959_v44 = vpop.f32.mrb[55].mxu1  ;;  %v10177_v8 = vld [vmem:[#allocation34_spill] sm:$0xff]  ;;  %v10179_v27 = vld [vmem:[#allocation49_spill] sm:$0xff] }
 0x442   : > { %v9015_v47 = vadd.f32 %v3957_v21, %v3180_v41  ;;  %v3960_v18 = vadd.f32 %v3959_v44, %v3671_v50  ;;  %6160 = vmatprep.mubr.bf16.mxu1 %v4267_v29  ;;  %v3684_v14 = vadd.f32 %v8801_v62, %v10177_v8  ;;  %v10178_v50 = vld [vmem:[#allocation36_spill] sm:$0xff]  ;;  %v3204_v29 = vadd.f32 %v10179_v27, %v8806_v3 }
 0x443   : > { %v9017_v7 = vadd.f32 %v3968_v59, %v3191_v6  ;;  %6161 = vmatmul.mubr.bf16.gmra.mrb[112].mxu1 %v4268_v13  ;;  %v3695_v21 = vadd.f32 %v8801_v62, %v10178_v50  ;;  %v9900_v6 = vmax.f32 %v9011_v54, 0.0  ;;  %v10180_v59 = vld [vmem:[#allocation37_spill] sm:$0xff]  ;;  %v3207_v27 = vadd.f32 %v10182_v58, %v8806_v3 }
 0x444   : > { %v9019_v31 = vadd.f32 %v3960_v18, %v3183_v57  ;;  %v9897_v56 = vmax.f32 %v9015_v47, 0.0  ;;  %v3687_v44 = vadd.f32 %v8801_v62, %v10180_v59  ;;  %v10181_v57 = vld [vmem:[#allocation48_spill] sm:$0xff] }
 0x445   : > { %v9899_v30 = vmax.f32 %v9017_v7, 0.0  ;;  %v3196_v18 = vadd.f32 %v8806_v3, %v10181_v57  ;;  %v10183_v57 = vld [vmem:[#allocation51_spill] sm:$0xff] }
 0x446   : > { %v9896_v55 = vmax.f32 %v9019_v31, 0.0  ;;  %v6090_v41 = vpop.f32.mrb[56].mxu1 }
 0x447   : > { %v3981_v13 = vadd.f32 %v6090_v41, %v3692_v20  ;;  %v3972_v39 = vpop.f32.mrb[57].mxu1  ;;  %v4270_v20 = vpack.c.bf16 %v9899_v30, %v9900_v6 }
 0x448   : > { %v3973_v8 = vadd.f32 %v3972_v39, %v3684_v14  ;;  %v6091_v2 = vpop.f32.mrb[58].mxu1  ;;  %v4269_v50 = vpack.c.bf16 %v9896_v55, %v9897_v56  ;;  %v3199_v14 = vadd.f32 %v8806_v3, %v10183_v57  ;;  %v10184_v56 = vld [vmem:[#allocation43_spill] sm:$0xff] }
 0x449   : > { %v9047_v41 = vadd.f32 %v3981_v13, %v3204_v29  ;;  %v3984_v59 = vadd.f32 %v6091_v2, %v3695_v21  ;;  %v3975_v24 = vpop.f32.mrb[59].mxu1  ;;  %v3708_v34 = vadd.f32 %v8801_v62, %v10184_v56  ;;  %v10185_v13 = vld [vmem:[#allocation40_spill] sm:$0xff] }
 0x44a   : > { %v9051_v39 = vadd.f32 %v3973_v8, %v3196_v18  ;;  %v3976_v46 = vadd.f32 %v3975_v24, %v3687_v44  ;;  %6164 = vmatprep.mubr.bf16.mxu1 %v4269_v50  ;;  %v3700_v2 = vadd.f32 %v8801_v62, %v10185_v13  ;;  %v10186_v24 = vld [vmem:[#allocation42_spill] sm:$0xff] }
 0x44b   : > { %v9053_v55 = vadd.f32 %v3984_v59, %v3207_v27  ;;  %6165 = vmatmul.mubr.bf16.gmra.mrb[116].mxu1 %v4270_v20  ;;  %v3711_v44 = vadd.f32 %v8801_v62, %v10186_v24  ;;  %v10187_v50 = vld [vmem:[#allocation14_spill] sm:$0xff]  ;;  %v9908_v27 = vmax.f32 %v9047_v41, 0.0  ;;  %v10188_v59 = vld [vmem:[#allocation39_spill] sm:$0xff] }
 0x44c   : > { %v9055_v58 = vadd.f32 %v3976_v46, %v3199_v14  ;;  %v9905_v21 = vmax.f32 %v9051_v39, 0.0  ;;  %v3220_v46 = vadd.f32 %v10187_v50, %v8806_v3  ;;  %v3703_v57 = vadd.f32 %v8801_v62, %v10188_v59  ;;  %v10189_v14 = vld [vmem:[#allocation17_spill] sm:$0xff] }
 0x44d   : > { %v9907_v29 = vmax.f32 %v9053_v55, 0.0  ;;  %v3212_v13 = vadd.f32 %v8806_v3, %v10189_v14  ;;  %v3223_v50 = vadd.f32 %v10190_v1, %v8806_v3  ;;  %v10191_v14 = vld [vmem:[#allocation19_spill] sm:$0xff] }
 0x44e   : > { %v9904_v18 = vmax.f32 %v9055_v58, 0.0  ;;  %v6094_v8 = vpop.f32.mrb[60].mxu1 }
 0x44f   : > { %v3997_v20 = vadd.f32 %v6094_v8, %v3708_v34  ;;  %v3988_v56 = vpop.f32.mrb[61].mxu1  ;;  %v4272_v34 = vpack.c.bf16 %v9907_v29, %v9908_v27 }
 0x450   : > { %v3989_v30 = vadd.f32 %v3988_v56, %v3700_v2  ;;  %v6095_v6 = vpop.f32.mrb[62].mxu1  ;;  %v4271_v24 = vpack.c.bf16 %v9904_v18, %v9905_v21  ;;  %v3215_v2 = vadd.f32 %v8806_v3, %v10191_v14  ;;  %v10192_v21 = vld [vmem:[#allocation54_spill] sm:$0xff] }
 0x451   : > { %v9083_v8 = vadd.f32 %v3997_v20, %v3220_v46  ;;  %v4000_v59 = vadd.f32 %v6095_v6, %v3711_v44  ;;  %v3991_v53 = vpop.f32.mrb[63].mxu1  ;;  %v3724_v10 = vadd.f32 %v8801_v62, %v10192_v21  ;;  %v10193_v20 = vld [vmem:[#allocation46_spill] sm:$0xff] }
 0x452   : > { %v9087_v56 = vadd.f32 %v3989_v30, %v3212_v13  ;;  %v3992_v4 = vadd.f32 %v3991_v53, %v3703_v57  ;;  %6168 = vmatprep.mubr.bf16.mxu1 %v4271_v24  ;;  %v3716_v6 = vadd.f32 %v8801_v62, %v10193_v20  ;;  %v10194_v53 = vld [vmem:[#allocation13_spill] sm:$0xff]  ;;  %v10195_v24 = vld [vmem:[#allocation22_spill] sm:$0xff] }
 0x453   : > { %v9089_v18 = vadd.f32 %v4000_v59, %v3223_v50  ;;  %6169 = vmatmul.mubr.bf16.gmra.mrb[120].mxu1 %v4272_v34  ;;  %v3727_v57 = vadd.f32 %v8801_v62, %v10194_v53  ;;  %v9916_v50 = vmax.f32 %v9083_v8, 0.0  ;;  %v10196_v59 = vld [vmem:[#allocation45_spill] sm:$0xff] }
 0x454   : > { %v9091_v1 = vadd.f32 %v3992_v4, %v3215_v2  ;;  %v9913_v44 = vmax.f32 %v9087_v56, 0.0  ;;  %v3236_v4 = vadd.f32 %v10195_v24, %v8806_v3  ;;  %v3719_v14 = vadd.f32 %v8801_v62, %v10196_v59  ;;  %v10197_v2 = vld [vmem:[#allocation25_spill] sm:$0xff] }
 0x455   : > { %v9915_v46 = vmax.f32 %v9089_v18, 0.0  ;;  %v3228_v20 = vadd.f32 %v8806_v3, %v10197_v2  ;;  %v3239_v24 = vadd.f32 %v10198_v40, %v8806_v3  ;;  %v10199_v2 = vld [vmem:[#allocation26_spill] sm:$0xff] }
 0x456   : > { %v9912_v30 = vmax.f32 %v9091_v1, 0.0  ;;  %v6098_v13 = vpop.f32.mrb[64].mxu1 }
 0x457   : > { %v4013_v34 = vadd.f32 %v6098_v13, %v3724_v10  ;;  %v4004_v21 = vpop.f32.mrb[65].mxu1  ;;  %v4274_v10 = vpack.c.bf16 %v9915_v46, %v9916_v50 }
 0x458   : > { %v4005_v29 = vadd.f32 %v4004_v21, %v3716_v6  ;;  %v6099_v27 = vpop.f32.mrb[66].mxu1  ;;  %v4273_v53 = vpack.c.bf16 %v9912_v30, %v9913_v44  ;;  %v3231_v6 = vadd.f32 %v8806_v3, %v10199_v2  ;;  %v10200_v44 = vld [vmem:[#allocation18_spill] sm:$0xff] }
 0x459   : > { %v9119_v13 = vadd.f32 %v4013_v34, %v3236_v4  ;;  %v4016_v59 = vadd.f32 %v6099_v27, %v3727_v57  ;;  %v4007_v43 = vpop.f32.mrb[67].mxu1  ;;  %v3740_v36 = vadd.f32 %v8801_v62, %v10200_v44  ;;  %v10201_v34 = vld [vmem:[#allocation12_spill] sm:$0xff] }
 0x45a   : > { %v9123_v21 = vadd.f32 %v4005_v29, %v3228_v20  ;;  %v4008_v16 = vadd.f32 %v4007_v43, %v3719_v14  ;;  %6172 = vmatprep.mubr.bf16.mxu1 %v4273_v53  ;;  %v3732_v27 = vadd.f32 %v8801_v62, %v10201_v34  ;;  %v10202_v43 = vld [vmem:[#allocation21_spill] sm:$0xff]  ;;  %v10203_v53 = vld [vmem:[#allocation31_spill] sm:$0xff] }
 0x45b   : > { %v9125_v30 = vadd.f32 %v4016_v59, %v3239_v24  ;;  %6173 = vmatmul.mubr.bf16.gmra.mrb[124].mxu1 %v4274_v10  ;;  %v3743_v14 = vadd.f32 %v8801_v62, %v10202_v43  ;;  %v9924_v24 = vmax.f32 %v9119_v13, 0.0  ;;  %v10204_v59 = vld [vmem:[#allocation15_spill] sm:$0xff] }
 0x45c   : > { %v9127_v40 = vadd.f32 %v4008_v16, %v3231_v6  ;;  %v9921_v57 = vmax.f32 %v9123_v21, 0.0  ;;  %v3252_v16 = vadd.f32 %v10203_v53, %v8806_v3  ;;  %v3735_v2 = vadd.f32 %v8801_v62, %v10204_v59  ;;  %v10205_v6 = vld [vmem:[#allocation32_spill] sm:$0xff] }
 0x45d   : > { %v9923_v4 = vmax.f32 %v9125_v30, 0.0  ;;  %v3244_v34 = vadd.f32 %v8806_v3, %v10205_v6  ;;  %v3255_v53 = vadd.f32 %v10206_v0, %v8806_v3  ;;  %v10207_v6 = vld [vmem:[#allocation35_spill] sm:$0xff] }
 0x45e   : > { %v9920_v29 = vmax.f32 %v9127_v40, 0.0  ;;  %v6102_v20 = vpop.f32.mrb[68].mxu1 }
 0x45f   : > { %v4029_v10 = vadd.f32 %v6102_v20, %v3740_v36  ;;  %v4020_v44 = vpop.f32.mrb[69].mxu1  ;;  %v4276_v36 = vpack.c.bf16 %v9923_v4, %v9924_v24 }
 0x460   : > { %v4021_v46 = vadd.f32 %v4020_v44, %v3732_v27  ;;  %v6103_v50 = vpop.f32.mrb[70].mxu1  ;;  %v4275_v43 = vpack.c.bf16 %v9920_v29, %v9921_v57  ;;  %v3247_v27 = vadd.f32 %v8806_v3, %v10207_v6  ;;  %v10211_v57 = vld [vmem:[#allocation27_spill] sm:$0xff] }
 0x461   : > { %v9155_v20 = vadd.f32 %v4029_v10, %v3252_v16  ;;  %v4032_v59 = vadd.f32 %v6103_v50, %v3743_v14  ;;  %v4023_v9 = vpop.f32.mrb[71].mxu1  ;;  %v3756_v45 = vadd.f32 %v8801_v62, %v10211_v57  ;;  %v10212_v10 = vld [vmem:[#allocation20_spill] sm:$0xff] }
 0x462   : > { %v9159_v44 = vadd.f32 %v4021_v46, %v3244_v34  ;;  %v4024_v32 = vadd.f32 %v4023_v9, %v3735_v2  ;;  %6176 = vmatprep.mubr.bf16.mxu1 %v4275_v43  ;;  %v3748_v50 = vadd.f32 %v8801_v62, %v10212_v10  ;;  %v10213_v9 = vld [vmem:[#allocation28_spill] sm:$0xff]  ;;  %v10214_v43 = vld [vmem:[#allocation50_spill] sm:$0xff] }
 0x463   : > { %v9161_v29 = vadd.f32 %v4032_v59, %v3255_v53  ;;  %6177 = vmatmul.mubr.bf16.gmra.mrb[128].mxu1 %v4276_v36  ;;  %v3759_v2 = vadd.f32 %v8801_v62, %v10213_v9  ;;  %v9932_v53 = vmax.f32 %v9155_v20, 0.0  ;;  %v10215_v59 = vld [vmem:[#allocation23_spill] sm:$0xff] }
 0x464   : > { %10208 = vst [vmem:[#allocation34_spill] sm:$0xff] %v9159_v44  ;;  %v9163_v0 = vadd.f32 %v4024_v32, %v3247_v27  ;;  %v9929_v14 = vmax.f32 %v9159_v44, 0.0  ;;  %v3268_v32 = vadd.f32 %v10214_v43, %v8806_v3  ;;  %v3751_v6 = vadd.f32 %v8801_v62, %v10215_v59  ;;  %v10216_v27 = vld [vmem:[#allocation53_spill] sm:$0xff] }
 0x465   : > { %10209 = vst [vmem:[#allocation36_spill] sm:$0xff] %v9161_v29  ;;  %v9931_v16 = vmax.f32 %v9161_v29, 0.0  ;;  %v3260_v10 = vadd.f32 %v8806_v3, %v10216_v27  ;;  %v3271_v43 = vadd.f32 %v10217_v17, %v8806_v3  ;;  %v10219_v27 = vld [vmem:[#allocation56_spill] sm:$0xff] }
 0x466   : > { %10210 = vst [vmem:[#allocation49_spill] sm:$0xff] %v9163_v0  ;;  %v9928_v46 = vmax.f32 %v9163_v0, 0.0  ;;  %v6106_v34 = vpop.f32.mrb[72].mxu1 }
 0x467   : > { %v4045_v36 = vadd.f32 %v6106_v34, %v3756_v45  ;;  %v4036_v57 = vpop.f32.mrb[73].mxu1  ;;  %v4278_v45 = vpack.c.bf16 %v9931_v16, %v9932_v53 }
 0x468   : > { %v4037_v4 = vadd.f32 %v4036_v57, %v3748_v50  ;;  %v6107_v24 = vpop.f32.mrb[74].mxu1  ;;  %v4277_v9 = vpack.c.bf16 %v9928_v46, %v9929_v14  ;;  %v3263_v50 = vadd.f32 %v8806_v3, %v10219_v27  ;;  %v10223_v14 = vld [vmem:[#allocation38_spill] sm:$0xff] }
 0x469   : > { %v9191_v34 = vadd.f32 %v4045_v36, %v3268_v32  ;;  %v4048_v59 = vadd.f32 %v6107_v24, %v3759_v2  ;;  %v4039_v25 = vpop.f32.mrb[75].mxu1  ;;  %v3772_v0 = vadd.f32 %v8801_v62, %v10223_v14  ;;  %v10224_v36 = vld [vmem:[#allocation29_spill] sm:$0xff]  ;;  %v10229_v32 = vld [vmem:[#allocation63_spill] sm:$0xff] }
 0x46a   : > { %v9195_v57 = vadd.f32 %v4037_v4, %v3260_v10  ;;  %v4040_v37 = vadd.f32 %v4039_v25, %v3751_v6  ;;  %6180 = vmatprep.mubr.bf16.mxu1 %v4277_v9  ;;  %v3764_v24 = vadd.f32 %v8801_v62, %v10224_v36  ;;  %v10225_v25 = vld [vmem:[#allocation41_spill] sm:$0xff] }
 0x46b   : > { %10218 = vst [vmem:[#allocation37_spill] sm:$0xff] %v9191_v34  ;;  %v9197_v46 = vadd.f32 %v4048_v59, %v3271_v43  ;;  %6181 = vmatmul.mubr.bf16.gmra.mrb[132].mxu1 %v4278_v45  ;;  %v3775_v6 = vadd.f32 %v8801_v62, %v10225_v25  ;;  %v10226_v9 = vld [vmem:[#allocation61_spill] sm:$0xff]  ;;  %v9939_v43 = vmax.f32 %v9191_v34, 0.0  ;;  %v10227_v59 = vld [vmem:[#allocation30_spill] sm:$0xff] }
 0x46c   : > { %10220 = vst [vmem:[#allocation48_spill] sm:$0xff] %v9195_v57  ;;  %v9199_v17 = vadd.f32 %v4040_v37, %v3263_v50  ;;  %v9937_v2 = vmax.f32 %v9195_v57, 0.0  ;;  %v3284_v37 = vadd.f32 %v10226_v9, %v8806_v3  ;;  %v3767_v27 = vadd.f32 %v8801_v62, %v10227_v59  ;;  %v10228_v50 = vld [vmem:[#allocation62_spill] sm:$0xff] }
 0x46d   : > { %10221 = vst [vmem:[#allocation52_spill] sm:$0xff] %v9197_v46  ;;  %v3276_v36 = vadd.f32 %v8806_v3, %v10228_v50  ;;  %v3287_v9 = vadd.f32 %v10229_v32, %v8806_v3  ;;  %v10232_v50 = vld [vmem:[#allocation64_spill] sm:$0xff] }
 0x46e   : > { %10222 = vst [vmem:[#allocation51_spill] sm:$0xff] %v9199_v17  ;;  %v9936_v4 = vmax.f32 %v9199_v17, 0.0  ;;  %v6110_v10 = vpop.f32.mrb[76].mxu1 }
 0x46f   : > { %v4061_v45 = vadd.f32 %v6110_v10, %v3772_v0  ;;  %v4052_v14 = vpop.f32.mrb[77].mxu1  ;;  %v10230_v0 = vmax.f32 %v9197_v46, 0.0 }
 0x470   : > { %v4053_v16 = vadd.f32 %v4052_v14, %v3764_v24  ;;  %v6111_v53 = vpop.f32.mrb[78].mxu1  ;;  %v4279_v25 = vpack.c.bf16 %v9936_v4, %v9937_v2  ;;  %v3279_v24 = vadd.f32 %v8806_v3, %v10232_v50  ;;  %v10236_v2 = vld [vmem:[#allocation57_spill] sm:$0xff]  ;;  %v10241_v50 = vld [vmem:[#allocation70_spill] sm:$0xff] }
 0x471   : > { %v4280_v10 = vpack.c.bf16 %v10230_v0, %v9939_v43  ;;  %v9227_v29 = vadd.f32 %v4061_v45, %v3284_v37  ;;  %v4064_v59 = vadd.f32 %v6111_v53, %v3775_v6  ;;  %v4055_v44 = vpop.f32.mrb[79].mxu1  ;;  %v3788_v17 = vadd.f32 %v8801_v62, %v10236_v2  ;;  %v10237_v45 = vld [vmem:[#allocation44_spill] sm:$0xff]  ;;  %v10242_v37 = vld [vmem:[#allocation71_spill] sm:$0xff] }
 0x472   : > { %v9231_v14 = vadd.f32 %v4053_v16, %v3276_v36  ;;  %v4056_v57 = vadd.f32 %v4055_v44, %v3767_v27  ;;  %6184 = vmatprep.mubr.bf16.mxu1 %v4279_v25  ;;  %v3780_v53 = vadd.f32 %v8801_v62, %v10237_v45  ;;  %v10238_v44 = vld [vmem:[#allocation58_spill] sm:$0xff]  ;;  %v10239_v25 = vld [vmem:[#allocation69_spill] sm:$0xff] }
 0x473   : > { %10231 = vst [vmem:[#allocation43_spill] sm:$0xff] %v9227_v29  ;;  %v9233_v4 = vadd.f32 %v4064_v59, %v3287_v9  ;;  %6185 = vmatmul.mubr.bf16.gmra.mrb[136].mxu1 %v4280_v10  ;;  %v3791_v27 = vadd.f32 %v8801_v62, %v10238_v44  ;;  %v9946_v9 = vmax.f32 %v9227_v29, 0.0  ;;  %v10240_v10 = vld [vmem:[#allocation47_spill] sm:$0xff] }
 0x474   : > { %10233 = vst [vmem:[#allocation40_spill] sm:$0xff] %v9231_v14  ;;  %v9235_v32 = vadd.f32 %v4056_v57, %v3279_v24  ;;  %v9944_v6 = vmax.f32 %v9231_v14, 0.0  ;;  %v3300_v57 = vadd.f32 %v10239_v25, %v8806_v3  ;;  %v3783_v59 = vadd.f32 %v8801_v62, %v10240_v10 }
 0x475   : > { %10234 = vst [vmem:[#allocation42_spill] sm:$0xff] %v9233_v4  ;;  %v3292_v24 = vadd.f32 %v8806_v3, %v10241_v50  ;;  %v3303_v25 = vadd.f32 %v10242_v37, %v8806_v3  ;;  %v10245_v50 = vld [vmem:[#allocation72_spill] sm:$0xff] }
 0x476   : > { %10235 = vst [vmem:[#allocation14_spill] sm:$0xff] %v9235_v32  ;;  %v9943_v16 = vmax.f32 %v9235_v32, 0.0  ;;  %v6114_v36 = vpop.f32.mrb[80].mxu1 }
 0x477   : > { %v4077_v0 = vadd.f32 %v6114_v36, %v3788_v17  ;;  %v4068_v2 = vpop.f32.mrb[81].mxu1  ;;  %v10243_v17 = vmax.f32 %v9233_v4, 0.0 }
 0x478   : > { %v4069_v45 = vadd.f32 %v4068_v2, %v3780_v53  ;;  %v6115_v43 = vpop.f32.mrb[82].mxu1  ;;  %v4281_v44 = vpack.c.bf16 %v9943_v16, %v9944_v6  ;;  %v3295_v53 = vadd.f32 %v8806_v3, %v10245_v50  ;;  %v10249_v6 = vld [vmem:[#allocation65_spill] sm:$0xff]  ;;  %v10254_v50 = vld [vmem:[#allocation78_spill] sm:$0xff] }
 0x479   : > { %v4282_v36 = vpack.c.bf16 %v10243_v17, %v9946_v9  ;;  %v9263_v46 = vadd.f32 %v4077_v0, %v3300_v57  ;;  %v4080_v10 = vadd.f32 %v6115_v43, %v3791_v27  ;;  %v4071_v34 = vpop.f32.mrb[83].mxu1  ;;  %v3804_v32 = vadd.f32 %v8801_v62, %v10249_v6  ;;  %v10250_v0 = vld [vmem:[#allocation59_spill] sm:$0xff] }
 0x47a   : > { %v9267_v2 = vadd.f32 %v4069_v45, %v3292_v24  ;;  %v4072_v14 = vadd.f32 %v4071_v34, %v3783_v59  ;;  %6188 = vmatprep.mubr.bf16.mxu1 %v4281_v44  ;;  %v3796_v43 = vadd.f32 %v8801_v62, %v10250_v0  ;;  %v10251_v34 = vld [vmem:[#allocation66_spill] sm:$0xff]  ;;  %v10252_v44 = vld [vmem:[#allocation77_spill] sm:$0xff]  ;;  %v10255_v57 = vld [vmem:[#allocation79_spill] sm:$0xff] }
 0x47b   : > { %10244 = vst [vmem:[#allocation39_spill] sm:$0xff] %v9263_v46  ;;  %v9269_v16 = vadd.f32 %v4080_v10, %v3303_v25  ;;  %6189 = vmatmul.mubr.bf16.gmra.mrb[140].mxu1 %v4282_v36  ;;  %v3807_v59 = vadd.f32 %v8801_v62, %v10251_v34  ;;  %v9953_v25 = vmax.f32 %v9263_v46, 0.0  ;;  %v10253_v36 = vld [vmem:[#allocation60_spill] sm:$0xff] }
 0x47c   : > { %10246 = vst [vmem:[#allocation17_spill] sm:$0xff] %v9267_v2  ;;  %v9271_v37 = vadd.f32 %v4072_v14, %v3295_v53  ;;  %v9951_v27 = vmax.f32 %v9267_v2, 0.0  ;;  %v3316_v14 = vadd.f32 %v10252_v44, %v8806_v3  ;;  %v3799_v10 = vadd.f32 %v8801_v62, %v10253_v36 }
 0x47d   : > { %10247 = vst [vmem:[#allocation16_spill] sm:$0xff] %v9269_v16  ;;  %v3308_v53 = vadd.f32 %v8806_v3, %v10254_v50  ;;  %v3319_v44 = vadd.f32 %v10255_v57, %v8806_v3  ;;  %v10257_v50 = vld [vmem:[#allocation80_spill] sm:$0xff] }
 0x47e   : > { %10248 = vst [vmem:[#allocation19_spill] sm:$0xff] %v9271_v37  ;;  %v9950_v24 = vmax.f32 %v9271_v37, 0.0  ;;  %v6118_v45 = vpop.f32.mrb[84].mxu1 }
 0x47f   : > { %v4093_v17 = vadd.f32 %v6118_v45, %v3804_v32  ;;  %v4084_v6 = vpop.f32.mrb[85].mxu1  ;;  %v10256_v32 = vmax.f32 %v9269_v16, 0.0 }
 0x480   : > { %v4085_v0 = vadd.f32 %v4084_v6, %v3796_v43  ;;  %v6119_v9 = vpop.f32.mrb[86].mxu1  ;;  %v4283_v34 = vpack.c.bf16 %v9950_v24, %v9951_v27  ;;  %v3311_v43 = vadd.f32 %v8806_v3, %v10257_v50  ;;  %v10261_v27 = vld [vmem:[#allocation73_spill] sm:$0xff]  ;;  %v10266_v50 = vld [vmem:[#allocation84_spill] sm:$0xff] }
 0x481   : > { %v4284_v45 = vpack.c.bf16 %v10256_v32, %v9953_v25  ;;  %v9299_v4 = vadd.f32 %v4093_v17, %v3316_v14  ;;  %v4096_v36 = vadd.f32 %v6119_v9, %v3807_v59  ;;  %v4087_v29 = vpop.f32.mrb[87].mxu1  ;;  %v3820_v37 = vadd.f32 %v8801_v62, %v10261_v27  ;;  %v10262_v17 = vld [vmem:[#allocation67_spill] sm:$0xff]  ;;  %v10267_v14 = vld [vmem:[#allocation85_spill] sm:$0xff] }
 0x482   : > { %v9303_v6 = vadd.f32 %v4085_v0, %v3308_v53  ;;  %v4088_v2 = vadd.f32 %v4087_v29, %v3799_v10  ;;  %6192 = vmatprep.mubr.bf16.mxu1 %v4283_v34  ;;  %v3812_v9 = vadd.f32 %v8801_v62, %v10262_v17  ;;  %v10263_v29 = vld [vmem:[#allocation74_spill] sm:$0xff]  ;;  %v10264_v34 = vld [vmem:[#allocation83_spill] sm:$0xff] }
 0x483   : > { %v9305_v24 = vadd.f32 %v4096_v36, %v3319_v44  ;;  %6193 = vmatmul.mubr.bf16.gmra.mrb[144].mxu1 %v4284_v45  ;;  %v3823_v10 = vadd.f32 %v8801_v62, %v10263_v29  ;;  %v9960_v44 = vmax.f32 %v9299_v4, 0.0  ;;  %v10265_v45 = vld [vmem:[#allocation68_spill] sm:$0xff] }
 0x484   : > { %10258 = vst [vmem:[#allocation54_spill] sm:$0xff] %v9303_v6  ;;  %v9307_v57 = vadd.f32 %v4088_v2, %v3311_v43  ;;  %v9958_v59 = vmax.f32 %v9303_v6, 0.0  ;;  %v3332_v2 = vadd.f32 %v10264_v34, %v8806_v3  ;;  %v3815_v36 = vadd.f32 %v8801_v62, %v10265_v45 }
 0x485   : > { %10259 = vst [vmem:[#allocation46_spill] sm:$0xff] %v9305_v24  ;;  %v3324_v43 = vadd.f32 %v8806_v3, %v10266_v50  ;;  %v3335_v34 = vadd.f32 %v10267_v14, %v8806_v3  ;;  %v10269_v50 = vld [vmem:[#allocation86_spill] sm:$0xff] }
 0x486   : > { %10260 = vst [vmem:[#allocation13_spill] sm:$0xff] %v9307_v57  ;;  %v9957_v53 = vmax.f32 %v9307_v57, 0.0  ;;  %v6122_v0 = vpop.f32.mrb[88].mxu1 }
 0x487   : > { %v4109_v32 = vadd.f32 %v6122_v0, %v3820_v37  ;;  %v4100_v27 = vpop.f32.mrb[89].mxu1  ;;  %v10268_v37 = vmax.f32 %v9305_v24, 0.0 }
 0x488   : > { %v4101_v17 = vadd.f32 %v4100_v27, %v3812_v9  ;;  %v6123_v25 = vpop.f32.mrb[90].mxu1  ;;  %v4285_v29 = vpack.c.bf16 %v9957_v53, %v9958_v59  ;;  %v3327_v9 = vadd.f32 %v8806_v3, %v10269_v50  ;;  %v10271_v59 = vld [vmem:[#allocation81_spill] sm:$0xff]  ;;  %v10276_v50 = vld [vmem:[#allocation88_spill] sm:$0xff] }
 0x489   : > { %v4286_v0 = vpack.c.bf16 %v10268_v37, %v9960_v44  ;;  %v9335_v16 = vadd.f32 %v4109_v32, %v3332_v2  ;;  %v4112_v45 = vadd.f32 %v6123_v25, %v3823_v10  ;;  %v4103_v46 = vpop.f32.mrb[91].mxu1  ;;  %v3836_v57 = vadd.f32 %v8801_v62, %v10271_v59  ;;  %v10272_v32 = vld [vmem:[#allocation75_spill] sm:$0xff]  ;;  %v10277_v2 = vld [vmem:[#allocation89_spill] sm:$0xff] }
 0x48a   : > { %v9339_v27 = vadd.f32 %v4101_v17, %v3324_v43  ;;  %v4104_v6 = vadd.f32 %v4103_v46, %v3815_v36  ;;  %6196 = vmatprep.mubr.bf16.mxu1 %v4285_v29  ;;  %v3828_v25 = vadd.f32 %v8801_v62, %v10272_v32  ;;  %v10273_v46 = vld [vmem:[#allocation82_spill] sm:$0xff]  ;;  %v10274_v29 = vld [vmem:[#allocation87_spill] sm:$0xff] }
 0x48b   : > { %v9341_v53 = vadd.f32 %v4112_v45, %v3335_v34  ;;  %6197 = vmatmul.mubr.bf16.gmra.mrb[148].mxu1 %v4286_v0  ;;  %v3839_v36 = vadd.f32 %v8801_v62, %v10273_v46  ;;  %v9969_v34 = vmax.f32 %v9335_v16, 0.0  ;;  %v10275_v0 = vld [vmem:[#allocation76_spill] sm:$0xff] }
 0x48c   : > { %10270 = vst [vmem:[#allocation22_spill] sm:$0xff] %v9339_v27  ;;  %v9343_v14 = vadd.f32 %v4104_v6, %v3327_v9  ;;  %v9964_v10 = vmax.f32 %v9339_v27, 0.0  ;;  %v3348_v6 = vadd.f32 %v10274_v29, %v8806_v3  ;;  %v3831_v45 = vadd.f32 %v8801_v62, %v10275_v0 }
 0x48d   : > { %v3340_v9 = vadd.f32 %v8806_v3, %v10276_v50  ;;  %v3351_v29 = vadd.f32 %v10277_v2, %v8806_v3  ;;  %v10279_v50 = vld [vmem:[#allocation90_spill] sm:$0xff] }
 0x48e   : > { %v9963_v43 = vmax.f32 %v9343_v14, 0.0  ;;  %v6126_v17 = vpop.f32.mrb[92].mxu1 }
 0x48f   : > { %v4125_v37 = vadd.f32 %v6126_v17, %v3836_v57  ;;  %v4116_v59 = vpop.f32.mrb[93].mxu1  ;;  %v10278_v57 = vmax.f32 %v9341_v53, 0.0 }
 0x490   : > { %v4117_v32 = vadd.f32 %v4116_v59, %v3828_v25  ;;  %v6127_v44 = vpop.f32.mrb[94].mxu1  ;;  %v4287_v46 = vpack.c.bf16 %v9963_v43, %v9964_v10  ;;  %v3343_v25 = vadd.f32 %v8806_v3, %v10279_v50 }
 0x491   : > { %v4288_v17 = vpack.c.bf16 %v10278_v57, %v9969_v34  ;;  %v9371_v24 = vadd.f32 %v4125_v37, %v3348_v6  ;;  %v4128_v62 = vadd.f32 %v6127_v44, %v3839_v36  ;;  %v4119_v0 = vpop.f32.mrb[95].mxu1 }
 0x492   : > { %v9375_v59 = vadd.f32 %v4117_v32, %v3340_v9  ;;  %v4120_v27 = vadd.f32 %v4119_v0, %v3831_v45  ;;  %6200 = vmatprep.mubr.bf16.mxu1 %v4287_v46 }
 0x493   : > { %v9377_v43 = vadd.f32 %v4128_v62, %v3351_v29  ;;  %6201 = vmatmul.mubr.bf16.gmra.mrb[152].mxu1 %v4288_v17  ;;  %v9968_v44 = vmax.f32 %v9371_v24, 0.0 }
 0x494   : > { %v9379_v2 = vadd.f32 %v4120_v27, %v3343_v25  ;;  %v9967_v57 = vmax.f32 %v9375_v59, 0.0  ;;  %v9396_v27 = vld [vmem:[%s9821_s10] ss:$0 sm:$0xff] }
 0x495   : > { %v9966_v10 = vmax.f32 %v9377_v43, 0.0 }
 0x496   : > { %10280 = vst [vmem:[#allocation45_spill] sm:$0xff] %v9379_v2  ;;  %v9965_v6 = vmax.f32 %v9379_v2, 0.0 }
 0x497   : > { %v4290_v36 = vpack.c.bf16 %v9966_v10, %v9968_v44 }
 0x498   : > { %v4289_v3 = vpack.c.bf16 %v9965_v6, %v9967_v57 }
 0x49a   : > { %6204 = vmatprep.mubr.bf16.mxu1 %v4289_v3 }
 0x49b   : > { %6205 = vmatmul.mubr.bf16.gmra.mrb[156].mxu1 %v4290_v36 }
 0x4f6   : > { %v6146_v37 = vpop.f32.mrb[96].mxu1 }
 0x4f7   : > { %v4405_v45 = vadd.f32 %v6146_v37, %v9396_v27  ;;  %v4396_v9 = vpop.f32.mrb[97].mxu1 }
 0x4f8   : > { %v4397_v32 = vadd.f32 %v9396_v27, %v4396_v9  ;;  %v6147_v46 = vpop.f32.mrb[98].mxu1 }
 0x4f9   : > { %v4408_v29 = vadd.f32 %v6147_v46, %v9396_v27  ;;  %v4399_v17 = vpop.f32.mrb[99].mxu1  ;;  %v4653_v0 = vmax.f32 %v4405_v45, 0.0 }
 0x4fa   : > { %v4400_v62 = vadd.f32 %v9396_v27, %v4399_v17  ;;  %v4651_v25 = vmax.f32 %v4397_v32, 0.0 }
 0x4fb   : > { %v4654_v50 = vmax.f32 %v4408_v29, 0.0 }
 0x4fc   : > { %v4652_v3 = vmax.f32 %v4400_v62, 0.0 }
 0x4fd   : > { %v4716_v36 = vpack.c.bf16 %v4654_v50, %v4653_v0 }
 0x4fe   : > { %v4715_v6 = vpack.c.bf16 %v4652_v3, %v4651_v25  ;;  %v6150_v10 = vpop.f32.mrb[100].mxu1 }
 0x4ff   : > { %v4421_v57 = vadd.f32 %v6150_v10, %v9396_v27  ;;  %v4412_v44 = vpop.f32.mrb[101].mxu1 }
 0x500   : > { %v4413_v37 = vadd.f32 %v9396_v27, %v4412_v44  ;;  %v6151_v34 = vpop.f32.mrb[102].mxu1  ;;  %6224 = vmatprep.mubr.bf16.mxu0 %v4715_v6 }
 0x501   : > { %v4424_v9 = vadd.f32 %v6151_v34, %v9396_v27  ;;  %v4415_v46 = vpop.f32.mrb[103].mxu1  ;;  %6225 = vmatmul.mubr.bf16.vlgmr.msra.gmra.mrb[96].mxu0 %v4716_v36  ;;  %v4657_v45 = vmax.f32 %v4421_v57, 0.0 }
 0x502   : > { %v4416_v17 = vadd.f32 %v9396_v27, %v4415_v46  ;;  %v4655_v32 = vmax.f32 %v4413_v37, 0.0 }
 0x503   : > { %v4658_v29 = vmax.f32 %v4424_v9, 0.0 }
 0x504   : > { %v4656_v62 = vmax.f32 %v4416_v17, 0.0 }
 0x505   : > { %v4718_v0 = vpack.c.bf16 %v4658_v29, %v4657_v45 }
 0x506   : > { %v4717_v50 = vpack.c.bf16 %v4656_v62, %v4655_v32  ;;  %v6154_v25 = vpop.f32.mrb[104].mxu1 }
 0x507   : > { %v4437_v10 = vadd.f32 %v6154_v25, %v9396_v27  ;;  %v4428_v3 = vpop.f32.mrb[105].mxu1 }
 0x508   : > { %v4429_v44 = vadd.f32 %v9396_v27, %v4428_v3  ;;  %v6155_v2 = vpop.f32.mrb[106].mxu1  ;;  %6228 = vmatprep.mubr.bf16.mxu0 %v4717_v50 }
 0x509   : > { %v4440_v34 = vadd.f32 %v6155_v2, %v9396_v27  ;;  %v4431_v6 = vpop.f32.mrb[107].mxu1  ;;  %6229 = vmatmul.mubr.bf16.gmra.mrb[100].mxu0 %v4718_v0  ;;  %v4661_v57 = vmax.f32 %v4437_v10, 0.0 }
 0x50a   : > { %v4432_v36 = vadd.f32 %v9396_v27, %v4431_v6  ;;  %v4659_v37 = vmax.f32 %v4429_v44, 0.0 }
 0x50b   : > { %v4662_v9 = vmax.f32 %v4440_v34, 0.0 }
 0x50c   : > { %v4660_v46 = vmax.f32 %v4432_v36, 0.0 }
 0x50d   : > { %v4720_v17 = vpack.c.bf16 %v4662_v9, %v4661_v57 }
 0x50e   : > { %v4719_v45 = vpack.c.bf16 %v4660_v46, %v4659_v37  ;;  %v6158_v29 = vpop.f32.mrb[108].mxu1 }
 0x50f   : > { %v4453_v32 = vadd.f32 %v6158_v29, %v9396_v27  ;;  %v4444_v62 = vpop.f32.mrb[109].mxu1 }
 0x510   : > { %v4445_v25 = vadd.f32 %v9396_v27, %v4444_v62  ;;  %v6159_v3 = vpop.f32.mrb[110].mxu1  ;;  %6232 = vmatprep.mubr.bf16.mxu0 %v4719_v45 }
 0x511   : > { %v4456_v2 = vadd.f32 %v6159_v3, %v9396_v27  ;;  %v4447_v50 = vpop.f32.mrb[111].mxu1  ;;  %6233 = vmatmul.mubr.bf16.gmra.mrb[104].mxu0 %v4720_v17  ;;  %v4665_v10 = vmax.f32 %v4453_v32, 0.0 }
 0x512   : > { %v4448_v0 = vadd.f32 %v9396_v27, %v4447_v50  ;;  %v4663_v44 = vmax.f32 %v4445_v25, 0.0 }
 0x513   : > { %v4666_v34 = vmax.f32 %v4456_v2, 0.0 }
 0x514   : > { %v4664_v6 = vmax.f32 %v4448_v0, 0.0 }
 0x515   : > { %v4722_v36 = vpack.c.bf16 %v4666_v34, %v4665_v10 }
 0x516   : > { %v4721_v57 = vpack.c.bf16 %v4664_v6, %v4663_v44  ;;  %v6162_v9 = vpop.f32.mrb[112].mxu1 }
 0x517   : > { %v4469_v37 = vadd.f32 %v6162_v9, %v9396_v27  ;;  %v4460_v46 = vpop.f32.mrb[113].mxu1 }
 0x518   : > { %v4461_v29 = vadd.f32 %v9396_v27, %v4460_v46  ;;  %v6163_v62 = vpop.f32.mrb[114].mxu1  ;;  %6236 = vmatprep.mubr.bf16.mxu0 %v4721_v57 }
 0x519   : > { %v4472_v45 = vadd.f32 %v6163_v62, %v9396_v27  ;;  %v4463_v3 = vpop.f32.mrb[115].mxu1  ;;  %6237 = vmatmul.mubr.bf16.gmra.mrb[108].mxu0 %v4722_v36  ;;  %v4669_v32 = vmax.f32 %v4469_v37, 0.0 }
 0x51a   : > { %v4464_v17 = vadd.f32 %v9396_v27, %v4463_v3  ;;  %v4667_v25 = vmax.f32 %v4461_v29, 0.0 }
 0x51b   : > { %v4670_v2 = vmax.f32 %v4472_v45, 0.0 }
 0x51c   : > { %v4668_v50 = vmax.f32 %v4464_v17, 0.0 }
 0x51d   : > { %v4724_v0 = vpack.c.bf16 %v4670_v2, %v4669_v32 }
 0x51e   : > { %v4723_v10 = vpack.c.bf16 %v4668_v50, %v4667_v25  ;;  %v6166_v34 = vpop.f32.mrb[116].mxu1 }
 0x51f   : > { %v4485_v44 = vadd.f32 %v6166_v34, %v9396_v27  ;;  %v4476_v6 = vpop.f32.mrb[117].mxu1 }
 0x520   : > { %v4477_v9 = vadd.f32 %v9396_v27, %v4476_v6  ;;  %v6167_v46 = vpop.f32.mrb[118].mxu1  ;;  %6240 = vmatprep.mubr.bf16.mxu0 %v4723_v10 }
 0x521   : > { %v4488_v57 = vadd.f32 %v6167_v46, %v9396_v27  ;;  %v4479_v62 = vpop.f32.mrb[119].mxu1  ;;  %6241 = vmatmul.mubr.bf16.gmra.mrb[112].mxu0 %v4724_v0  ;;  %v4673_v37 = vmax.f32 %v4485_v44, 0.0 }
 0x522   : > { %v4480_v36 = vadd.f32 %v9396_v27, %v4479_v62  ;;  %v4671_v29 = vmax.f32 %v4477_v9, 0.0 }
 0x523   : > { %v4674_v45 = vmax.f32 %v4488_v57, 0.0 }
 0x524   : > { %v4672_v3 = vmax.f32 %v4480_v36, 0.0 }
 0x525   : > { %v4726_v17 = vpack.c.bf16 %v4674_v45, %v4673_v37 }
 0x526   : > { %v4725_v32 = vpack.c.bf16 %v4672_v3, %v4671_v29  ;;  %v6170_v2 = vpop.f32.mrb[120].mxu1 }
 0x527   : > { %v4501_v25 = vadd.f32 %v6170_v2, %v9396_v27  ;;  %v4492_v50 = vpop.f32.mrb[121].mxu1 }
 0x528   : > { %v4493_v34 = vadd.f32 %v9396_v27, %v4492_v50  ;;  %v6171_v6 = vpop.f32.mrb[122].mxu1  ;;  %6244 = vmatprep.mubr.bf16.mxu0 %v4725_v32 }
 0x529   : > { %v4504_v10 = vadd.f32 %v6171_v6, %v9396_v27  ;;  %v4495_v46 = vpop.f32.mrb[123].mxu1  ;;  %6245 = vmatmul.mubr.bf16.gmra.mrb[116].mxu0 %v4726_v17  ;;  %v4677_v44 = vmax.f32 %v4501_v25, 0.0 }
 0x52a   : > { %v4496_v0 = vadd.f32 %v9396_v27, %v4495_v46  ;;  %v4675_v9 = vmax.f32 %v4493_v34, 0.0 }
 0x52b   : > { %v4678_v57 = vmax.f32 %v4504_v10, 0.0 }
 0x52c   : > { %v4676_v62 = vmax.f32 %v4496_v0, 0.0 }
 0x52d   : > { %v4728_v36 = vpack.c.bf16 %v4678_v57, %v4677_v44 }
 0x52e   : > { %v4727_v37 = vpack.c.bf16 %v4676_v62, %v4675_v9  ;;  %v6174_v45 = vpop.f32.mrb[124].mxu1 }
 0x52f   : > { %v4517_v29 = vadd.f32 %v6174_v45, %v9396_v27  ;;  %v4508_v3 = vpop.f32.mrb[125].mxu1 }
 0x530   : > { %v4509_v2 = vadd.f32 %v9396_v27, %v4508_v3  ;;  %v6175_v50 = vpop.f32.mrb[126].mxu1  ;;  %6248 = vmatprep.mubr.bf16.mxu0 %v4727_v37 }
 0x531   : > { %v4520_v32 = vadd.f32 %v6175_v50, %v9396_v27  ;;  %v4511_v6 = vpop.f32.mrb[127].mxu1  ;;  %6249 = vmatmul.mubr.bf16.gmra.mrb[120].mxu0 %v4728_v36  ;;  %v4681_v25 = vmax.f32 %v4517_v29, 0.0 }
 0x532   : > { %v4512_v17 = vadd.f32 %v9396_v27, %v4511_v6  ;;  %v4679_v34 = vmax.f32 %v4509_v2, 0.0 }
 0x533   : > { %v4682_v10 = vmax.f32 %v4520_v32, 0.0 }
 0x534   : > { %v4680_v46 = vmax.f32 %v4512_v17, 0.0 }
 0x535   : > { %v4730_v0 = vpack.c.bf16 %v4682_v10, %v4681_v25 }
 0x536   : > { %v4729_v44 = vpack.c.bf16 %v4680_v46, %v4679_v34  ;;  %v6178_v57 = vpop.f32.mrb[128].mxu1 }
 0x537   : > { %v4533_v9 = vadd.f32 %v6178_v57, %v9396_v27  ;;  %v4524_v62 = vpop.f32.mrb[129].mxu1 }
 0x538   : > { %v4525_v45 = vadd.f32 %v9396_v27, %v4524_v62  ;;  %v6179_v3 = vpop.f32.mrb[130].mxu1  ;;  %6252 = vmatprep.mubr.bf16.mxu0 %v4729_v44 }
 0x539   : > { %v4536_v37 = vadd.f32 %v6179_v3, %v9396_v27  ;;  %v4527_v50 = vpop.f32.mrb[131].mxu1  ;;  %6253 = vmatmul.mubr.bf16.gmra.mrb[124].mxu0 %v4730_v0  ;;  %v4685_v29 = vmax.f32 %v4533_v9, 0.0 }
 0x53a   : > { %v4528_v36 = vadd.f32 %v9396_v27, %v4527_v50  ;;  %v4683_v2 = vmax.f32 %v4525_v45, 0.0 }
 0x53b   : > { %v4686_v32 = vmax.f32 %v4536_v37, 0.0 }
 0x53c   : > { %v4684_v6 = vmax.f32 %v4528_v36, 0.0 }
 0x53d   : > { %v4732_v17 = vpack.c.bf16 %v4686_v32, %v4685_v29 }
 0x53e   : > { %v4731_v25 = vpack.c.bf16 %v4684_v6, %v4683_v2  ;;  %v6182_v10 = vpop.f32.mrb[132].mxu1 }
 0x53f   : > { %v4549_v34 = vadd.f32 %v6182_v10, %v9396_v27  ;;  %v4540_v46 = vpop.f32.mrb[133].mxu1 }
 0x540   : > { %v4541_v57 = vadd.f32 %v9396_v27, %v4540_v46  ;;  %v6183_v62 = vpop.f32.mrb[134].mxu1  ;;  %6256 = vmatprep.mubr.bf16.mxu0 %v4731_v25 }
 0x541   : > { %v4552_v44 = vadd.f32 %v6183_v62, %v9396_v27  ;;  %v4543_v3 = vpop.f32.mrb[135].mxu1  ;;  %6257 = vmatmul.mubr.bf16.gmra.mrb[128].mxu0 %v4732_v17  ;;  %v4689_v9 = vmax.f32 %v4549_v34, 0.0 }
 0x542   : > { %v4544_v0 = vadd.f32 %v9396_v27, %v4543_v3  ;;  %v4687_v45 = vmax.f32 %v4541_v57, 0.0 }
 0x543   : > { %v4690_v37 = vmax.f32 %v4552_v44, 0.0 }
 0x544   : > { %v4688_v50 = vmax.f32 %v4544_v0, 0.0 }
 0x545   : > { %v4734_v36 = vpack.c.bf16 %v4690_v37, %v4689_v9 }
 0x546   : > { %v4733_v29 = vpack.c.bf16 %v4688_v50, %v4687_v45  ;;  %v6186_v32 = vpop.f32.mrb[136].mxu1 }
 0x547   : > { %v4565_v2 = vadd.f32 %v6186_v32, %v9396_v27  ;;  %v4556_v6 = vpop.f32.mrb[137].mxu1 }
 0x548   : > { %v4557_v10 = vadd.f32 %v9396_v27, %v4556_v6  ;;  %v6187_v46 = vpop.f32.mrb[138].mxu1  ;;  %6260 = vmatprep.mubr.bf16.mxu0 %v4733_v29 }
 0x549   : > { %v4568_v25 = vadd.f32 %v6187_v46, %v9396_v27  ;;  %v4559_v62 = vpop.f32.mrb[139].mxu1  ;;  %6261 = vmatmul.mubr.bf16.gmra.mrb[132].mxu0 %v4734_v36  ;;  %v4693_v34 = vmax.f32 %v4565_v2, 0.0 }
 0x54a   : > { %v4560_v17 = vadd.f32 %v9396_v27, %v4559_v62  ;;  %v4691_v57 = vmax.f32 %v4557_v10, 0.0 }
 0x54b   : > { %v4694_v44 = vmax.f32 %v4568_v25, 0.0 }
 0x54c   : > { %v4692_v3 = vmax.f32 %v4560_v17, 0.0 }
 0x54d   : > { %v4736_v0 = vpack.c.bf16 %v4694_v44, %v4693_v34 }
 0x54e   : > { %v4735_v9 = vpack.c.bf16 %v4692_v3, %v4691_v57  ;;  %v6190_v37 = vpop.f32.mrb[140].mxu1 }
 0x54f   : > { %v4581_v45 = vadd.f32 %v6190_v37, %v9396_v27  ;;  %v4572_v50 = vpop.f32.mrb[141].mxu1 }
 0x550   : > { %v4573_v32 = vadd.f32 %v9396_v27, %v4572_v50  ;;  %v6191_v6 = vpop.f32.mrb[142].mxu1  ;;  %6264 = vmatprep.mubr.bf16.mxu0 %v4735_v9 }
 0x551   : > { %v4584_v29 = vadd.f32 %v6191_v6, %v9396_v27  ;;  %v4575_v46 = vpop.f32.mrb[143].mxu1  ;;  %6265 = vmatmul.mubr.bf16.gmra.mrb[136].mxu0 %v4736_v0  ;;  %v4697_v2 = vmax.f32 %v4581_v45, 0.0 }
 0x552   : > { %v4576_v36 = vadd.f32 %v9396_v27, %v4575_v46  ;;  %v4695_v10 = vmax.f32 %v4573_v32, 0.0 }
 0x553   : > { %v4698_v25 = vmax.f32 %v4584_v29, 0.0 }
 0x554   : > { %v4696_v62 = vmax.f32 %v4576_v36, 0.0 }
 0x555   : > { %v4738_v17 = vpack.c.bf16 %v4698_v25, %v4697_v2 }
 0x556   : > { %v4737_v34 = vpack.c.bf16 %v4696_v62, %v4695_v10  ;;  %v6194_v44 = vpop.f32.mrb[144].mxu1 }
 0x557   : > { %v4597_v57 = vadd.f32 %v6194_v44, %v9396_v27  ;;  %v4588_v3 = vpop.f32.mrb[145].mxu1 }
 0x558   : > { %v4589_v37 = vadd.f32 %v9396_v27, %v4588_v3  ;;  %v6195_v50 = vpop.f32.mrb[146].mxu1  ;;  %6268 = vmatprep.mubr.bf16.mxu0 %v4737_v34 }
 0x559   : > { %v4600_v9 = vadd.f32 %v6195_v50, %v9396_v27  ;;  %v4591_v6 = vpop.f32.mrb[147].mxu1  ;;  %6269 = vmatmul.mubr.bf16.gmra.mrb[140].mxu0 %v4738_v17  ;;  %v4701_v45 = vmax.f32 %v4597_v57, 0.0 }
 0x55a   : > { %v4592_v0 = vadd.f32 %v9396_v27, %v4591_v6  ;;  %v4699_v32 = vmax.f32 %v4589_v37, 0.0 }
 0x55b   : > { %v4702_v29 = vmax.f32 %v4600_v9, 0.0 }
 0x55c   : > { %v4700_v46 = vmax.f32 %v4592_v0, 0.0 }
 0x55d   : > { %v4740_v36 = vpack.c.bf16 %v4702_v29, %v4701_v45 }
 0x55e   : > { %v4739_v2 = vpack.c.bf16 %v4700_v46, %v4699_v32  ;;  %v6198_v25 = vpop.f32.mrb[148].mxu1 }
 0x55f   : > { %v4613_v10 = vadd.f32 %v6198_v25, %v9396_v27  ;;  %v4604_v62 = vpop.f32.mrb[149].mxu1 }
 0x560   : > { %v4605_v44 = vadd.f32 %v9396_v27, %v4604_v62  ;;  %v6199_v3 = vpop.f32.mrb[150].mxu1  ;;  %6272 = vmatprep.mubr.bf16.mxu0 %v4739_v2 }
 0x561   : > { %v4616_v34 = vadd.f32 %v6199_v3, %v9396_v27  ;;  %v4607_v50 = vpop.f32.mrb[151].mxu1  ;;  %6273 = vmatmul.mubr.bf16.gmra.mrb[144].mxu0 %v4740_v36  ;;  %v4705_v57 = vmax.f32 %v4613_v10, 0.0 }
 0x562   : > { %v4608_v17 = vadd.f32 %v9396_v27, %v4607_v50  ;;  %v4703_v37 = vmax.f32 %v4605_v44, 0.0 }
 0x563   : > { %v4706_v9 = vmax.f32 %v4616_v34, 0.0 }
 0x564   : > { %v4704_v6 = vmax.f32 %v4608_v17, 0.0 }
 0x565   : > { %v4742_v0 = vpack.c.bf16 %v4706_v9, %v4705_v57 }
 0x566   : > { %v4741_v45 = vpack.c.bf16 %v4704_v6, %v4703_v37  ;;  %v6202_v29 = vpop.f32.mrb[152].mxu1 }
 0x567   : > { %v4629_v32 = vadd.f32 %v6202_v29, %v9396_v27  ;;  %v4620_v46 = vpop.f32.mrb[153].mxu1 }
 0x568   : > { %v4621_v25 = vadd.f32 %v9396_v27, %v4620_v46  ;;  %v6203_v62 = vpop.f32.mrb[154].mxu1  ;;  %6276 = vmatprep.mubr.bf16.mxu0 %v4741_v45 }
 0x569   : > { %v4632_v2 = vadd.f32 %v6203_v62, %v9396_v27  ;;  %v4623_v3 = vpop.f32.mrb[155].mxu1  ;;  %6277 = vmatmul.mubr.bf16.gmra.mrb[148].mxu0 %v4742_v0  ;;  %v4709_v10 = vmax.f32 %v4629_v32, 0.0 }
 0x56a   : > { %v4624_v36 = vadd.f32 %v9396_v27, %v4623_v3  ;;  %v4707_v44 = vmax.f32 %v4621_v25, 0.0 }
 0x56b   : > { %v4710_v34 = vmax.f32 %v4632_v2, 0.0 }
 0x56c   : > { %v4708_v50 = vmax.f32 %v4624_v36, 0.0 }
 0x56d   : > { %v4744_v17 = vpack.c.bf16 %v4710_v34, %v4709_v10  ;;  %v9465_v34 = vld [vmem:[%s9823_s12] ss:$0 sm:$0xff] }
 0x56e   : > { %v4743_v57 = vpack.c.bf16 %v4708_v50, %v4707_v44  ;;  %v6206_v9 = vpop.f32.mrb[156].mxu1 }
 0x56f   : > { %v4645_v37 = vadd.f32 %v6206_v9, %v9396_v27  ;;  %v4636_v6 = vpop.f32.mrb[157].mxu1  ;;  %v10281_v9 = vmax.f32 %v8822_v42, 0.0 }
 0x570   : > { %v4637_v29 = vadd.f32 %v9396_v27, %v4636_v6  ;;  %v6207_v46 = vpop.f32.mrb[158].mxu1  ;;  %6280 = vmatprep.mubr.bf16.mxu0 %v4743_v57 }
 0x571   : > { %v4648_v0 = vadd.f32 %v6207_v46, %v9396_v27  ;;  %v4639_v45 = vpop.f32.mrb[159].mxu1  ;;  %6281 = vmatmul.mubr.bf16.gmra.mrb[152].mxu0 %v4744_v17  ;;  %v4713_v25 = vmax.f32 %v4645_v37, 0.0  ;;  %v10282_v46 = vmax.f32 %v8826_v61, 0.0 }
 0x572   : > { %v4640_v32 = vadd.f32 %v9396_v27, %v4639_v45  ;;  %v4711_v2 = vmax.f32 %v4637_v29, 0.0 }
 0x573   : > { %v4714_v62 = vmax.f32 %v4648_v0, 0.0 }
 0x574   : > { %v4712_v3 = vmax.f32 %v4640_v32, 0.0 }
 0x575   : > { %v4746_v36 = vpack.c.bf16 %v4714_v62, %v4713_v25  ;;  %v10283_v25 = vmax.f32 %v8828_v38, 0.0 }
 0x576   : > { %v4745_v10 = vpack.c.bf16 %v4712_v3, %v4711_v2 }
 0x578   : > { %6284 = vmatprep.mubr.bf16.mxu0 %v4745_v10 }
 0x579   : > { %6285 = vmatmul.mubr.bf16.gmra.mrb[156].mxu0 %v4746_v36 }
 0x5d4   : > { %v6226_v44 = vpop.f32.mrb[96].mxu0 }
 0x5d5   : > { %v4861_v50 = vadd.f32 %v6226_v44, %v9465_v34  ;;  %v4852_v27 = vpop.f32.mrb[97].mxu0 }
 0x5d6   : > { %v4853_v17 = vadd.f32 %v9465_v34, %v4852_v27  ;;  %v6227_v57 = vpop.f32.mrb[98].mxu0 }
 0x5d7   : > { %v5109_v37 = vadd.f32 %v4861_v50, %v10281_v9  ;;  %v4864_v6 = vadd.f32 %v6227_v57, %v9465_v34  ;;  %v4855_v29 = vpop.f32.mrb[99].mxu0 }
 0x5d8   : > { %v5107_v0 = vadd.f32 %v4853_v17, %v10282_v46  ;;  %v4856_v45 = vadd.f32 %v9465_v34, %v4855_v29 }
 0x5d9   : > { %v5173_v32 = vmax.f32 %v5109_v37, 0.0  ;;  %v5110_v62 = vadd.f32 %v4864_v6, %v10283_v25 }
 0x5da   : > { %6608 = shalt.err (!%p6605_p3)
}
 0x5db   : > { %s6609_s18 = scalar_lea.hbm %s9475_s21, 24576  ;;  %s6613_s15 = scalar_lea.hbm %s9824_s13, 49152 }
 0x5dc   : > { %p6610_p4 = scmp.ne.s32.totalorder %s9475_s21, %s6609_s18  ;;  %p6614_p9 = scmp.lt.u32.totalorder %s9475_s21, %s9824_s13 }
 0x5dd   : > { %p6615_p10 = scmp.lt.u32.totalorder %s6613_s15, %s6609_s18  ;;  %p6617_p12 = scmp.lt.u32.totalorder %s6609_s18, %s9475_s21 }
 0x5de   : > { %p6611_p7 = pnand %p6610_p4, %p6811_p5 }
 0x5df   : > { %p6616_p11 = por %p6615_p10, %p6614_p9 }
 0x5e0   : > { %p6612_p8 = pneg %p6611_p7 }
 0x5e1   : > { %p6618_p13 = por %p6617_p12, %p6616_p11 }
 0x5e3   : > { %p6619_p0 = pnand %p6618_p13, %p6612_p8 }
 0x5e5   : > { %6622 = shalt.err (!%p6619_p0)
}
 0x5e6   : > { %s6693_s27 = smov 384   ;;  %s6694_s24 = smov 24   ;;  %v5171_v38 = vmax.f32 %v5107_v0, 0.0  ;;  %v10285_v42 = vmax.f32 %v8836_v26, 0.0  ;;  %v5174_v2 = vmax.f32 %v5110_v62, 0.0  ;;  %v6230_v36 = vpop.f32.mrb[100].mxu0 }
 0x5e7   : > { %s10284_s26 = scalar_lea.sflag [#allocation3], %s7312_s19  ;;  %s10286_s25 = sshll.u32 %s7312_s19, 9  ;;  %v4877_v10 = vadd.f32 %v6230_v36, %v9465_v34  ;;  %v4868_v44 = vpop.f32.mrb[101].mxu0  ;;  %v10287_v27 = vmax.f32 %v8867_v49, 0.0  ;;  %v10288_v37 = vmax.f32 %v8871_v35, 0.0  ;;  %v10289_v0 = vmax.f32 %v8873_v11, 0.0 }
 0x5e8   : > { %6314 = dma.vmem_to_hbm [thread:$0]  (%p6811_p5), %s9480_s28, 24576, %s9475_s21, %s10284_s26, %s6693_s27, %s6693_s27, %s6694_s24   ;;  %v5108_v61 = vadd.f32 %v4856_v45, %v10285_v42  ;;  %v4869_v26 = vadd.f32 %v9465_v34, %v4868_v44  ;;  %v6231_v50 = vpop.f32.mrb[102].mxu0  ;;  %v10290_v25 = vmax.f32 %v8875_v19, 0.0  ;;  %v10292_v44 = vmax.f32 %v8907_v63, 0.0 }
 0x5e9   : > { %s9515_s20 = scalar_lea.vmem [#allocation4], %s10286_s25  ;;  %v5113_v17 = vadd.f32 %v4877_v10, %v10287_v27  ;;  %v4880_v57 = vadd.f32 %v6231_v50, %v9465_v34  ;;  %v4871_v9 = vpop.f32.mrb[103].mxu0  ;;  %s5687_s28 = sshll.u32 %s6794_s17, 13 }
 0x5ea   : > { %5237 = vst [vmem:[%s9515_s20 + $0x10] sm:$0xff] %v5173_v32  ;;  %5235 = vst [vmem:[%s9515_s20] sm:$0xff] %v5171_v38  ;;  %v5172_v3 = vmax.f32 %v5108_v61, 0.0  ;;  %v5111_v6 = vadd.f32 %v4869_v26, %v10288_v37  ;;  %v4872_v29 = vadd.f32 %v9465_v34, %v4871_v9  ;;  %v6234_v42 = vpop.f32.mrb[104].mxu0  ;;  %v10294_v37 = vmax.f32 %v8911_v51, 0.0  ;;  %s5335_s21 = sshll.u32 %s9515_s20, 4  ;;  %s9763_s22 = scalar_lea.hbm %s9825_s14, %s5687_s28  ;;  %s9765_s21 = int_to_ptr.vmem [resolvable:$true] %s5335_s21 }
 0x5eb   : > { %5238 = vst [vmem:[%s9515_s20 + $0x18] sm:$0xff] %v5174_v2  ;;  %v5177_v46 = vmax.f32 %v5113_v17, 0.0  ;;  %v5114_v45 = vadd.f32 %v4880_v57, %v10289_v0  ;;  %v4893_v35 = vadd.f32 %v6234_v42, %v9465_v34  ;;  %v4884_v61 = vpop.f32.mrb[105].mxu0  ;;  %v10293_v17 = vmax.f32 %v8909_v33, 0.0  ;;  %s5305_s17 = scalar_lea.sflag [#allocation5], %s7312_s19  ;;  %s6623_s27 = scalar_lea.vmem %s9765_s21, 8192 }
 0x5ec   : > { %5236 = vst [vmem:[%s9515_s20 + $0x8] sm:$0xff] %v5172_v3  ;;  %v5175_v32 = vmax.f32 %v5111_v6, 0.0  ;;  %v5112_v62 = vadd.f32 %v4872_v29, %v10290_v25  ;;  %v4885_v2 = vadd.f32 %v9465_v34, %v4884_v61  ;;  %v6235_v11 = vpop.f32.mrb[106].mxu0  ;;  %v10291_v3 = vmax.f32 %v8903_v12, 0.0  ;;  %p6624_p1 = scmp.ne.s32.totalorder %s9765_s21, %s6623_s27  ;;  %s6695_s24 = smov [#allocation4]  }
 0x5ed   : > { %5241 = vst [vmem:[%s9515_s20 + $0x30] sm:$0xff] %v5177_v46  ;;  %v5178_v49 = vmax.f32 %v5114_v45, 0.0  ;;  %v4896_v36 = vadd.f32 %v6235_v11, %v9465_v34  ;;  %v4887_v10 = vpop.f32.mrb[107].mxu0  ;;  %v10297_v61 = vmax.f32 %v8945_v28, 0.0  ;;  %s6627_s26 = sshll.u32 %s6695_s24, 4  ;;  %s6628_s26 = int_to_ptr.vmem [resolvable:$false] %s6627_s26 }
 0x5ee   : > { %5239 = vst [vmem:[%s9515_s20 + $0x20] sm:$0xff] %v5175_v32  ;;  %v5176_v38 = vmax.f32 %v5112_v62, 0.0  ;;  %v5117_v19 = vadd.f32 %v4893_v35, %v10291_v3  ;;  %v5115_v26 = vadd.f32 %v4885_v2, %v10292_v44  ;;  %v4888_v50 = vadd.f32 %v9465_v34, %v4887_v10  ;;  %v6238_v46 = vpop.f32.mrb[108].mxu0  ;;  %p6625_p2 = pnand %p6624_p1, %p6811_p5  ;;  %s6629_s25 = scalar_lea.vmem %s6628_s26, 16384 }
 0x5ef   : > { %5242 = vst [vmem:[%s9515_s20 + $0x38] sm:$0xff] %v5178_v49  ;;  %v5118_v57 = vadd.f32 %v4896_v36, %v10293_v17  ;;  %v4909_v63 = vadd.f32 %v6238_v46, %v9465_v34  ;;  %v4900_v0 = vpop.f32.mrb[109].mxu0  ;;  %v10295_v32 = vmax.f32 %v8939_v48, 0.0  ;;  %v10296_v49 = vmax.f32 %v8943_v15, 0.0  ;;  %p6630_p4 = scmp.lt.s32.totalorder %s9765_s21, %s6628_s26  ;;  %p6631_p7 = scmp.lt.s32.totalorder %s6629_s25, %s6623_s27 }
 0x5f0   : > { %5240 = vst [vmem:[%s9515_s20 + $0x28] sm:$0xff] %v5176_v38  ;;  %v5181_v27 = vmax.f32 %v5117_v19, 0.0  ;;  %v5179_v9 = vmax.f32 %v5115_v26, 0.0  ;;  %v5116_v6 = vadd.f32 %v4888_v50, %v10294_v37  ;;  %v4901_v45 = vadd.f32 %v9465_v34, %v4900_v0  ;;  %v6239_v33 = vpop.f32.mrb[110].mxu0  ;;  %p6626_p3 = pneg %p6625_p2 }
 0x5f1   : > { %v5182_v12 = vmax.f32 %v5118_v57, 0.0  ;;  %v5121_v51 = vadd.f32 %v4909_v63, %v10295_v32  ;;  %v4912_v25 = vadd.f32 %v6239_v33, %v9465_v34  ;;  %v4903_v62 = vpop.f32.mrb[111].mxu0  ;;  %v10298_v3 = vmax.f32 %v8947_v5, 0.0  ;;  %p6632_p8 = por %p6631_p7, %p6630_p4 }
 0x5f2   : > { %5245 = vst [vmem:[%s9515_s20 + $0x50] sm:$0xff] %v5181_v27  ;;  %5243 = vst [vmem:[%s9515_s20 + $0x40] sm:$0xff] %v5179_v9  ;;  %v5180_v29 = vmax.f32 %v5116_v6, 0.0  ;;  %v5119_v38 = vadd.f32 %v4901_v45, %v10296_v49  ;;  %v4904_v42 = vadd.f32 %v9465_v34, %v4903_v62  ;;  %v10299_v50 = vmax.f32 %v8975_v23, 0.0 }
 0x5f3   : > { %5246 = vst [vmem:[%s9515_s20 + $0x58] sm:$0xff] %v5182_v12  ;;  %v5185_v35 = vmax.f32 %v5121_v51, 0.0  ;;  %v5122_v2 = vadd.f32 %v4912_v25, %v10297_v61  ;;  %v10300_v57 = vmax.f32 %v8979_v22, 0.0  ;;  %v10301_v12 = vmax.f32 %v8981_v60, 0.0  ;;  %p6633_p9 = pnand %p6632_p8, %p6626_p3 }
 0x5f4   : > { %5244 = vst [vmem:[%s9515_s20 + $0x48] sm:$0xff] %v5180_v29  ;;  %v5183_v11 = vmax.f32 %v5119_v38, 0.0  ;;  %v5120_v19 = vadd.f32 %v4904_v42, %v10298_v3  ;;  %v6242_v10 = vpop.f32.mrb[112].mxu0  ;;  %v10302_v63 = vmax.f32 %v8983_v52, 0.0  ;;  %v10303_v25 = vmax.f32 %v9011_v54, 0.0 }
 0x5f5   : > { %5249 = vst [vmem:[%s9515_s20 + $0x70] sm:$0xff] %v5185_v35  ;;  %v5186_v48 = vmax.f32 %v5122_v2, 0.0  ;;  %v4925_v15 = vadd.f32 %v6242_v10, %v9465_v34  ;;  %v4916_v44 = vpop.f32.mrb[113].mxu0  ;;  %v10304_v38 = vmax.f32 %v9015_v47, 0.0  ;;  %v10305_v2 = vmax.f32 %v9017_v7, 0.0 }
 0x5f6   : > { %5247 = vst [vmem:[%s9515_s20 + $0x60] sm:$0xff] %v5183_v11  ;;  %v5184_v36 = vmax.f32 %v5120_v19, 0.0  ;;  %v4917_v26 = vadd.f32 %v9465_v34, %v4916_v44  ;;  %v6243_v28 = vpop.f32.mrb[114].mxu0  ;;  %v10306_v19 = vmax.f32 %v9019_v31, 0.0 }
 0x5f7   : > { %5250 = vst [vmem:[%s9515_s20 + $0x78] sm:$0xff] %v5186_v48  ;;  %v5125_v5 = vadd.f32 %v4925_v15, %v10299_v50  ;;  %v4928_v27 = vadd.f32 %v6243_v28, %v9465_v34  ;;  %v4919_v17 = vpop.f32.mrb[115].mxu0 }
 0x5f8   : > { %5248 = vst [vmem:[%s9515_s20 + $0x68] sm:$0xff] %v5184_v36  ;;  %v5123_v9 = vadd.f32 %v4917_v26, %v10300_v57  ;;  %v4920_v37 = vadd.f32 %v9465_v34, %v4919_v17  ;;  %v10307_v26 = vmax.f32 %v9047_v41, 0.0 }
 0x5f9   : > { %v5189_v6 = vmax.f32 %v5125_v5, 0.0  ;;  %v5126_v29 = vadd.f32 %v4928_v27, %v10301_v12  ;;  %v10308_v5 = vmax.f32 %v9051_v39, 0.0  ;;  %v10310_v12 = vmax.f32 %v9055_v58, 0.0 }
 0x5fa   : > { %v5187_v46 = vmax.f32 %v5123_v9, 0.0  ;;  %v5124_v0 = vadd.f32 %v4920_v37, %v10302_v63  ;;  %v10309_v9 = vmax.f32 %v9053_v55, 0.0 }
 0x5fb   : > { %5253 = vst [vmem:[%s9515_s20 + $0x90] sm:$0xff] %v5189_v6  ;;  %v5190_v23 = vmax.f32 %v5126_v29, 0.0 }
 0x5fc   : > { %5251 = vst [vmem:[%s9515_s20 + $0x80] sm:$0xff] %v5187_v46  ;;  %v5188_v45 = vmax.f32 %v5124_v0, 0.0  ;;  %v6246_v33 = vpop.f32.mrb[116].mxu0 }
 0x5fd   : > { %5254 = vst [vmem:[%s9515_s20 + $0x98] sm:$0xff] %v5190_v23  ;;  %v4941_v22 = vadd.f32 %v6246_v33, %v9465_v34  ;;  %v4932_v32 = vpop.f32.mrb[117].mxu0 }
 0x5fe   : > { %5252 = vst [vmem:[%s9515_s20 + $0x88] sm:$0xff] %v5188_v45  ;;  %v4933_v51 = vadd.f32 %v9465_v34, %v4932_v32  ;;  %v6247_v60 = vpop.f32.mrb[118].mxu0  ;;  %v10311_v45 = vmax.f32 %v9083_v8, 0.0  ;;  %v10312_v32 = vmax.f32 %v9087_v56, 0.0 }
 0x5ff   : > { %v5129_v52 = vadd.f32 %v4941_v22, %v10303_v25  ;;  %v4944_v62 = vadd.f32 %v6247_v60, %v9465_v34  ;;  %v4935_v49 = vpop.f32.mrb[119].mxu0 }
 0x600   : > { %v5127_v42 = vadd.f32 %v4933_v51, %v10304_v38  ;;  %v4936_v35 = vadd.f32 %v9465_v34, %v4935_v49  ;;  %v10314_v38 = vmax.f32 %v9091_v1, 0.0 }
 0x601   : > { %v5193_v61 = vmax.f32 %v5129_v52, 0.0  ;;  %v5130_v11 = vadd.f32 %v4944_v62, %v10305_v2  ;;  %v10313_v52 = vmax.f32 %v9089_v18, 0.0 }
 0x602   : > { %v5191_v3 = vmax.f32 %v5127_v42, 0.0  ;;  %v5128_v48 = vadd.f32 %v4936_v35, %v10306_v19 }
 0x603   : > { %5257 = vst [vmem:[%s9515_s20 + $0xb0] sm:$0xff] %v5193_v61  ;;  %v5194_v54 = vmax.f32 %v5130_v11, 0.0 }
 0x604   : > { %5255 = vst [vmem:[%s9515_s20 + $0xa0] sm:$0xff] %v5191_v3  ;;  %v5192_v36 = vmax.f32 %v5128_v48, 0.0  ;;  %v6250_v10 = vpop.f32.mrb[120].mxu0  ;;  %v10315_v3 = vmax.f32 %v9119_v13, 0.0 }
 0x605   : > { %5258 = vst [vmem:[%s9515_s20 + $0xb8] sm:$0xff] %v5194_v54  ;;  %v4957_v47 = vadd.f32 %v6250_v10, %v9465_v34  ;;  %v4948_v15 = vpop.f32.mrb[121].mxu0  ;;  %v10316_v54 = vmax.f32 %v9123_v21, 0.0 }
 0x606   : > { %5256 = vst [vmem:[%s9515_s20 + $0xa8] sm:$0xff] %v5192_v36  ;;  %v4949_v44 = vadd.f32 %v9465_v34, %v4948_v15  ;;  %v6251_v7 = vpop.f32.mrb[122].mxu0  ;;  %v10317_v15 = vmax.f32 %v9125_v30, 0.0 }
 0x607   : > { %v5133_v31 = vadd.f32 %v4957_v47, %v10307_v26  ;;  %v4960_v28 = vadd.f32 %v6251_v7, %v9465_v34  ;;  %v4951_v50 = vpop.f32.mrb[123].mxu0  ;;  %v10318_v26 = vmax.f32 %v9127_v40, 0.0 }
 0x608   : > { %v5131_v27 = vadd.f32 %v4949_v44, %v10308_v5  ;;  %v4952_v17 = vadd.f32 %v9465_v34, %v4951_v50 }
 0x609   : > { %v5197_v57 = vmax.f32 %v5133_v31, 0.0  ;;  %v5134_v37 = vadd.f32 %v4960_v28, %v10309_v9 }
 0x60a   : > { %v5195_v6 = vmax.f32 %v5131_v27, 0.0  ;;  %v5132_v29 = vadd.f32 %v4952_v17, %v10310_v12  ;;  %v10319_v17 = vmax.f32 %v9155_v20, 0.0 }
 0x60b   : > { %5261 = vst [vmem:[%s9515_s20 + $0xd0] sm:$0xff] %v5197_v57  ;;  %v5198_v41 = vmax.f32 %v5134_v37, 0.0  ;;  %v10320_v37 = vld [vmem:[#allocation34_spill] sm:$0xff] }
 0x60c   : > { %5259 = vst [vmem:[%s9515_s20 + $0xc0] sm:$0xff] %v5195_v6  ;;  %v5196_v46 = vmax.f32 %v5132_v29, 0.0  ;;  %v6254_v63 = vpop.f32.mrb[124].mxu0  ;;  %v10321_v6 = vmax.f32 %v10320_v37, 0.0 }
 0x60d   : > { %5262 = vst [vmem:[%s9515_s20 + $0xd8] sm:$0xff] %v5198_v41  ;;  %v4973_v39 = vadd.f32 %v6254_v63, %v9465_v34  ;;  %v4964_v0 = vpop.f32.mrb[125].mxu0 }
 0x60e   : > { %5260 = vst [vmem:[%s9515_s20 + $0xc8] sm:$0xff] %v5196_v46  ;;  %v4965_v23 = vadd.f32 %v9465_v34, %v4964_v0  ;;  %v6255_v55 = vpop.f32.mrb[126].mxu0  ;;  %v10322_v46 = vld [vmem:[#allocation36_spill] sm:$0xff] }
 0x60f   : > { %v5137_v58 = vadd.f32 %v4973_v39, %v10311_v45  ;;  %v4976_v33 = vadd.f32 %v6255_v55, %v9465_v34  ;;  %v4967_v22 = vpop.f32.mrb[127].mxu0  ;;  %v10323_v63 = vmax.f32 %v10322_v46, 0.0 }
 0x610   : > { %v5135_v51 = vadd.f32 %v4965_v23, %v10312_v32  ;;  %v4968_v60 = vadd.f32 %v9465_v34, %v4967_v22  ;;  %v10324_v23 = vld [vmem:[#allocation49_spill] sm:$0xff] }
 0x611   : > { %v5201_v25 = vmax.f32 %v5137_v58, 0.0  ;;  %v5138_v62 = vadd.f32 %v4976_v33, %v10313_v52  ;;  %v10325_v55 = vmax.f32 %v10324_v23, 0.0 }
 0x612   : > { %v5199_v49 = vmax.f32 %v5135_v51, 0.0  ;;  %v5136_v42 = vadd.f32 %v4968_v60, %v10314_v38 }
 0x613   : > { %5265 = vst [vmem:[%s9515_s20 + $0xf0] sm:$0xff] %v5201_v25  ;;  %v5202_v8 = vmax.f32 %v5138_v62, 0.0  ;;  %v10326_v25 = vld [vmem:[#allocation37_spill] sm:$0xff] }
 0x614   : > { %5263 = vst [vmem:[%s9515_s20 + $0xe0] sm:$0xff] %v5199_v49  ;;  %v5200_v35 = vmax.f32 %v5136_v42, 0.0  ;;  %v6258_v61 = vpop.f32.mrb[128].mxu0  ;;  %v10327_v52 = vmax.f32 %v10326_v25, 0.0  ;;  %v10328_v42 = vld [vmem:[#allocation48_spill] sm:$0xff] }
 0x615   : > { %5266 = vst [vmem:[%s9515_s20 + $0xf8] sm:$0xff] %v5202_v8  ;;  %v4989_v56 = vadd.f32 %v6258_v61, %v9465_v34  ;;  %v4980_v2 = vpop.f32.mrb[129].mxu0  ;;  %v10329_v8 = vmax.f32 %v10328_v42, 0.0 }
 0x616   : > { %5264 = vst [vmem:[%s9515_s20 + $0xe8] sm:$0xff] %v5200_v35  ;;  %v4981_v11 = vadd.f32 %v9465_v34, %v4980_v2  ;;  %v6259_v18 = vpop.f32.mrb[130].mxu0  ;;  %v10330_v2 = vld [vmem:[#allocation52_spill] sm:$0xff] }
 0x617   : > { %v5141_v1 = vadd.f32 %v4989_v56, %v10315_v3  ;;  %v4992_v19 = vadd.f32 %v6259_v18, %v9465_v34  ;;  %v4983_v48 = vpop.f32.mrb[131].mxu0 }
 0x618   : > { %v5139_v36 = vadd.f32 %v4981_v11, %v10316_v54  ;;  %v4984_v10 = vadd.f32 %v9465_v34, %v4983_v48  ;;  %v10331_v11 = vmax.f32 %v10330_v2, 0.0 }
 0x619   : > { %v5205_v47 = vmax.f32 %v5141_v1, 0.0  ;;  %v5142_v44 = vadd.f32 %v4992_v19, %v10317_v15  ;;  %v10332_v1 = vld [vmem:[#allocation51_spill] sm:$0xff] }
 0x61a   : > { %v5203_v7 = vmax.f32 %v5139_v36, 0.0  ;;  %v5140_v31 = vadd.f32 %v4984_v10, %v10318_v26  ;;  %v10333_v19 = vmax.f32 %v10332_v1, 0.0  ;;  %v10334_v26 = vld [vmem:[#allocation43_spill] sm:$0xff] }
 0x61b   : > { %5269 = vst [vmem:[%s9515_s20 + $0x110] sm:$0xff] %v5205_v47  ;;  %v5206_v13 = vmax.f32 %v5142_v44, 0.0 }
 0x61c   : > { %5267 = vst [vmem:[%s9515_s20 + $0x100] sm:$0xff] %v5203_v7  ;;  %v5204_v28 = vmax.f32 %v5140_v31, 0.0  ;;  %v6262_v50 = vpop.f32.mrb[132].mxu0  ;;  %v10335_v31 = vmax.f32 %v10334_v26, 0.0 }
 0x61d   : > { %5270 = vst [vmem:[%s9515_s20 + $0x118] sm:$0xff] %v5206_v13  ;;  %v5005_v21 = vadd.f32 %v6262_v50, %v9465_v34  ;;  %v4996_v5 = vpop.f32.mrb[133].mxu0 }
 0x61e   : > { %5268 = vst [vmem:[%s9515_s20 + $0x108] sm:$0xff] %v5204_v28  ;;  %v4997_v27 = vadd.f32 %v9465_v34, %v4996_v5  ;;  %v6263_v30 = vpop.f32.mrb[134].mxu0 }
 0x61f   : > { %v5145_v40 = vadd.f32 %v5005_v21, %v10319_v17  ;;  %v5008_v57 = vadd.f32 %v6263_v30, %v9465_v34  ;;  %v4999_v9 = vpop.f32.mrb[135].mxu0  ;;  %v10336_v21 = vld [vmem:[#allocation40_spill] sm:$0xff] }
 0x620   : > { %v5143_v12 = vadd.f32 %v4997_v27, %v10321_v6  ;;  %v5000_v29 = vadd.f32 %v9465_v34, %v4999_v9  ;;  %v10337_v5 = vmax.f32 %v10336_v21, 0.0  ;;  %v10340_v6 = vld [vmem:[#allocation14_spill] sm:$0xff]  ;;  %v10355_v21 = vld [vmem:[#allocation13_spill] sm:$0xff] }
 0x621   : > { %v5209_v41 = vmax.f32 %v5145_v40, 0.0  ;;  %v5146_v39 = vadd.f32 %v5008_v57, %v10323_v63  ;;  %v10338_v40 = vld [vmem:[#allocation42_spill] sm:$0xff] }
 0x622   : > { %v5207_v0 = vmax.f32 %v5143_v12, 0.0  ;;  %v5144_v45 = vadd.f32 %v5000_v29, %v10325_v55  ;;  %v10339_v57 = vmax.f32 %v10338_v40, 0.0  ;;  %v10341_v12 = vmax.f32 %v10340_v6, 0.0 }
 0x623   : > { %5273 = vst [vmem:[%s9515_s20 + $0x130] sm:$0xff] %v5209_v41  ;;  %v5210_v20 = vmax.f32 %v5146_v39, 0.0  ;;  %v10357_v6 = vmax.f32 %v9335_v16, 0.0 }
 0x624   : > { %5271 = vst [vmem:[%s9515_s20 + $0x120] sm:$0xff] %v5207_v0  ;;  %v5208_v58 = vmax.f32 %v5144_v45, 0.0  ;;  %v6266_v33 = vpop.f32.mrb[136].mxu0  ;;  %v10342_v45 = vld [vmem:[#allocation39_spill] sm:$0xff] }
 0x625   : > { %5274 = vst [vmem:[%s9515_s20 + $0x138] sm:$0xff] %v5210_v20  ;;  %v5021_v22 = vadd.f32 %v6266_v33, %v9465_v34  ;;  %v5012_v32 = vpop.f32.mrb[137].mxu0  ;;  %v10343_v20 = vmax.f32 %v10342_v45, 0.0 }
 0x626   : > { %5272 = vst [vmem:[%s9515_s20 + $0x128] sm:$0xff] %v5208_v58  ;;  %v5013_v51 = vadd.f32 %v9465_v34, %v5012_v32  ;;  %v6267_v60 = vpop.f32.mrb[138].mxu0  ;;  %v10344_v32 = vld [vmem:[#allocation17_spill] sm:$0xff] }
 0x627   : > { %v5149_v62 = vadd.f32 %v5021_v22, %v10327_v52  ;;  %v5024_v49 = vadd.f32 %v6267_v60, %v9465_v34  ;;  %v5015_v38 = vpop.f32.mrb[139].mxu0 }
 0x628   : > { %v5147_v35 = vadd.f32 %v5013_v51, %v10329_v8  ;;  %v5016_v61 = vadd.f32 %v9465_v34, %v5015_v38  ;;  %v10345_v51 = vmax.f32 %v10344_v32, 0.0  ;;  %v10348_v8 = vld [vmem:[#allocation19_spill] sm:$0xff] }
 0x629   : > { %v5213_v56 = vmax.f32 %v5149_v62, 0.0  ;;  %v5150_v18 = vadd.f32 %v5024_v49, %v10331_v11  ;;  %v10346_v62 = vld [vmem:[#allocation16_spill] sm:$0xff] }
 0x62a   : > { %v5211_v3 = vmax.f32 %v5147_v35, 0.0  ;;  %v5148_v48 = vadd.f32 %v5016_v61, %v10333_v19  ;;  %v10347_v49 = vmax.f32 %v10346_v62, 0.0  ;;  %v10349_v35 = vmax.f32 %v10348_v8, 0.0 }
 0x62b   : > { %5277 = vst [vmem:[%s9515_s20 + $0x150] sm:$0xff] %v5213_v56  ;;  %v5214_v54 = vmax.f32 %v5150_v18, 0.0 }
 0x62c   : > { %5275 = vst [vmem:[%s9515_s20 + $0x140] sm:$0xff] %v5211_v3  ;;  %v5212_v36 = vmax.f32 %v5148_v48, 0.0  ;;  %v6270_v10 = vpop.f32.mrb[140].mxu0  ;;  %v10350_v48 = vmax.f32 %v9299_v4, 0.0 }
 0x62d   : > { %5278 = vst [vmem:[%s9515_s20 + $0x158] sm:$0xff] %v5214_v54  ;;  %v5037_v47 = vadd.f32 %v6270_v10, %v9465_v34  ;;  %v5028_v15 = vpop.f32.mrb[141].mxu0 }
 0x62e   : > { %5276 = vst [vmem:[%s9515_s20 + $0x148] sm:$0xff] %v5212_v36  ;;  %v5029_v44 = vadd.f32 %v9465_v34, %v5028_v15  ;;  %v6271_v7 = vpop.f32.mrb[142].mxu0 }
 0x62f   : > { %v5153_v13 = vadd.f32 %v5037_v47, %v10335_v31  ;;  %v5040_v28 = vadd.f32 %v6271_v7, %v9465_v34  ;;  %v5031_v50 = vpop.f32.mrb[143].mxu0  ;;  %v10351_v47 = vld [vmem:[#allocation54_spill] sm:$0xff] }
 0x630   : > { %v5151_v27 = vadd.f32 %v5029_v44, %v10337_v5  ;;  %v5032_v30 = vadd.f32 %v9465_v34, %v5031_v50  ;;  %v10352_v15 = vmax.f32 %v10351_v47, 0.0  ;;  %v10353_v31 = vld [vmem:[#allocation46_spill] sm:$0xff]  ;;  %v10356_v5 = vmax.f32 %v10355_v21, 0.0 }
 0x631   : > { %v5217_v17 = vmax.f32 %v5153_v13, 0.0  ;;  %v5154_v9 = vadd.f32 %v5040_v28, %v10339_v57  ;;  %v10354_v13 = vmax.f32 %v10353_v31, 0.0 }
 0x632   : > { %v5215_v37 = vmax.f32 %v5151_v27, 0.0  ;;  %v5152_v29 = vadd.f32 %v5032_v30, %v10341_v12 }
 0x633   : > { %5281 = vst [vmem:[%s9515_s20 + $0x170] sm:$0xff] %v5217_v17  ;;  %v5218_v41 = vmax.f32 %v5154_v9, 0.0 }
 0x634   : > { %5279 = vst [vmem:[%s9515_s20 + $0x160] sm:$0xff] %v5215_v37  ;;  %v5216_v46 = vmax.f32 %v5152_v29, 0.0  ;;  %v6274_v63 = vpop.f32.mrb[144].mxu0 }
 0x635   : > { %5282 = vst [vmem:[%s9515_s20 + $0x178] sm:$0xff] %v5218_v41  ;;  %v5053_v39 = vadd.f32 %v6274_v63, %v9465_v34  ;;  %v5044_v0 = vpop.f32.mrb[145].mxu0 }
 0x636   : > { %5280 = vst [vmem:[%s9515_s20 + $0x168] sm:$0xff] %v5216_v46  ;;  %v5045_v23 = vadd.f32 %v9465_v34, %v5044_v0  ;;  %v6275_v55 = vpop.f32.mrb[146].mxu0  ;;  %v10358_v46 = vld [vmem:[#allocation22_spill] sm:$0xff] }
 0x637   : > { %v5157_v58 = vadd.f32 %v5053_v39, %v10343_v20  ;;  %v5056_v33 = vadd.f32 %v6275_v55, %v9465_v34  ;;  %v5047_v22 = vpop.f32.mrb[147].mxu0  ;;  %v10359_v63 = vmax.f32 %v10358_v46, 0.0  ;;  %v10360_v55 = vmax.f32 %v9341_v53, 0.0 }
 0x638   : > { %v5155_v60 = vadd.f32 %v5045_v23, %v10345_v51  ;;  %v5048_v25 = vadd.f32 %v9465_v34, %v5047_v22 }
 0x639   : > { %v5221_v52 = vmax.f32 %v5157_v58, 0.0  ;;  %v5158_v38 = vadd.f32 %v5056_v33, %v10347_v49  ;;  %v10361_v58 = vmax.f32 %v9343_v14, 0.0 }
 0x63a   : > { %v5219_v42 = vmax.f32 %v5155_v60, 0.0  ;;  %v5156_v61 = vadd.f32 %v5048_v25, %v10349_v35 }
 0x63b   : > { %5285 = vst [vmem:[%s9515_s20 + $0x190] sm:$0xff] %v5221_v52  ;;  %v5222_v56 = vmax.f32 %v5158_v38, 0.0  ;;  %v10362_v52 = vmax.f32 %v9371_v24, 0.0  ;;  %v10363_v38 = vmax.f32 %v9375_v59, 0.0 }
 0x63c   : > { %5283 = vst [vmem:[%s9515_s20 + $0x180] sm:$0xff] %v5219_v42  ;;  %v5220_v2 = vmax.f32 %v5156_v61, 0.0  ;;  %v6278_v11 = vpop.f32.mrb[148].mxu0  ;;  %v10364_v61 = vmax.f32 %v9377_v43, 0.0 }
 0x63d   : > { %5286 = vst [vmem:[%s9515_s20 + $0x198] sm:$0xff] %v5222_v56  ;;  %v5069_v18 = vadd.f32 %v6278_v11, %v9465_v34  ;;  %v5060_v3 = vpop.f32.mrb[149].mxu0 }
 0x63e   : > { %5284 = vst [vmem:[%s9515_s20 + $0x188] sm:$0xff] %v5220_v2  ;;  %v5061_v1 = vadd.f32 %v9465_v34, %v5060_v3  ;;  %v6279_v19 = vpop.f32.mrb[150].mxu0  ;;  %v10365_v2 = vld [vmem:[#allocation45_spill] sm:$0xff] }
 0x63f   : > { %v5161_v54 = vadd.f32 %v5069_v18, %v10350_v48  ;;  %v5072_v36 = vadd.f32 %v6279_v19, %v9465_v34  ;;  %v5063_v10 = vpop.f32.mrb[151].mxu0  ;;  %v10366_v11 = vmax.f32 %v10365_v2, 0.0 }
 0x640   : > { %v5159_v44 = vadd.f32 %v5061_v1, %v10352_v15  ;;  %v5064_v7 = vadd.f32 %v9465_v34, %v5063_v10 }
 0x641   : > { %v5225_v26 = vmax.f32 %v5161_v54, 0.0  ;;  %v5162_v28 = vadd.f32 %v5072_v36, %v10354_v13 }
 0x642   : > { %v5223_v50 = vmax.f32 %v5159_v44, 0.0  ;;  %v5160_v27 = vadd.f32 %v5064_v7, %v10356_v5 }
 0x643   : > { %5289 = vst [vmem:[%s9515_s20 + $0x1b0] sm:$0xff] %v5225_v26  ;;  %v5226_v4 = vmax.f32 %v5162_v28, 0.0 }
 0x644   : > { %5287 = vst [vmem:[%s9515_s20 + $0x1a0] sm:$0xff] %v5223_v50  ;;  %v5224_v30 = vmax.f32 %v5160_v27, 0.0  ;;  %v6282_v17 = vpop.f32.mrb[152].mxu0 }
 0x645   : > { %5290 = vst [vmem:[%s9515_s20 + $0x1b8] sm:$0xff] %v5226_v4  ;;  %v5085_v40 = vadd.f32 %v6282_v17, %v9465_v34  ;;  %v5076_v57 = vpop.f32.mrb[153].mxu0 }
 0x646   : > { %5288 = vst [vmem:[%s9515_s20 + $0x1a8] sm:$0xff] %v5224_v30  ;;  %v5077_v9 = vadd.f32 %v9465_v34, %v5076_v57  ;;  %v6283_v37 = vpop.f32.mrb[154].mxu0 }
 0x647   : > { %v5165_v12 = vadd.f32 %v5085_v40, %v10357_v6  ;;  %v5088_v29 = vadd.f32 %v6283_v37, %v9465_v34  ;;  %v5079_v41 = vpop.f32.mrb[155].mxu0 }
 0x648   : > { %v5163_v39 = vadd.f32 %v5077_v9, %v10359_v63  ;;  %v5080_v0 = vadd.f32 %v9465_v34, %v5079_v41 }
 0x649   : > { %v5229_v23 = vmax.f32 %v5165_v12, 0.0  ;;  %v5166_v45 = vadd.f32 %v5088_v29, %v10360_v55 }
 0x64a   : > { %v5227_v20 = vmax.f32 %v5163_v39, 0.0  ;;  %v5164_v33 = vadd.f32 %v5080_v0, %v10361_v58 }
 0x64b   : > { %5293 = vst [vmem:[%s9515_s20 + $0x1d0] sm:$0xff] %v5229_v23  ;;  %v5230_v16 = vmax.f32 %v5166_v45, 0.0 }
 0x64c   : > { %5291 = vst [vmem:[%s9515_s20 + $0x1c0] sm:$0xff] %v5227_v20  ;;  %v5228_v22 = vmax.f32 %v5164_v33, 0.0  ;;  %v6286_v32 = vpop.f32.mrb[156].mxu0 }
 0x64d   : > { %5294 = vst [vmem:[%s9515_s20 + $0x1d8] sm:$0xff] %v5230_v16  ;;  %v5101_v51 = vadd.f32 %v6286_v32, %v9465_v34  ;;  %v5092_v60 = vpop.f32.mrb[157].mxu0 }
 0x64e   : > { %5292 = vst [vmem:[%s9515_s20 + $0x1c8] sm:$0xff] %v5228_v22  ;;  %v5093_v53 = vadd.f32 %v9465_v34, %v5092_v60  ;;  %v6287_v25 = vpop.f32.mrb[158].mxu0 }
 0x64f   : > { %v5169_v14 = vadd.f32 %v5101_v51, %v10362_v52  ;;  %v5104_v62 = vadd.f32 %v6287_v25, %v9465_v34  ;;  %v5095_v49 = vpop.f32.mrb[159].mxu0 }
 0x650   : > { %v5167_v42 = vadd.f32 %v5093_v53, %v10363_v38  ;;  %v5096_v8 = vadd.f32 %v9465_v34, %v5095_v49 }
 0x651   : > { %v5233_v35 = vmax.f32 %v5169_v14, 0.0  ;;  %v5170_v24 = vadd.f32 %v5104_v62, %v10364_v61 }
 0x652   : > { %v5231_v56 = vmax.f32 %v5167_v42, 0.0  ;;  %v5168_v18 = vadd.f32 %v5096_v8, %v10366_v11 }
 0x653   : > { %5297 = vst [vmem:[%s9515_s20 + $0x1f0] sm:$0xff] %v5233_v35  ;;  %v5234_v3 = vmax.f32 %v5170_v24, 0.0 }
 0x654   : > { %5295 = vst [vmem:[%s9515_s20 + $0x1e0] sm:$0xff] %v5231_v56  ;;  %v5232_v59 = vmax.f32 %v5168_v18, 0.0 }
 0x655   : > { %5298 = vst [vmem:[%s9515_s20 + $0x1f8] sm:$0xff] %v5234_v3 }
 0x656   : > { %5296 = vst [vmem:[%s9515_s20 + $0x1e8] sm:$0xff] %v5232_v59 }
 0x657   : > { %6636 = shalt.err (!%p6633_p9)
}
 0x658   : > { %s6637_s20 = scalar_lea.hbm %s9763_s22, 8192  ;;  %s6641_s15 = scalar_lea.hbm %s9825_s14, 16384 }
 0x659   : > { %p6638_p10 = scmp.ne.s32.totalorder %s9763_s22, %s6637_s20  ;;  %p6642_p13 = scmp.lt.u32.totalorder %s9763_s22, %s9825_s14 }
 0x65a   : > { %p6643_p0 = scmp.lt.u32.totalorder %s6641_s15, %s6637_s20  ;;  %p6645_p2 = scmp.lt.u32.totalorder %s6637_s20, %s9763_s22 }
 0x65b   : > { %p6639_p11 = pnand %p6638_p10, %p6811_p5 }
 0x65c   : > { %p6644_p1 = por %p6643_p0, %p6642_p13 }
 0x65d   : > { %p6640_p12 = pneg %p6639_p11 }
 0x65e   : > { %p6646_p3 = por %p6645_p2, %p6644_p1 }
 0x660   : > { %p6647_p4 = pnand %p6646_p3, %p6640_p12 }
 0x662   : > { %6650 = shalt.err (!%p6647_p4)
}
 0x663   : > { %s6696_s27 = smov 128   ;;  %s6697_s25 = smov 8  }
 0x664   : > { %6315 = dma.vmem_to_hbm [thread:$0]  (%p6811_p5), %s9765_s21, 8192, %s9763_s22, %s5305_s17, %s6696_s27, %s6696_s27, %s6697_s25  }
 0x665 PF: > { %p6325_p7 = scmp.ge.s32.totalorder %s6689_s16, 2  ;;  %s5350_s18 = sand.u32 1, %s6677_s29  }
 0x666   : > { %s5351_s20 = scalar_lea.sflag [#allocation3], %s5350_s18 }
 0x667   : > { %p6319_p8 = pnand %p6325_p7, %p6815_p6 }
 0x669   : > { %6668 = dma.done.wait (!%p6319_p8), %s5351_s20, 24576  }
 0x66a   : > { %6670 = vsyncadd (!%p6319_p8), %s5351_s20, 4294942720  ;;  %s5360_s15 = scalar_lea.sflag [#allocation5], %s5350_s18 }
 0x66b   : > { %6672 = dma.done.wait (!%p6319_p8), %s5360_s15, 8192  }
 0x66c   : > { %6674 = vsyncadd (!%p6319_p8), %s5360_s15, 4294959104  ;;  %s10368_s16 = sld [smem:[#allocation9_spill]]  ;;  %s10369_s24 = sld [smem:[#allocation8_spill]] }
 0x66d   : > { %s10370_s15 = sld [smem:[#allocation10_spill]]  ;;  %s10371_s29 = smov %s6681_s30 }
 0x672   : > { %p28_p5 = scmp.ge.s32.totalorder %s10368_s16, 4   ;;  %s10372_s30 = smov %s10369_s24 }
 0x674   :  { %30 = sbr.rel (!%p28_p5) target bundleno = 5 (0x5), region = 124 }
 0x67b   :  { %5365 = vsyncpa [#allocation3], 1 }
 0x67c   :  { %5367 = vsyncpa [#allocation3 + $0x1], 1 }
 0x67d   :  { %5368 = vsyncpa [#allocation5], 1 }
 0x67e   :  { %5370 = vsyncpa [#allocation5 + $0x1], 1 }

</bundles_post_ra>
